<compile_context>
chip_gen: v7x
topology: tpu7x:2x2x1
jax: 0.10.0
libtpu: 0.0.40
codegen_flags: <defaults>
</compile_context>

<pallas_src>
import jax
import jax.numpy as jnp
from jax import lax
from jax.experimental import pallas as pl
from jax.experimental.pallas import tpu as pltpu

H = 50     # LSTM hidden size (fixed by the module)
HP = 128   # padded hidden size inside the kernel (gate slices become whole vreg strips; 4*HP=512)


def position_classifier_kernel(
    x_ref, w1, b1, w2, b2, w3, b3, w4, b4,
    wih, whh, blstm, wfc, bfc, bn_scale, bn_shift, o_ref
):
    N = x_ref.shape[0]            # N = L * Bp, time-major rows (r = t*Bp + b), Bp multiple of 8
    Bp = o_ref.shape[0]
    L = N // Bp
    Hp = whh.shape[0]             # padded hidden size (128)

    x = x_ref[...].astype(jnp.float32)                        # (N, Cin)

    # Row masks for the conv boundary (t == 0 / t == L-1), shared by all 4 conv layers.
    r_idx = lax.broadcasted_iota(jnp.int32, (N, 1), 0)
    is_first = r_idx < Bp                                      # rows with t == 0
    is_last = r_idx >= N - Bp                                  # rows with t == L-1

    def conv1d_same(h, w_ref, b_ref):
        # Conv1d(kernel=3, stride=1, padding=1) on time-major channels-last data.
        # prev tap: row r-Bp (masked at t==0); next tap: row r+Bp (masked at t==L-1).
        # The 3 taps are fused into a single matmul against a (3*Cin, Cout) bf16 weight.
        h_prev = jnp.where(is_first, 0.0, pltpu.roll(h, shift=Bp, axis=0))
        h_next = jnp.where(is_last, 0.0, pltpu.roll(h, shift=N - Bp, axis=0))
        h_cat = jnp.concatenate([h_prev, h, h_next], axis=-1).astype(jnp.bfloat16)
        return (jnp.dot(h_cat, w_ref[...], preferred_element_type=jnp.float32)
                + b_ref[...])

    # Conv stack (no nonlinearity between convs, matching the torch forward).
    h = conv1d_same(x, w1, b1)                                 # (N, 16)
    h = conv1d_same(h, w2, b2)                                 # (N, 32)
    h = conv1d_same(h, w3, b3)                                 # (N, 64)
    h = conv1d_same(h, w4, b4)                                 # (N, 128)

    # LSTM: hoisted input projection for ALL timesteps (bias folded in), gates fused (i|f|g|o),
    # each gate block zero-padded to Hp columns (inert by the padding invariant above).
    xg = (jnp.dot(h.astype(jnp.bfloat16), wih[...], preferred_element_type=jnp.float32)
          + blstm[...])                                        # (N, 4*Hp), f32

    whh_v = whh[...]                                           # (Hp, 4*Hp) f32, loaded once
    hs = jnp.zeros((Bp, Hp), jnp.float32)
    cs = jnp.zeros((Bp, Hp), jnp.float32)

    # Fully unrolled recurrence (L is a static, small trace-time constant).  Per-step xg slice is
    # an (8k, 128m)-aligned slab because Bp is a multiple of 8 and 4*Hp is a multiple of 128.
    for t in range(L):
        gp = xg[t * Bp:(t + 1) * Bp, :] + jnp.dot(hs, whh_v, preferred_element_type=jnp.float32)
        i_g = jax.nn.sigmoid(gp[:, 0:Hp])
        f_g = jax.nn.sigmoid(gp[:, Hp:2 * Hp])
        g_g = jnp.tanh(gp[:, 2 * Hp:3 * Hp])
        o_g = jax.nn.sigmoid(gp[:, 3 * Hp:4 * Hp])
        cs = f_g * cs + i_g * g_g
        hs = o_g * jnp.tanh(cs)

    # Dropout: eval-mode identity.
    logits = jnp.dot(hs, wfc[...], preferred_element_type=jnp.float32) + bfc[...]   # (Bp, out_ch)
    r = jnp.maximum(logits, 0.0)                               # ReLU
    bn = r * bn_scale[...] + bn_shift[...]                     # eval-mode BatchNorm1d
    m = jnp.max(bn, axis=-1, keepdims=True)                    # LogSoftmax(dim=-1)
    z = bn - m
    lse = jnp.log(jnp.sum(jnp.exp(z), axis=-1, keepdims=True))
    o_ref[...] = z - lse                                       # (Bp, out_ch)


def position_classifier(x, kp):
    B, L, Cin = x.shape
    out_ch = kp["fc_w"].shape[1]

    # Pad batch to a multiple of 8 sublanes; time-major flatten (tiny, plain XLA): r = t*Bp + b.
    Bp = ((B + 7) // 8) * 8
    xp = jnp.pad(x, ((0, Bp - B), (0, 0), (0, 0)))
    xt = jnp.transpose(xp, (1, 0, 2)).reshape(L * Bp, Cin)

    args = [
        kp["w1"], kp["b1"], kp["w2"], kp["b2"], kp["w3"], kp["b3"], kp["w4"], kp["b4"],
        kp["wih"], kp["whh"], kp["blstm"], kp["fc_w"], kp["fc_b"],
        kp["bn_scale"], kp["bn_shift"],
    ]

    def full_spec(a):
        nd = a.ndim
        return pl.BlockSpec(a.shape, lambda i, _nd=nd: (0,) * _nd)

    in_specs = [pl.BlockSpec((L * Bp, Cin), lambda i: (0, 0))] + [full_spec(a) for a in args]

    out = pl.pallas_call(
        position_classifier_kernel,
        out_shape=jax.ShapeDtypeStruct((Bp, out_ch), jnp.float32),
        grid_spec=pltpu.PrefetchScalarGridSpec(
            num_scalar_prefetch=0,
            grid=(1,),
            in_specs=in_specs,
            out_specs=pl.BlockSpec((Bp, out_ch), lambda i: (0, 0)),
        ),
        compiler_params=pltpu.CompilerParams(dimension_semantics=("arbitrary",)),
    )(xt, *args)
    return out[:B]


# --------------------------- parameter construction ---------------------------

def init_torch_params(key, in_channel, out_channel):
    """Parameters in PyTorch layouts (used by the pure-JAX reference)."""
    ks = jax.random.split(key, 10)

    def conv(k, cin, cout):
        kw, kb = jax.random.split(k)
        w = jax.random.normal(kw, (cout, cin, 3), jnp.float32) * 0.1
        b = jax.random.normal(kb, (cout,), jnp.float32) * 0.1
        return w, b

    p = {}
    p["c1_w"], p["c1_b"] = conv(ks[0], in_channel, 16)
    p["c2_w"], p["c2_b"] = conv(ks[1], 16, 32)
    p["c3_w"], p["c3_b"] = conv(ks[2], 32, 64)
    p["c4_w"], p["c4_b"] = conv(ks[3], 64, 128)
    # LSTM, torch layout: weight_ih (4H, 128), weight_hh (4H, H), gate order i, f, g, o
    p["w_ih"] = jax.random.normal(ks[4], (4 * H, 128), jnp.float32) * 0.1
    p["w_hh"] = jax.random.normal(ks[5], (4 * H, H), jnp.float32) * 0.1
    p["b_ih"] = jax.random.normal(ks[6], (4 * H,), jnp.float32) * 0.1
    p["b_hh"] = jax.random.normal(ks[7], (4 * H,), jnp.float32) * 0.1
    # fc: Linear(50, out_channel)
    p["fc_w"] = jax.random.normal(ks[8], (out_channel, H), jnp.float32) * 0.1
    p["fc_b"] = jax.random.normal(ks[9], (out_channel,), jnp.float32) * 0.1
    # BatchNorm1d(out_channel), eval mode with fresh running stats
    p["bn_gamma"] = jnp.ones((out_channel,), jnp.float32)
    p["bn_beta"] = jnp.zeros((out_channel,), jnp.float32)
    p["bn_mean"] = jnp.zeros((out_channel,), jnp.float32)
    p["bn_var"] = jnp.ones((out_channel,), jnp.float32)
    return p


def to_kernel_params(tp):
    """Convert torch-layout params to the kernel layout.

    - Conv weights: 3 taps stacked along K -> (3*Cin, Cout), cast bf16 (MXU operands).
    - LSTM: gates fused (i|f|g|o), each gate block zero-padded 50 -> HP cols; whh rows,
      fc rows and blstm pad entries are exactly zero (see padding invariant at top of file).
    - wih cast bf16 (used with bf16 activations); whh / fc stay f32 (recurrent & tail path).
    """
    def conv_fused(w, b):
        # w: (Cout, Cin, 3) -> (3*Cin, Cout), taps stacked [prev; center; next] along K.
        wk = jnp.concatenate([w[:, :, k].T for k in range(3)], axis=0)
        return wk.astype(jnp.bfloat16), b.reshape(1, -1)

    kp = {}
    kp["w1"], kp["b1"] = conv_fused(tp["c1_w"], tp["c1_b"])
    kp["w2"], kp["b2"] = conv_fused(tp["c2_w"], tp["c2_b"])
    kp["w3"], kp["b3"] = conv_fused(tp["c3_w"], tp["c3_b"])
    kp["w4"], kp["b4"] = conv_fused(tp["c4_w"], tp["c4_b"])

    def pad_gate_cols(w):
        # w: (in, 4*H) with gate blocks of width H -> (in, 4*HP), each gate zero-padded to HP cols.
        blocks = [jnp.pad(w[:, g * H:(g + 1) * H], ((0, 0), (0, HP - H))) for g in range(4)]
        return jnp.concatenate(blocks, axis=1)

    kp["wih"] = pad_gate_cols(tp["w_ih"].T).astype(jnp.bfloat16)              # (128, 4*HP) bf16
    kp["whh"] = jnp.pad(pad_gate_cols(tp["w_hh"].T), ((0, HP - H), (0, 0)))   # (HP, 4*HP) f32
    kp["blstm"] = pad_gate_cols((tp["b_ih"] + tp["b_hh"]).reshape(1, 4 * H))  # (1, 4*HP)

    kp["fc_w"] = jnp.pad(tp["fc_w"].T, ((0, HP - H), (0, 0)))                 # (HP, out_ch)
    kp["fc_b"] = tp["fc_b"].reshape(1, -1)

    eps = 1e-5
    scale = tp["bn_gamma"] / jnp.sqrt(tp["bn_var"] + eps)
    kp["bn_scale"] = scale.reshape(1, -1)
    kp["bn_shift"] = (tp["bn_beta"] - tp["bn_mean"] * scale).reshape(1, -1)
    return kp


# --------------------------------- reference ----------------------------------

def reference(x, tp):
    """Pure-JAX reference using the raw torch-layout params (unpadded H=50, all f32)."""
    B, L, _ = x.shape

    def conv(h, w, b):  # h: (B, L, Cin), w: (Cout, Cin, 3), b: (Cout,)
        hp = jnp.pad(h, ((0, 0), (1, 1), (0, 0)))
        y = sum(jnp.einsum("blc,oc->blo", hp[:, k:k + L], w[:, :, k]) for k in range(3))
        return y + b

    h = conv(x, tp["c1_w"], tp["c1_b"])
    h = conv(h, tp["c2_w"], tp["c2_b"])
    h = conv(h, tp["c3_w"], tp["c3_b"])
    h = conv(h, tp["c4_w"], tp["c4_b"])                        # (B, L, 128)

    def step(carry, x_t):
        ht, ct = carry
        gates = x_t @ tp["w_ih"].T + ht @ tp["w_hh"].T + tp["b_ih"] + tp["b_hh"]
        i = jax.nn.sigmoid(gates[:, 0:H])
        f = jax.nn.sigmoid(gates[:, H:2 * H])
        g = jnp.tanh(gates[:, 2 * H:3 * H])
        o = jax.nn.sigmoid(gates[:, 3 * H:4 * H])
        cn = f * ct + i * g
        hn = o * jnp.tanh(cn)
        return (hn, cn), None

    (hl, _), _ = lax.scan(step, (jnp.zeros((B, H)), jnp.zeros((B, H))),
                          jnp.transpose(h, (1, 0, 2)))
    logits = hl @ tp["fc_w"].T + tp["fc_b"]
    r = jnp.maximum(logits, 0.0)
    eps = 1e-5
    bn = tp["bn_gamma"] * (r - tp["bn_mean"]) / jnp.sqrt(tp["bn_var"] + eps) + tp["bn_beta"]
    return jax.nn.log_softmax(bn, axis=-1)


if __name__ == "__main__":
    key = jax.random.PRNGKey(0)
    kx, kparam = jax.random.split(key)

    B, L, Cin, out_ch = 2, 16, 4, 8
    x = jax.random.normal(kx, (B, L, Cin), jnp.float32)

    torch_params = init_torch_params(kparam, Cin, out_ch)
    kernel_params = to_kernel_params(torch_params)

    out = position_classifier(x, kernel_params)
    jax.block_until_ready(out)

    ref = reference(x, torch_params)
    assert out.shape == (B, out_ch)
    assert jnp.allclose(out, ref, atol=5e-3, rtol=5e-3), (out, ref)

    print("KERNEL_OK")
</pallas_src>

<mosaic_0001>
module attributes {stable_mosaic.version = 11 : i64} {
  func.func @position_classifier_kernel(%arg0: i32, %arg1: memref<128x4xf32, #tpu.memory_space<vmem>>, %arg2: memref<12x16xbf16, #tpu.memory_space<vmem>>, %arg3: memref<1x16xf32, #tpu.memory_space<vmem>>, %arg4: memref<48x32xbf16, #tpu.memory_space<vmem>>, %arg5: memref<1x32xf32, #tpu.memory_space<vmem>>, %arg6: memref<96x64xbf16, #tpu.memory_space<vmem>>, %arg7: memref<1x64xf32, #tpu.memory_space<vmem>>, %arg8: memref<192x128xbf16, #tpu.memory_space<vmem>>, %arg9: memref<1x128xf32, #tpu.memory_space<vmem>>, %arg10: memref<128x512xbf16, #tpu.memory_space<vmem>>, %arg11: memref<128x512xf32, #tpu.memory_space<vmem>>, %arg12: memref<1x512xf32, #tpu.memory_space<vmem>>, %arg13: memref<128x8xf32, #tpu.memory_space<vmem>>, %arg14: memref<1x8xf32, #tpu.memory_space<vmem>>, %arg15: memref<1x8xf32, #tpu.memory_space<vmem>>, %arg16: memref<1x8xf32, #tpu.memory_space<vmem>>, %arg17: memref<8x8xf32, #tpu.memory_space<vmem>>) attributes {dimension_semantics = [#tpu.dimension_semantics<arbitrary>], iteration_bounds = array<i64: 1>, scalar_prefetch = 0 : i64, scratch_operands = 0 : i64, tpu.core_type = #tpu.core_type<tc>, window_params = [{pipeline_mode = #tpu.pipeline_mode<synchronous>, transform_indices = @transform_0, window_bounds = array<i64: 128, 4>}, {pipeline_mode = #tpu.pipeline_mode<synchronous>, transform_indices = @transform_1, window_bounds = array<i64: 12, 16>}, {pipeline_mode = #tpu.pipeline_mode<synchronous>, transform_indices = @transform_2, window_bounds = array<i64: 1, 16>}, {pipeline_mode = #tpu.pipeline_mode<synchronous>, transform_indices = @transform_3, window_bounds = array<i64: 48, 32>}, {pipeline_mode = #tpu.pipeline_mode<synchronous>, transform_indices = @transform_4, window_bounds = array<i64: 1, 32>}, {pipeline_mode = #tpu.pipeline_mode<synchronous>, transform_indices = @transform_5, window_bounds = array<i64: 96, 64>}, {pipeline_mode = #tpu.pipeline_mode<synchronous>, transform_indices = @transform_6, window_bounds = array<i64: 1, 64>}, {pipeline_mode = #tpu.pipeline_mode<synchronous>, transform_indices = @transform_7, window_bounds = array<i64: 192, 128>}, {pipeline_mode = #tpu.pipeline_mode<synchronous>, transform_indices = @transform_8, window_bounds = array<i64: 1, 128>}, {pipeline_mode = #tpu.pipeline_mode<synchronous>, transform_indices = @transform_9, window_bounds = array<i64: 128, 512>}, {pipeline_mode = #tpu.pipeline_mode<synchronous>, transform_indices = @transform_10, window_bounds = array<i64: 128, 512>}, {pipeline_mode = #tpu.pipeline_mode<synchronous>, transform_indices = @transform_11, window_bounds = array<i64: 1, 512>}, {pipeline_mode = #tpu.pipeline_mode<synchronous>, transform_indices = @transform_12, window_bounds = array<i64: 128, 8>}, {pipeline_mode = #tpu.pipeline_mode<synchronous>, transform_indices = @transform_13, window_bounds = array<i64: 1, 8>}, {pipeline_mode = #tpu.pipeline_mode<synchronous>, transform_indices = @transform_14, window_bounds = array<i64: 1, 8>}, {pipeline_mode = #tpu.pipeline_mode<synchronous>, transform_indices = @transform_15, window_bounds = array<i64: 1, 8>}, {pipeline_mode = #tpu.pipeline_mode<synchronous>, transform_indices = @transform_16, window_bounds = array<i64: 8, 8>}]} {
    %c0 = arith.constant 0 : index
    %c0_0 = arith.constant 0 : index
    %0 = vector.load %arg1[%c0, %c0_0] : memref<128x4xf32, #tpu.memory_space<vmem>>, vector<128x4xf32>
    %1 = tpu.iota {dimensions = array<i32: 0>} : vector<128x1xi32>
    %c8_i32 = arith.constant 8 : i32
    %2 = vector.broadcast %c8_i32 : i32 to vector<128x1xi32>
    %3 = arith.cmpi slt, %1, %2 : vector<128x1xi32>
    %c120_i32 = arith.constant 120 : i32
    %4 = vector.broadcast %c120_i32 : i32 to vector<128x1xi32>
    %5 = arith.cmpi sge, %1, %4 : vector<128x1xi32>
    %c8_i32_1 = arith.constant 8 : i32
    %6 = tpu.dynamic_rotate %0 by %c8_i32_1 dim 0 : vector<128x4xf32>, i32 -> vector<128x4xf32>
    %cst = arith.constant 0.000000e+00 : f32
    %7 = vector.shape_cast %3 : vector<128x1xi1> to vector<128x1xi1>
    %8 = vector.broadcast %7 : vector<128x1xi1> to vector<128x4xi1>
    %9 = vector.broadcast %cst : f32 to vector<128x4xf32>
    %10 = arith.select %8, %9, %6 : vector<128x4xi1>, vector<128x4xf32>
    %c120_i32_2 = arith.constant 120 : i32
    %11 = tpu.dynamic_rotate %0 by %c120_i32_2 dim 0 : vector<128x4xf32>, i32 -> vector<128x4xf32>
    %cst_3 = arith.constant 0.000000e+00 : f32
    %12 = vector.shape_cast %5 : vector<128x1xi1> to vector<128x1xi1>
    %13 = vector.broadcast %12 : vector<128x1xi1> to vector<128x4xi1>
    %14 = vector.broadcast %cst_3 : f32 to vector<128x4xf32>
    %15 = arith.select %13, %14, %11 : vector<128x4xi1>, vector<128x4xf32>
    %16 = tpu.concatenate %10, %0, %15 in 1 : vector<128x4xf32>, vector<128x4xf32>, vector<128x4xf32> -> vector<128x12xf32>
    %17 = arith.truncf %16 : vector<128x12xf32> to vector<128x12xbf16>
    %c0_4 = arith.constant 0 : index
    %c0_5 = arith.constant 0 : index
    %18 = vector.load %arg2[%c0_4, %c0_5] : memref<12x16xbf16, #tpu.memory_space<vmem>>, vector<12x16xbf16>
    %cst_6 = arith.constant dense<0.000000e+00> : vector<128x16xf32>
    %19 = tpu.matmul %17, %18, %cst_6 {dimension_numbers = #tpu.dot_dimension_numbers<[1], [0], [0], [1], [0, 0, 1, 1], [], []>} : vector<128x12xbf16>, vector<12x16xbf16>, vector<128x16xf32> -> vector<128x16xf32>
    %c0_7 = arith.constant 0 : index
    %c0_8 = arith.constant 0 : index
    %20 = vector.load %arg3[%c0_7, %c0_8] : memref<1x16xf32, #tpu.memory_space<vmem>>, vector<1x16xf32>
    %21 = vector.broadcast %20 : vector<1x16xf32> to vector<128x16xf32>
    %22 = arith.addf %19, %21 : vector<128x16xf32>
    %c8_i32_9 = arith.constant 8 : i32
    %23 = tpu.dynamic_rotate %22 by %c8_i32_9 dim 0 : vector<128x16xf32>, i32 -> vector<128x16xf32>
    %cst_10 = arith.constant 0.000000e+00 : f32
    %24 = vector.shape_cast %3 : vector<128x1xi1> to vector<128x1xi1>
    %25 = vector.broadcast %24 : vector<128x1xi1> to vector<128x16xi1>
    %26 = vector.broadcast %cst_10 : f32 to vector<128x16xf32>
    %27 = arith.select %25, %26, %23 : vector<128x16xi1>, vector<128x16xf32>
    %c120_i32_11 = arith.constant 120 : i32
    %28 = tpu.dynamic_rotate %22 by %c120_i32_11 dim 0 : vector<128x16xf32>, i32 -> vector<128x16xf32>
    %cst_12 = arith.constant 0.000000e+00 : f32
    %29 = vector.shape_cast %5 : vector<128x1xi1> to vector<128x1xi1>
    %30 = vector.broadcast %29 : vector<128x1xi1> to vector<128x16xi1>
    %31 = vector.broadcast %cst_12 : f32 to vector<128x16xf32>
    %32 = arith.select %30, %31, %28 : vector<128x16xi1>, vector<128x16xf32>
    %33 = tpu.concatenate %27, %22, %32 in 1 : vector<128x16xf32>, vector<128x16xf32>, vector<128x16xf32> -> vector<128x48xf32>
    %34 = arith.truncf %33 : vector<128x48xf32> to vector<128x48xbf16>
    %c0_13 = arith.constant 0 : index
    %c0_14 = arith.constant 0 : index
    %35 = vector.load %arg4[%c0_13, %c0_14] : memref<48x32xbf16, #tpu.memory_space<vmem>>, vector<48x32xbf16>
    %cst_15 = arith.constant dense<0.000000e+00> : vector<128x32xf32>
    %36 = tpu.matmul %34, %35, %cst_15 {dimension_numbers = #tpu.dot_dimension_numbers<[1], [0], [0], [1], [0, 0, 1, 1], [], []>} : vector<128x48xbf16>, vector<48x32xbf16>, vector<128x32xf32> -> vector<128x32xf32>
    %c0_16 = arith.constant 0 : index
    %c0_17 = arith.constant 0 : index
    %37 = vector.load %arg5[%c0_16, %c0_17] : memref<1x32xf32, #tpu.memory_space<vmem>>, vector<1x32xf32>
    %38 = vector.broadcast %37 : vector<1x32xf32> to vector<128x32xf32>
    %39 = arith.addf %36, %38 : vector<128x32xf32>
    %c8_i32_18 = arith.constant 8 : i32
    %40 = tpu.dynamic_rotate %39 by %c8_i32_18 dim 0 : vector<128x32xf32>, i32 -> vector<128x32xf32>
    %cst_19 = arith.constant 0.000000e+00 : f32
    %41 = vector.shape_cast %3 : vector<128x1xi1> to vector<128x1xi1>
    %42 = vector.broadcast %41 : vector<128x1xi1> to vector<128x32xi1>
    %43 = vector.broadcast %cst_19 : f32 to vector<128x32xf32>
    %44 = arith.select %42, %43, %40 : vector<128x32xi1>, vector<128x32xf32>
    %c120_i32_20 = arith.constant 120 : i32
    %45 = tpu.dynamic_rotate %39 by %c120_i32_20 dim 0 : vector<128x32xf32>, i32 -> vector<128x32xf32>
    %cst_21 = arith.constant 0.000000e+00 : f32
    %46 = vector.shape_cast %5 : vector<128x1xi1> to vector<128x1xi1>
    %47 = vector.broadcast %46 : vector<128x1xi1> to vector<128x32xi1>
    %48 = vector.broadcast %cst_21 : f32 to vector<128x32xf32>
    %49 = arith.select %47, %48, %45 : vector<128x32xi1>, vector<128x32xf32>
    %50 = tpu.concatenate %44, %39, %49 in 1 : vector<128x32xf32>, vector<128x32xf32>, vector<128x32xf32> -> vector<128x96xf32>
    %51 = arith.truncf %50 : vector<128x96xf32> to vector<128x96xbf16>
    %c0_22 = arith.constant 0 : index
    %c0_23 = arith.constant 0 : index
    %52 = vector.load %arg6[%c0_22, %c0_23] : memref<96x64xbf16, #tpu.memory_space<vmem>>, vector<96x64xbf16>
    %cst_24 = arith.constant dense<0.000000e+00> : vector<128x64xf32>
    %53 = tpu.matmul %51, %52, %cst_24 {dimension_numbers = #tpu.dot_dimension_numbers<[1], [0], [0], [1], [0, 0, 1, 1], [], []>} : vector<128x96xbf16>, vector<96x64xbf16>, vector<128x64xf32> -> vector<128x64xf32>
    %c0_25 = arith.constant 0 : index
    %c0_26 = arith.constant 0 : index
    %54 = vector.load %arg7[%c0_25, %c0_26] : memref<1x64xf32, #tpu.memory_space<vmem>>, vector<1x64xf32>
    %55 = vector.broadcast %54 : vector<1x64xf32> to vector<128x64xf32>
    %56 = arith.addf %53, %55 : vector<128x64xf32>
    %c8_i32_27 = arith.constant 8 : i32
    %57 = tpu.dynamic_rotate %56 by %c8_i32_27 dim 0 : vector<128x64xf32>, i32 -> vector<128x64xf32>
    %cst_28 = arith.constant 0.000000e+00 : f32
    %58 = vector.shape_cast %3 : vector<128x1xi1> to vector<128x1xi1>
    %59 = vector.broadcast %58 : vector<128x1xi1> to vector<128x64xi1>
    %60 = vector.broadcast %cst_28 : f32 to vector<128x64xf32>
    %61 = arith.select %59, %60, %57 : vector<128x64xi1>, vector<128x64xf32>
    %c120_i32_29 = arith.constant 120 : i32
    %62 = tpu.dynamic_rotate %56 by %c120_i32_29 dim 0 : vector<128x64xf32>, i32 -> vector<128x64xf32>
    %cst_30 = arith.constant 0.000000e+00 : f32
    %63 = vector.shape_cast %5 : vector<128x1xi1> to vector<128x1xi1>
    %64 = vector.broadcast %63 : vector<128x1xi1> to vector<128x64xi1>
    %65 = vector.broadcast %cst_30 : f32 to vector<128x64xf32>
    %66 = arith.select %64, %65, %62 : vector<128x64xi1>, vector<128x64xf32>
    %67 = tpu.concatenate %61, %56, %66 in 1 : vector<128x64xf32>, vector<128x64xf32>, vector<128x64xf32> -> vector<128x192xf32>
    %68 = arith.truncf %67 : vector<128x192xf32> to vector<128x192xbf16>
    %c0_31 = arith.constant 0 : index
    %c0_32 = arith.constant 0 : index
    %69 = vector.load %arg8[%c0_31, %c0_32] : memref<192x128xbf16, #tpu.memory_space<vmem>>, vector<192x128xbf16>
    %cst_33 = arith.constant dense<0.000000e+00> : vector<128x128xf32>
    %70 = tpu.matmul %68, %69, %cst_33 {dimension_numbers = #tpu.dot_dimension_numbers<[1], [0], [0], [1], [0, 0, 1, 1], [], []>} : vector<128x192xbf16>, vector<192x128xbf16>, vector<128x128xf32> -> vector<128x128xf32>
    %c0_34 = arith.constant 0 : index
    %c0_35 = arith.constant 0 : index
    %71 = vector.load %arg9[%c0_34, %c0_35] : memref<1x128xf32, #tpu.memory_space<vmem>>, vector<1x128xf32>
    %72 = vector.broadcast %71 : vector<1x128xf32> to vector<128x128xf32>
    %73 = arith.addf %70, %72 : vector<128x128xf32>
    %74 = arith.truncf %73 : vector<128x128xf32> to vector<128x128xbf16>
    %c0_36 = arith.constant 0 : index
    %c0_37 = arith.constant 0 : index
    %75 = vector.load %arg10[%c0_36, %c0_37] : memref<128x512xbf16, #tpu.memory_space<vmem>>, vector<128x512xbf16>
    %cst_38 = arith.constant dense<0.000000e+00> : vector<128x512xf32>
    %76 = tpu.matmul %74, %75, %cst_38 {dimension_numbers = #tpu.dot_dimension_numbers<[1], [0], [0], [1], [0, 0, 1, 1], [], []>} : vector<128x128xbf16>, vector<128x512xbf16>, vector<128x512xf32> -> vector<128x512xf32>
    %c0_39 = arith.constant 0 : index
    %c0_40 = arith.constant 0 : index
    %77 = vector.load %arg12[%c0_39, %c0_40] : memref<1x512xf32, #tpu.memory_space<vmem>>, vector<1x512xf32>
    %78 = vector.broadcast %77 : vector<1x512xf32> to vector<128x512xf32>
    %79 = arith.addf %76, %78 : vector<128x512xf32>
    %c0_41 = arith.constant 0 : index
    %c0_42 = arith.constant 0 : index
    %80 = vector.load %arg11[%c0_41, %c0_42] : memref<128x512xf32, #tpu.memory_space<vmem>>, vector<128x512xf32>
    %cst_43 = arith.constant 0.000000e+00 : f32
    %81 = vector.broadcast %cst_43 : f32 to vector<8x128xf32>
    %cst_44 = arith.constant 0.000000e+00 : f32
    %82 = vector.broadcast %cst_44 : f32 to vector<8x128xf32>
    %83 = vector.extract_strided_slice %79 {offsets = [0, 0], sizes = [8, 512], strides = [1, 1]} : vector<128x512xf32> to vector<8x512xf32>
    %cst_45 = arith.constant dense<0.000000e+00> : vector<8x512xf32>
    %84 = tpu.matmul %81, %80, %cst_45 {dimension_numbers = #tpu.dot_dimension_numbers<[1], [0], [0], [1], [0, 0, 1, 1], [], []>} : vector<8x128xf32>, vector<128x512xf32>, vector<8x512xf32> -> vector<8x512xf32>
    %85 = arith.addf %83, %84 : vector<8x512xf32>
    %86 = vector.extract_strided_slice %85 {offsets = [0, 0], sizes = [8, 128], strides = [1, 1]} : vector<8x512xf32> to vector<8x128xf32>
    %87 = arith.negf %86 : vector<8x128xf32>
    %88 = math.exp %87 : vector<8x128xf32>
    %cst_46 = arith.constant 1.000000e+00 : f32
    %89 = vector.broadcast %cst_46 : f32 to vector<8x128xf32>
    %90 = arith.addf %89, %88 : vector<8x128xf32>
    %91 = arith.divf %89, %90 : vector<8x128xf32>
    %92 = vector.extract_strided_slice %85 {offsets = [0, 128], sizes = [8, 128], strides = [1, 1]} : vector<8x512xf32> to vector<8x128xf32>
    %93 = arith.negf %92 : vector<8x128xf32>
    %94 = math.exp %93 : vector<8x128xf32>
    %cst_47 = arith.constant 1.000000e+00 : f32
    %95 = vector.broadcast %cst_47 : f32 to vector<8x128xf32>
    %96 = arith.addf %95, %94 : vector<8x128xf32>
    %97 = arith.divf %95, %96 : vector<8x128xf32>
    %98 = vector.extract_strided_slice %85 {offsets = [0, 256], sizes = [8, 128], strides = [1, 1]} : vector<8x512xf32> to vector<8x128xf32>
    %99 = math.tanh %98 : vector<8x128xf32>
    %100 = vector.extract_strided_slice %85 {offsets = [0, 384], sizes = [8, 128], strides = [1, 1]} : vector<8x512xf32> to vector<8x128xf32>
    %101 = arith.negf %100 : vector<8x128xf32>
    %102 = math.exp %101 : vector<8x128xf32>
    %cst_48 = arith.constant 1.000000e+00 : f32
    %103 = vector.broadcast %cst_48 : f32 to vector<8x128xf32>
    %104 = arith.addf %103, %102 : vector<8x128xf32>
    %105 = arith.divf %103, %104 : vector<8x128xf32>
    %106 = arith.mulf %97, %82 : vector<8x128xf32>
    %107 = arith.mulf %91, %99 : vector<8x128xf32>
    %108 = arith.addf %106, %107 : vector<8x128xf32>
    %109 = math.tanh %108 : vector<8x128xf32>
    %110 = arith.mulf %105, %109 : vector<8x128xf32>
    %111 = vector.extract_strided_slice %79 {offsets = [8, 0], sizes = [8, 512], strides = [1, 1]} : vector<128x512xf32> to vector<8x512xf32>
    %cst_49 = arith.constant dense<0.000000e+00> : vector<8x512xf32>
    %112 = tpu.matmul %110, %80, %cst_49 {dimension_numbers = #tpu.dot_dimension_numbers<[1], [0], [0], [1], [0, 0, 1, 1], [], []>} : vector<8x128xf32>, vector<128x512xf32>, vector<8x512xf32> -> vector<8x512xf32>
    %113 = arith.addf %111, %112 : vector<8x512xf32>
    %114 = vector.extract_strided_slice %113 {offsets = [0, 0], sizes = [8, 128], strides = [1, 1]} : vector<8x512xf32> to vector<8x128xf32>
    %115 = arith.negf %114 : vector<8x128xf32>
    %116 = math.exp %115 : vector<8x128xf32>
    %cst_50 = arith.constant 1.000000e+00 : f32
    %117 = vector.broadcast %cst_50 : f32 to vector<8x128xf32>
    %118 = arith.addf %117, %116 : vector<8x128xf32>
    %119 = arith.divf %117, %118 : vector<8x128xf32>
    %120 = vector.extract_strided_slice %113 {offsets = [0, 128], sizes = [8, 128], strides = [1, 1]} : vector<8x512xf32> to vector<8x128xf32>
    %121 = arith.negf %120 : vector<8x128xf32>
    %122 = math.exp %121 : vector<8x128xf32>
    %cst_51 = arith.constant 1.000000e+00 : f32
    %123 = vector.broadcast %cst_51 : f32 to vector<8x128xf32>
    %124 = arith.addf %123, %122 : vector<8x128xf32>
    %125 = arith.divf %123, %124 : vector<8x128xf32>
    %126 = vector.extract_strided_slice %113 {offsets = [0, 256], sizes = [8, 128], strides = [1, 1]} : vector<8x512xf32> to vector<8x128xf32>
    %127 = math.tanh %126 : vector<8x128xf32>
    %128 = vector.extract_strided_slice %113 {offsets = [0, 384], sizes = [8, 128], strides = [1, 1]} : vector<8x512xf32> to vector<8x128xf32>
    %129 = arith.negf %128 : vector<8x128xf32>
    %130 = math.exp %129 : vector<8x128xf32>
    %cst_52 = arith.constant 1.000000e+00 : f32
    %131 = vector.broadcast %cst_52 : f32 to vector<8x128xf32>
    %132 = arith.addf %131, %130 : vector<8x128xf32>
    %133 = arith.divf %131, %132 : vector<8x128xf32>
    %134 = arith.mulf %125, %108 : vector<8x128xf32>
    %135 = arith.mulf %119, %127 : vector<8x128xf32>
    %136 = arith.addf %134, %135 : vector<8x128xf32>
    %137 = math.tanh %136 : vector<8x128xf32>
    %138 = arith.mulf %133, %137 : vector<8x128xf32>
    %139 = vector.extract_strided_slice %79 {offsets = [16, 0], sizes = [8, 512], strides = [1, 1]} : vector<128x512xf32> to vector<8x512xf32>
    %cst_53 = arith.constant dense<0.000000e+00> : vector<8x512xf32>
    %140 = tpu.matmul %138, %80, %cst_53 {dimension_numbers = #tpu.dot_dimension_numbers<[1], [0], [0], [1], [0, 0, 1, 1], [], []>} : vector<8x128xf32>, vector<128x512xf32>, vector<8x512xf32> -> vector<8x512xf32>
    %141 = arith.addf %139, %140 : vector<8x512xf32>
    %142 = vector.extract_strided_slice %141 {offsets = [0, 0], sizes = [8, 128], strides = [1, 1]} : vector<8x512xf32> to vector<8x128xf32>
    %143 = arith.negf %142 : vector<8x128xf32>
    %144 = math.exp %143 : vector<8x128xf32>
    %cst_54 = arith.constant 1.000000e+00 : f32
    %145 = vector.broadcast %cst_54 : f32 to vector<8x128xf32>
    %146 = arith.addf %145, %144 : vector<8x128xf32>
    %147 = arith.divf %145, %146 : vector<8x128xf32>
    %148 = vector.extract_strided_slice %141 {offsets = [0, 128], sizes = [8, 128], strides = [1, 1]} : vector<8x512xf32> to vector<8x128xf32>
    %149 = arith.negf %148 : vector<8x128xf32>
    %150 = math.exp %149 : vector<8x128xf32>
    %cst_55 = arith.constant 1.000000e+00 : f32
    %151 = vector.broadcast %cst_55 : f32 to vector<8x128xf32>
    %152 = arith.addf %151, %150 : vector<8x128xf32>
    %153 = arith.divf %151, %152 : vector<8x128xf32>
    %154 = vector.extract_strided_slice %141 {offsets = [0, 256], sizes = [8, 128], strides = [1, 1]} : vector<8x512xf32> to vector<8x128xf32>
    %155 = math.tanh %154 : vector<8x128xf32>
    %156 = vector.extract_strided_slice %141 {offsets = [0, 384], sizes = [8, 128], strides = [1, 1]} : vector<8x512xf32> to vector<8x128xf32>
    %157 = arith.negf %156 : vector<8x128xf32>
    %158 = math.exp %157 : vector<8x128xf32>
    %cst_56 = arith.constant 1.000000e+00 : f32
    %159 = vector.broadcast %cst_56 : f32 to vector<8x128xf32>
    %160 = arith.addf %159, %158 : vector<8x128xf32>
    %161 = arith.divf %159, %160 : vector<8x128xf32>
    %162 = arith.mulf %153, %136 : vector<8x128xf32>
    %163 = arith.mulf %147, %155 : vector<8x128xf32>
    %164 = arith.addf %162, %163 : vector<8x128xf32>
    %165 = math.tanh %164 : vector<8x128xf32>
    %166 = arith.mulf %161, %165 : vector<8x128xf32>
    %167 = vector.extract_strided_slice %79 {offsets = [24, 0], sizes = [8, 512], strides = [1, 1]} : vector<128x512xf32> to vector<8x512xf32>
    %cst_57 = arith.constant dense<0.000000e+00> : vector<8x512xf32>
    %168 = tpu.matmul %166, %80, %cst_57 {dimension_numbers = #tpu.dot_dimension_numbers<[1], [0], [0], [1], [0, 0, 1, 1], [], []>} : vector<8x128xf32>, vector<128x512xf32>, vector<8x512xf32> -> vector<8x512xf32>
    %169 = arith.addf %167, %168 : vector<8x512xf32>
    %170 = vector.extract_strided_slice %169 {offsets = [0, 0], sizes = [8, 128], strides = [1, 1]} : vector<8x512xf32> to vector<8x128xf32>
    %171 = arith.negf %170 : vector<8x128xf32>
    %172 = math.exp %171 : vector<8x128xf32>
    %cst_58 = arith.constant 1.000000e+00 : f32
    %173 = vector.broadcast %cst_58 : f32 to vector<8x128xf32>
    %174 = arith.addf %173, %172 : vector<8x128xf32>
    %175 = arith.divf %173, %174 : vector<8x128xf32>
    %176 = vector.extract_strided_slice %169 {offsets = [0, 128], sizes = [8, 128], strides = [1, 1]} : vector<8x512xf32> to vector<8x128xf32>
    %177 = arith.negf %176 : vector<8x128xf32>
    %178 = math.exp %177 : vector<8x128xf32>
    %cst_59 = arith.constant 1.000000e+00 : f32
    %179 = vector.broadcast %cst_59 : f32 to vector<8x128xf32>
    %180 = arith.addf %179, %178 : vector<8x128xf32>
    %181 = arith.divf %179, %180 : vector<8x128xf32>
    %182 = vector.extract_strided_slice %169 {offsets = [0, 256], sizes = [8, 128], strides = [1, 1]} : vector<8x512xf32> to vector<8x128xf32>
    %183 = math.tanh %182 : vector<8x128xf32>
    %184 = vector.extract_strided_slice %169 {offsets = [0, 384], sizes = [8, 128], strides = [1, 1]} : vector<8x512xf32> to vector<8x128xf32>
    %185 = arith.negf %184 : vector<8x128xf32>
    %186 = math.exp %185 : vector<8x128xf32>
    %cst_60 = arith.constant 1.000000e+00 : f32
    %187 = vector.broadcast %cst_60 : f32 to vector<8x128xf32>
    %188 = arith.addf %187, %186 : vector<8x128xf32>
    %189 = arith.divf %187, %188 : vector<8x128xf32>
    %190 = arith.mulf %181, %164 : vector<8x128xf32>
    %191 = arith.mulf %175, %183 : vector<8x128xf32>
    %192 = arith.addf %190, %191 : vector<8x128xf32>
    %193 = math.tanh %192 : vector<8x128xf32>
    %194 = arith.mulf %189, %193 : vector<8x128xf32>
    %195 = vector.extract_strided_slice %79 {offsets = [32, 0], sizes = [8, 512], strides = [1, 1]} : vector<128x512xf32> to vector<8x512xf32>
    %cst_61 = arith.constant dense<0.000000e+00> : vector<8x512xf32>
    %196 = tpu.matmul %194, %80, %cst_61 {dimension_numbers = #tpu.dot_dimension_numbers<[1], [0], [0], [1], [0, 0, 1, 1], [], []>} : vector<8x128xf32>, vector<128x512xf32>, vector<8x512xf32> -> vector<8x512xf32>
    %197 = arith.addf %195, %196 : vector<8x512xf32>
    %198 = vector.extract_strided_slice %197 {offsets = [0, 0], sizes = [8, 128], strides = [1, 1]} : vector<8x512xf32> to vector<8x128xf32>
    %199 = arith.negf %198 : vector<8x128xf32>
    %200 = math.exp %199 : vector<8x128xf32>
    %cst_62 = arith.constant 1.000000e+00 : f32
    %201 = vector.broadcast %cst_62 : f32 to vector<8x128xf32>
    %202 = arith.addf %201, %200 : vector<8x128xf32>
    %203 = arith.divf %201, %202 : vector<8x128xf32>
    %204 = vector.extract_strided_slice %197 {offsets = [0, 128], sizes = [8, 128], strides = [1, 1]} : vector<8x512xf32> to vector<8x128xf32>
    %205 = arith.negf %204 : vector<8x128xf32>
    %206 = math.exp %205 : vector<8x128xf32>
    %cst_63 = arith.constant 1.000000e+00 : f32
    %207 = vector.broadcast %cst_63 : f32 to vector<8x128xf32>
    %208 = arith.addf %207, %206 : vector<8x128xf32>
    %209 = arith.divf %207, %208 : vector<8x128xf32>
    %210 = vector.extract_strided_slice %197 {offsets = [0, 256], sizes = [8, 128], strides = [1, 1]} : vector<8x512xf32> to vector<8x128xf32>
    %211 = math.tanh %210 : vector<8x128xf32>
    %212 = vector.extract_strided_slice %197 {offsets = [0, 384], sizes = [8, 128], strides = [1, 1]} : vector<8x512xf32> to vector<8x128xf32>
    %213 = arith.negf %212 : vector<8x128xf32>
    %214 = math.exp %213 : vector<8x128xf32>
    %cst_64 = arith.constant 1.000000e+00 : f32
    %215 = vector.broadcast %cst_64 : f32 to vector<8x128xf32>
    %216 = arith.addf %215, %214 : vector<8x128xf32>
    %217 = arith.divf %215, %216 : vector<8x128xf32>
    %218 = arith.mulf %209, %192 : vector<8x128xf32>
    %219 = arith.mulf %203, %211 : vector<8x128xf32>
    %220 = arith.addf %218, %219 : vector<8x128xf32>
    %221 = math.tanh %220 : vector<8x128xf32>
    %222 = arith.mulf %217, %221 : vector<8x128xf32>
    %223 = vector.extract_strided_slice %79 {offsets = [40, 0], sizes = [8, 512], strides = [1, 1]} : vector<128x512xf32> to vector<8x512xf32>
    %cst_65 = arith.constant dense<0.000000e+00> : vector<8x512xf32>
    %224 = tpu.matmul %222, %80, %cst_65 {dimension_numbers = #tpu.dot_dimension_numbers<[1], [0], [0], [1], [0, 0, 1, 1], [], []>} : vector<8x128xf32>, vector<128x512xf32>, vector<8x512xf32> -> vector<8x512xf32>
    %225 = arith.addf %223, %224 : vector<8x512xf32>
    %226 = vector.extract_strided_slice %225 {offsets = [0, 0], sizes = [8, 128], strides = [1, 1]} : vector<8x512xf32> to vector<8x128xf32>
    %227 = arith.negf %226 : vector<8x128xf32>
    %228 = math.exp %227 : vector<8x128xf32>
    %cst_66 = arith.constant 1.000000e+00 : f32
    %229 = vector.broadcast %cst_66 : f32 to vector<8x128xf32>
    %230 = arith.addf %229, %228 : vector<8x128xf32>
    %231 = arith.divf %229, %230 : vector<8x128xf32>
    %232 = vector.extract_strided_slice %225 {offsets = [0, 128], sizes = [8, 128], strides = [1, 1]} : vector<8x512xf32> to vector<8x128xf32>
    %233 = arith.negf %232 : vector<8x128xf32>
    %234 = math.exp %233 : vector<8x128xf32>
    %cst_67 = arith.constant 1.000000e+00 : f32
    %235 = vector.broadcast %cst_67 : f32 to vector<8x128xf32>
    %236 = arith.addf %235, %234 : vector<8x128xf32>
    %237 = arith.divf %235, %236 : vector<8x128xf32>
    %238 = vector.extract_strided_slice %225 {offsets = [0, 256], sizes = [8, 128], strides = [1, 1]} : vector<8x512xf32> to vector<8x128xf32>
    %239 = math.tanh %238 : vector<8x128xf32>
    %240 = vector.extract_strided_slice %225 {offsets = [0, 384], sizes = [8, 128], strides = [1, 1]} : vector<8x512xf32> to vector<8x128xf32>
    %241 = arith.negf %240 : vector<8x128xf32>
    %242 = math.exp %241 : vector<8x128xf32>
    %cst_68 = arith.constant 1.000000e+00 : f32
    %243 = vector.broadcast %cst_68 : f32 to vector<8x128xf32>
    %244 = arith.addf %243, %242 : vector<8x128xf32>
    %245 = arith.divf %243, %244 : vector<8x128xf32>
    %246 = arith.mulf %237, %220 : vector<8x128xf32>
    %247 = arith.mulf %231, %239 : vector<8x128xf32>
    %248 = arith.addf %246, %247 : vector<8x128xf32>
    %249 = math.tanh %248 : vector<8x128xf32>
    %250 = arith.mulf %245, %249 : vector<8x128xf32>
    %251 = vector.extract_strided_slice %79 {offsets = [48, 0], sizes = [8, 512], strides = [1, 1]} : vector<128x512xf32> to vector<8x512xf32>
    %cst_69 = arith.constant dense<0.000000e+00> : vector<8x512xf32>
    %252 = tpu.matmul %250, %80, %cst_69 {dimension_numbers = #tpu.dot_dimension_numbers<[1], [0], [0], [1], [0, 0, 1, 1], [], []>} : vector<8x128xf32>, vector<128x512xf32>, vector<8x512xf32> -> vector<8x512xf32>
    %253 = arith.addf %251, %252 : vector<8x512xf32>
    %254 = vector.extract_strided_slice %253 {offsets = [0, 0], sizes = [8, 128], strides = [1, 1]} : vector<8x512xf32> to vector<8x128xf32>
    %255 = arith.negf %254 : vector<8x128xf32>
    %256 = math.exp %255 : vector<8x128xf32>
    %cst_70 = arith.constant 1.000000e+00 : f32
    %257 = vector.broadcast %cst_70 : f32 to vector<8x128xf32>
    %258 = arith.addf %257, %256 : vector<8x128xf32>
    %259 = arith.divf %257, %258 : vector<8x128xf32>
    %260 = vector.extract_strided_slice %253 {offsets = [0, 128], sizes = [8, 128], strides = [1, 1]} : vector<8x512xf32> to vector<8x128xf32>
    %261 = arith.negf %260 : vector<8x128xf32>
    %262 = math.exp %261 : vector<8x128xf32>
    %cst_71 = arith.constant 1.000000e+00 : f32
    %263 = vector.broadcast %cst_71 : f32 to vector<8x128xf32>
    %264 = arith.addf %263, %262 : vector<8x128xf32>
    %265 = arith.divf %263, %264 : vector<8x128xf32>
    %266 = vector.extract_strided_slice %253 {offsets = [0, 256], sizes = [8, 128], strides = [1, 1]} : vector<8x512xf32> to vector<8x128xf32>
    %267 = math.tanh %266 : vector<8x128xf32>
    %268 = vector.extract_strided_slice %253 {offsets = [0, 384], sizes = [8, 128], strides = [1, 1]} : vector<8x512xf32> to vector<8x128xf32>
    %269 = arith.negf %268 : vector<8x128xf32>
    %270 = math.exp %269 : vector<8x128xf32>
    %cst_72 = arith.constant 1.000000e+00 : f32
    %271 = vector.broadcast %cst_72 : f32 to vector<8x128xf32>
    %272 = arith.addf %271, %270 : vector<8x128xf32>
    %273 = arith.divf %271, %272 : vector<8x128xf32>
    %274 = arith.mulf %265, %248 : vector<8x128xf32>
    %275 = arith.mulf %259, %267 : vector<8x128xf32>
    %276 = arith.addf %274, %275 : vector<8x128xf32>
    %277 = math.tanh %276 : vector<8x128xf32>
    %278 = arith.mulf %273, %277 : vector<8x128xf32>
    %279 = vector.extract_strided_slice %79 {offsets = [56, 0], sizes = [8, 512], strides = [1, 1]} : vector<128x512xf32> to vector<8x512xf32>
    %cst_73 = arith.constant dense<0.000000e+00> : vector<8x512xf32>
    %280 = tpu.matmul %278, %80, %cst_73 {dimension_numbers = #tpu.dot_dimension_numbers<[1], [0], [0], [1], [0, 0, 1, 1], [], []>} : vector<8x128xf32>, vector<128x512xf32>, vector<8x512xf32> -> vector<8x512xf32>
    %281 = arith.addf %279, %280 : vector<8x512xf32>
    %282 = vector.extract_strided_slice %281 {offsets = [0, 0], sizes = [8, 128], strides = [1, 1]} : vector<8x512xf32> to vector<8x128xf32>
    %283 = arith.negf %282 : vector<8x128xf32>
    %284 = math.exp %283 : vector<8x128xf32>
    %cst_74 = arith.constant 1.000000e+00 : f32
    %285 = vector.broadcast %cst_74 : f32 to vector<8x128xf32>
    %286 = arith.addf %285, %284 : vector<8x128xf32>
    %287 = arith.divf %285, %286 : vector<8x128xf32>
    %288 = vector.extract_strided_slice %281 {offsets = [0, 128], sizes = [8, 128], strides = [1, 1]} : vector<8x512xf32> to vector<8x128xf32>
    %289 = arith.negf %288 : vector<8x128xf32>
    %290 = math.exp %289 : vector<8x128xf32>
    %cst_75 = arith.constant 1.000000e+00 : f32
    %291 = vector.broadcast %cst_75 : f32 to vector<8x128xf32>
    %292 = arith.addf %291, %290 : vector<8x128xf32>
    %293 = arith.divf %291, %292 : vector<8x128xf32>
    %294 = vector.extract_strided_slice %281 {offsets = [0, 256], sizes = [8, 128], strides = [1, 1]} : vector<8x512xf32> to vector<8x128xf32>
    %295 = math.tanh %294 : vector<8x128xf32>
    %296 = vector.extract_strided_slice %281 {offsets = [0, 384], sizes = [8, 128], strides = [1, 1]} : vector<8x512xf32> to vector<8x128xf32>
    %297 = arith.negf %296 : vector<8x128xf32>
    %298 = math.exp %297 : vector<8x128xf32>
    %cst_76 = arith.constant 1.000000e+00 : f32
    %299 = vector.broadcast %cst_76 : f32 to vector<8x128xf32>
    %300 = arith.addf %299, %298 : vector<8x128xf32>
    %301 = arith.divf %299, %300 : vector<8x128xf32>
    %302 = arith.mulf %293, %276 : vector<8x128xf32>
    %303 = arith.mulf %287, %295 : vector<8x128xf32>
    %304 = arith.addf %302, %303 : vector<8x128xf32>
    %305 = math.tanh %304 : vector<8x128xf32>
    %306 = arith.mulf %301, %305 : vector<8x128xf32>
    %307 = vector.extract_strided_slice %79 {offsets = [64, 0], sizes = [8, 512], strides = [1, 1]} : vector<128x512xf32> to vector<8x512xf32>
    %cst_77 = arith.constant dense<0.000000e+00> : vector<8x512xf32>
    %308 = tpu.matmul %306, %80, %cst_77 {dimension_numbers = #tpu.dot_dimension_numbers<[1], [0], [0], [1], [0, 0, 1, 1], [], []>} : vector<8x128xf32>, vector<128x512xf32>, vector<8x512xf32> -> vector<8x512xf32>
    %309 = arith.addf %307, %308 : vector<8x512xf32>
    %310 = vector.extract_strided_slice %309 {offsets = [0, 0], sizes = [8, 128], strides = [1, 1]} : vector<8x512xf32> to vector<8x128xf32>
    %311 = arith.negf %310 : vector<8x128xf32>
    %312 = math.exp %311 : vector<8x128xf32>
    %cst_78 = arith.constant 1.000000e+00 : f32
    %313 = vector.broadcast %cst_78 : f32 to vector<8x128xf32>
    %314 = arith.addf %313, %312 : vector<8x128xf32>
    %315 = arith.divf %313, %314 : vector<8x128xf32>
    %316 = vector.extract_strided_slice %309 {offsets = [0, 128], sizes = [8, 128], strides = [1, 1]} : vector<8x512xf32> to vector<8x128xf32>
    %317 = arith.negf %316 : vector<8x128xf32>
    %318 = math.exp %317 : vector<8x128xf32>
    %cst_79 = arith.constant 1.000000e+00 : f32
    %319 = vector.broadcast %cst_79 : f32 to vector<8x128xf32>
    %320 = arith.addf %319, %318 : vector<8x128xf32>
    %321 = arith.divf %319, %320 : vector<8x128xf32>
    %322 = vector.extract_strided_slice %309 {offsets = [0, 256], sizes = [8, 128], strides = [1, 1]} : vector<8x512xf32> to vector<8x128xf32>
    %323 = math.tanh %322 : vector<8x128xf32>
    %324 = vector.extract_strided_slice %309 {offsets = [0, 384], sizes = [8, 128], strides = [1, 1]} : vector<8x512xf32> to vector<8x128xf32>
    %325 = arith.negf %324 : vector<8x128xf32>
    %326 = math.exp %325 : vector<8x128xf32>
    %cst_80 = arith.constant 1.000000e+00 : f32
    %327 = vector.broadcast %cst_80 : f32 to vector<8x128xf32>
    %328 = arith.addf %327, %326 : vector<8x128xf32>
    %329 = arith.divf %327, %328 : vector<8x128xf32>
    %330 = arith.mulf %321, %304 : vector<8x128xf32>
    %331 = arith.mulf %315, %323 : vector<8x128xf32>
    %332 = arith.addf %330, %331 : vector<8x128xf32>
    %333 = math.tanh %332 : vector<8x128xf32>
    %334 = arith.mulf %329, %333 : vector<8x128xf32>
    %335 = vector.extract_strided_slice %79 {offsets = [72, 0], sizes = [8, 512], strides = [1, 1]} : vector<128x512xf32> to vector<8x512xf32>
    %cst_81 = arith.constant dense<0.000000e+00> : vector<8x512xf32>
    %336 = tpu.matmul %334, %80, %cst_81 {dimension_numbers = #tpu.dot_dimension_numbers<[1], [0], [0], [1], [0, 0, 1, 1], [], []>} : vector<8x128xf32>, vector<128x512xf32>, vector<8x512xf32> -> vector<8x512xf32>
    %337 = arith.addf %335, %336 : vector<8x512xf32>
    %338 = vector.extract_strided_slice %337 {offsets = [0, 0], sizes = [8, 128], strides = [1, 1]} : vector<8x512xf32> to vector<8x128xf32>
    %339 = arith.negf %338 : vector<8x128xf32>
    %340 = math.exp %339 : vector<8x128xf32>
    %cst_82 = arith.constant 1.000000e+00 : f32
    %341 = vector.broadcast %cst_82 : f32 to vector<8x128xf32>
    %342 = arith.addf %341, %340 : vector<8x128xf32>
    %343 = arith.divf %341, %342 : vector<8x128xf32>
    %344 = vector.extract_strided_slice %337 {offsets = [0, 128], sizes = [8, 128], strides = [1, 1]} : vector<8x512xf32> to vector<8x128xf32>
    %345 = arith.negf %344 : vector<8x128xf32>
    %346 = math.exp %345 : vector<8x128xf32>
    %cst_83 = arith.constant 1.000000e+00 : f32
    %347 = vector.broadcast %cst_83 : f32 to vector<8x128xf32>
    %348 = arith.addf %347, %346 : vector<8x128xf32>
    %349 = arith.divf %347, %348 : vector<8x128xf32>
    %350 = vector.extract_strided_slice %337 {offsets = [0, 256], sizes = [8, 128], strides = [1, 1]} : vector<8x512xf32> to vector<8x128xf32>
    %351 = math.tanh %350 : vector<8x128xf32>
    %352 = vector.extract_strided_slice %337 {offsets = [0, 384], sizes = [8, 128], strides = [1, 1]} : vector<8x512xf32> to vector<8x128xf32>
    %353 = arith.negf %352 : vector<8x128xf32>
    %354 = math.exp %353 : vector<8x128xf32>
    %cst_84 = arith.constant 1.000000e+00 : f32
    %355 = vector.broadcast %cst_84 : f32 to vector<8x128xf32>
    %356 = arith.addf %355, %354 : vector<8x128xf32>
    %357 = arith.divf %355, %356 : vector<8x128xf32>
    %358 = arith.mulf %349, %332 : vector<8x128xf32>
    %359 = arith.mulf %343, %351 : vector<8x128xf32>
    %360 = arith.addf %358, %359 : vector<8x128xf32>
    %361 = math.tanh %360 : vector<8x128xf32>
    %362 = arith.mulf %357, %361 : vector<8x128xf32>
    %363 = vector.extract_strided_slice %79 {offsets = [80, 0], sizes = [8, 512], strides = [1, 1]} : vector<128x512xf32> to vector<8x512xf32>
    %cst_85 = arith.constant dense<0.000000e+00> : vector<8x512xf32>
    %364 = tpu.matmul %362, %80, %cst_85 {dimension_numbers = #tpu.dot_dimension_numbers<[1], [0], [0], [1], [0, 0, 1, 1], [], []>} : vector<8x128xf32>, vector<128x512xf32>, vector<8x512xf32> -> vector<8x512xf32>
    %365 = arith.addf %363, %364 : vector<8x512xf32>
    %366 = vector.extract_strided_slice %365 {offsets = [0, 0], sizes = [8, 128], strides = [1, 1]} : vector<8x512xf32> to vector<8x128xf32>
    %367 = arith.negf %366 : vector<8x128xf32>
    %368 = math.exp %367 : vector<8x128xf32>
    %cst_86 = arith.constant 1.000000e+00 : f32
    %369 = vector.broadcast %cst_86 : f32 to vector<8x128xf32>
    %370 = arith.addf %369, %368 : vector<8x128xf32>
    %371 = arith.divf %369, %370 : vector<8x128xf32>
    %372 = vector.extract_strided_slice %365 {offsets = [0, 128], sizes = [8, 128], strides = [1, 1]} : vector<8x512xf32> to vector<8x128xf32>
    %373 = arith.negf %372 : vector<8x128xf32>
    %374 = math.exp %373 : vector<8x128xf32>
    %cst_87 = arith.constant 1.000000e+00 : f32
    %375 = vector.broadcast %cst_87 : f32 to vector<8x128xf32>
    %376 = arith.addf %375, %374 : vector<8x128xf32>
    %377 = arith.divf %375, %376 : vector<8x128xf32>
    %378 = vector.extract_strided_slice %365 {offsets = [0, 256], sizes = [8, 128], strides = [1, 1]} : vector<8x512xf32> to vector<8x128xf32>
    %379 = math.tanh %378 : vector<8x128xf32>
    %380 = vector.extract_strided_slice %365 {offsets = [0, 384], sizes = [8, 128], strides = [1, 1]} : vector<8x512xf32> to vector<8x128xf32>
    %381 = arith.negf %380 : vector<8x128xf32>
    %382 = math.exp %381 : vector<8x128xf32>
    %cst_88 = arith.constant 1.000000e+00 : f32
    %383 = vector.broadcast %cst_88 : f32 to vector<8x128xf32>
    %384 = arith.addf %383, %382 : vector<8x128xf32>
    %385 = arith.divf %383, %384 : vector<8x128xf32>
    %386 = arith.mulf %377, %360 : vector<8x128xf32>
    %387 = arith.mulf %371, %379 : vector<8x128xf32>
    %388 = arith.addf %386, %387 : vector<8x128xf32>
    %389 = math.tanh %388 : vector<8x128xf32>
    %390 = arith.mulf %385, %389 : vector<8x128xf32>
    %391 = vector.extract_strided_slice %79 {offsets = [88, 0], sizes = [8, 512], strides = [1, 1]} : vector<128x512xf32> to vector<8x512xf32>
    %cst_89 = arith.constant dense<0.000000e+00> : vector<8x512xf32>
    %392 = tpu.matmul %390, %80, %cst_89 {dimension_numbers = #tpu.dot_dimension_numbers<[1], [0], [0], [1], [0, 0, 1, 1], [], []>} : vector<8x128xf32>, vector<128x512xf32>, vector<8x512xf32> -> vector<8x512xf32>
    %393 = arith.addf %391, %392 : vector<8x512xf32>
    %394 = vector.extract_strided_slice %393 {offsets = [0, 0], sizes = [8, 128], strides = [1, 1]} : vector<8x512xf32> to vector<8x128xf32>
    %395 = arith.negf %394 : vector<8x128xf32>
    %396 = math.exp %395 : vector<8x128xf32>
    %cst_90 = arith.constant 1.000000e+00 : f32
    %397 = vector.broadcast %cst_90 : f32 to vector<8x128xf32>
    %398 = arith.addf %397, %396 : vector<8x128xf32>
    %399 = arith.divf %397, %398 : vector<8x128xf32>
    %400 = vector.extract_strided_slice %393 {offsets = [0, 128], sizes = [8, 128], strides = [1, 1]} : vector<8x512xf32> to vector<8x128xf32>
    %401 = arith.negf %400 : vector<8x128xf32>
    %402 = math.exp %401 : vector<8x128xf32>
    %cst_91 = arith.constant 1.000000e+00 : f32
    %403 = vector.broadcast %cst_91 : f32 to vector<8x128xf32>
    %404 = arith.addf %403, %402 : vector<8x128xf32>
    %405 = arith.divf %403, %404 : vector<8x128xf32>
    %406 = vector.extract_strided_slice %393 {offsets = [0, 256], sizes = [8, 128], strides = [1, 1]} : vector<8x512xf32> to vector<8x128xf32>
    %407 = math.tanh %406 : vector<8x128xf32>
    %408 = vector.extract_strided_slice %393 {offsets = [0, 384], sizes = [8, 128], strides = [1, 1]} : vector<8x512xf32> to vector<8x128xf32>
    %409 = arith.negf %408 : vector<8x128xf32>
    %410 = math.exp %409 : vector<8x128xf32>
    %cst_92 = arith.constant 1.000000e+00 : f32
    %411 = vector.broadcast %cst_92 : f32 to vector<8x128xf32>
    %412 = arith.addf %411, %410 : vector<8x128xf32>
    %413 = arith.divf %411, %412 : vector<8x128xf32>
    %414 = arith.mulf %405, %388 : vector<8x128xf32>
    %415 = arith.mulf %399, %407 : vector<8x128xf32>
    %416 = arith.addf %414, %415 : vector<8x128xf32>
    %417 = math.tanh %416 : vector<8x128xf32>
    %418 = arith.mulf %413, %417 : vector<8x128xf32>
    %419 = vector.extract_strided_slice %79 {offsets = [96, 0], sizes = [8, 512], strides = [1, 1]} : vector<128x512xf32> to vector<8x512xf32>
    %cst_93 = arith.constant dense<0.000000e+00> : vector<8x512xf32>
    %420 = tpu.matmul %418, %80, %cst_93 {dimension_numbers = #tpu.dot_dimension_numbers<[1], [0], [0], [1], [0, 0, 1, 1], [], []>} : vector<8x128xf32>, vector<128x512xf32>, vector<8x512xf32> -> vector<8x512xf32>
    %421 = arith.addf %419, %420 : vector<8x512xf32>
    %422 = vector.extract_strided_slice %421 {offsets = [0, 0], sizes = [8, 128], strides = [1, 1]} : vector<8x512xf32> to vector<8x128xf32>
    %423 = arith.negf %422 : vector<8x128xf32>
    %424 = math.exp %423 : vector<8x128xf32>
    %cst_94 = arith.constant 1.000000e+00 : f32
    %425 = vector.broadcast %cst_94 : f32 to vector<8x128xf32>
    %426 = arith.addf %425, %424 : vector<8x128xf32>
    %427 = arith.divf %425, %426 : vector<8x128xf32>
    %428 = vector.extract_strided_slice %421 {offsets = [0, 128], sizes = [8, 128], strides = [1, 1]} : vector<8x512xf32> to vector<8x128xf32>
    %429 = arith.negf %428 : vector<8x128xf32>
    %430 = math.exp %429 : vector<8x128xf32>
    %cst_95 = arith.constant 1.000000e+00 : f32
    %431 = vector.broadcast %cst_95 : f32 to vector<8x128xf32>
    %432 = arith.addf %431, %430 : vector<8x128xf32>
    %433 = arith.divf %431, %432 : vector<8x128xf32>
    %434 = vector.extract_strided_slice %421 {offsets = [0, 256], sizes = [8, 128], strides = [1, 1]} : vector<8x512xf32> to vector<8x128xf32>
    %435 = math.tanh %434 : vector<8x128xf32>
    %436 = vector.extract_strided_slice %421 {offsets = [0, 384], sizes = [8, 128], strides = [1, 1]} : vector<8x512xf32> to vector<8x128xf32>
    %437 = arith.negf %436 : vector<8x128xf32>
    %438 = math.exp %437 : vector<8x128xf32>
    %cst_96 = arith.constant 1.000000e+00 : f32
    %439 = vector.broadcast %cst_96 : f32 to vector<8x128xf32>
    %440 = arith.addf %439, %438 : vector<8x128xf32>
    %441 = arith.divf %439, %440 : vector<8x128xf32>
    %442 = arith.mulf %433, %416 : vector<8x128xf32>
    %443 = arith.mulf %427, %435 : vector<8x128xf32>
    %444 = arith.addf %442, %443 : vector<8x128xf32>
    %445 = math.tanh %444 : vector<8x128xf32>
    %446 = arith.mulf %441, %445 : vector<8x128xf32>
    %447 = vector.extract_strided_slice %79 {offsets = [104, 0], sizes = [8, 512], strides = [1, 1]} : vector<128x512xf32> to vector<8x512xf32>
    %cst_97 = arith.constant dense<0.000000e+00> : vector<8x512xf32>
    %448 = tpu.matmul %446, %80, %cst_97 {dimension_numbers = #tpu.dot_dimension_numbers<[1], [0], [0], [1], [0, 0, 1, 1], [], []>} : vector<8x128xf32>, vector<128x512xf32>, vector<8x512xf32> -> vector<8x512xf32>
    %449 = arith.addf %447, %448 : vector<8x512xf32>
    %450 = vector.extract_strided_slice %449 {offsets = [0, 0], sizes = [8, 128], strides = [1, 1]} : vector<8x512xf32> to vector<8x128xf32>
    %451 = arith.negf %450 : vector<8x128xf32>
    %452 = math.exp %451 : vector<8x128xf32>
    %cst_98 = arith.constant 1.000000e+00 : f32
    %453 = vector.broadcast %cst_98 : f32 to vector<8x128xf32>
    %454 = arith.addf %453, %452 : vector<8x128xf32>
    %455 = arith.divf %453, %454 : vector<8x128xf32>
    %456 = vector.extract_strided_slice %449 {offsets = [0, 128], sizes = [8, 128], strides = [1, 1]} : vector<8x512xf32> to vector<8x128xf32>
    %457 = arith.negf %456 : vector<8x128xf32>
    %458 = math.exp %457 : vector<8x128xf32>
    %cst_99 = arith.constant 1.000000e+00 : f32
    %459 = vector.broadcast %cst_99 : f32 to vector<8x128xf32>
    %460 = arith.addf %459, %458 : vector<8x128xf32>
    %461 = arith.divf %459, %460 : vector<8x128xf32>
    %462 = vector.extract_strided_slice %449 {offsets = [0, 256], sizes = [8, 128], strides = [1, 1]} : vector<8x512xf32> to vector<8x128xf32>
    %463 = math.tanh %462 : vector<8x128xf32>
    %464 = vector.extract_strided_slice %449 {offsets = [0, 384], sizes = [8, 128], strides = [1, 1]} : vector<8x512xf32> to vector<8x128xf32>
    %465 = arith.negf %464 : vector<8x128xf32>
    %466 = math.exp %465 : vector<8x128xf32>
    %cst_100 = arith.constant 1.000000e+00 : f32
    %467 = vector.broadcast %cst_100 : f32 to vector<8x128xf32>
    %468 = arith.addf %467, %466 : vector<8x128xf32>
    %469 = arith.divf %467, %468 : vector<8x128xf32>
    %470 = arith.mulf %461, %444 : vector<8x128xf32>
    %471 = arith.mulf %455, %463 : vector<8x128xf32>
    %472 = arith.addf %470, %471 : vector<8x128xf32>
    %473 = math.tanh %472 : vector<8x128xf32>
    %474 = arith.mulf %469, %473 : vector<8x128xf32>
    %475 = vector.extract_strided_slice %79 {offsets = [112, 0], sizes = [8, 512], strides = [1, 1]} : vector<128x512xf32> to vector<8x512xf32>
    %cst_101 = arith.constant dense<0.000000e+00> : vector<8x512xf32>
    %476 = tpu.matmul %474, %80, %cst_101 {dimension_numbers = #tpu.dot_dimension_numbers<[1], [0], [0], [1], [0, 0, 1, 1], [], []>} : vector<8x128xf32>, vector<128x512xf32>, vector<8x512xf32> -> vector<8x512xf32>
    %477 = arith.addf %475, %476 : vector<8x512xf32>
    %478 = vector.extract_strided_slice %477 {offsets = [0, 0], sizes = [8, 128], strides = [1, 1]} : vector<8x512xf32> to vector<8x128xf32>
    %479 = arith.negf %478 : vector<8x128xf32>
    %480 = math.exp %479 : vector<8x128xf32>
    %cst_102 = arith.constant 1.000000e+00 : f32
    %481 = vector.broadcast %cst_102 : f32 to vector<8x128xf32>
    %482 = arith.addf %481, %480 : vector<8x128xf32>
    %483 = arith.divf %481, %482 : vector<8x128xf32>
    %484 = vector.extract_strided_slice %477 {offsets = [0, 128], sizes = [8, 128], strides = [1, 1]} : vector<8x512xf32> to vector<8x128xf32>
    %485 = arith.negf %484 : vector<8x128xf32>
    %486 = math.exp %485 : vector<8x128xf32>
    %cst_103 = arith.constant 1.000000e+00 : f32
    %487 = vector.broadcast %cst_103 : f32 to vector<8x128xf32>
    %488 = arith.addf %487, %486 : vector<8x128xf32>
    %489 = arith.divf %487, %488 : vector<8x128xf32>
    %490 = vector.extract_strided_slice %477 {offsets = [0, 256], sizes = [8, 128], strides = [1, 1]} : vector<8x512xf32> to vector<8x128xf32>
    %491 = math.tanh %490 : vector<8x128xf32>
    %492 = vector.extract_strided_slice %477 {offsets = [0, 384], sizes = [8, 128], strides = [1, 1]} : vector<8x512xf32> to vector<8x128xf32>
    %493 = arith.negf %492 : vector<8x128xf32>
    %494 = math.exp %493 : vector<8x128xf32>
    %cst_104 = arith.constant 1.000000e+00 : f32
    %495 = vector.broadcast %cst_104 : f32 to vector<8x128xf32>
    %496 = arith.addf %495, %494 : vector<8x128xf32>
    %497 = arith.divf %495, %496 : vector<8x128xf32>
    %498 = arith.mulf %489, %472 : vector<8x128xf32>
    %499 = arith.mulf %483, %491 : vector<8x128xf32>
    %500 = arith.addf %498, %499 : vector<8x128xf32>
    %501 = math.tanh %500 : vector<8x128xf32>
    %502 = arith.mulf %497, %501 : vector<8x128xf32>
    %503 = vector.extract_strided_slice %79 {offsets = [120, 0], sizes = [8, 512], strides = [1, 1]} : vector<128x512xf32> to vector<8x512xf32>
    %cst_105 = arith.constant dense<0.000000e+00> : vector<8x512xf32>
    %504 = tpu.matmul %502, %80, %cst_105 {dimension_numbers = #tpu.dot_dimension_numbers<[1], [0], [0], [1], [0, 0, 1, 1], [], []>} : vector<8x128xf32>, vector<128x512xf32>, vector<8x512xf32> -> vector<8x512xf32>
    %505 = arith.addf %503, %504 : vector<8x512xf32>
    %506 = vector.extract_strided_slice %505 {offsets = [0, 0], sizes = [8, 128], strides = [1, 1]} : vector<8x512xf32> to vector<8x128xf32>
    %507 = arith.negf %506 : vector<8x128xf32>
    %508 = math.exp %507 : vector<8x128xf32>
    %cst_106 = arith.constant 1.000000e+00 : f32
    %509 = vector.broadcast %cst_106 : f32 to vector<8x128xf32>
    %510 = arith.addf %509, %508 : vector<8x128xf32>
    %511 = arith.divf %509, %510 : vector<8x128xf32>
    %512 = vector.extract_strided_slice %505 {offsets = [0, 128], sizes = [8, 128], strides = [1, 1]} : vector<8x512xf32> to vector<8x128xf32>
    %513 = arith.negf %512 : vector<8x128xf32>
    %514 = math.exp %513 : vector<8x128xf32>
    %cst_107 = arith.constant 1.000000e+00 : f32
    %515 = vector.broadcast %cst_107 : f32 to vector<8x128xf32>
    %516 = arith.addf %515, %514 : vector<8x128xf32>
    %517 = arith.divf %515, %516 : vector<8x128xf32>
    %518 = vector.extract_strided_slice %505 {offsets = [0, 256], sizes = [8, 128], strides = [1, 1]} : vector<8x512xf32> to vector<8x128xf32>
    %519 = math.tanh %518 : vector<8x128xf32>
    %520 = vector.extract_strided_slice %505 {offsets = [0, 384], sizes = [8, 128], strides = [1, 1]} : vector<8x512xf32> to vector<8x128xf32>
    %521 = arith.negf %520 : vector<8x128xf32>
    %522 = math.exp %521 : vector<8x128xf32>
    %cst_108 = arith.constant 1.000000e+00 : f32
    %523 = vector.broadcast %cst_108 : f32 to vector<8x128xf32>
    %524 = arith.addf %523, %522 : vector<8x128xf32>
    %525 = arith.divf %523, %524 : vector<8x128xf32>
    %526 = arith.mulf %517, %500 : vector<8x128xf32>
    %527 = arith.mulf %511, %519 : vector<8x128xf32>
    %528 = arith.addf %526, %527 : vector<8x128xf32>
    %529 = math.tanh %528 : vector<8x128xf32>
    %530 = arith.mulf %525, %529 : vector<8x128xf32>
    %c0_109 = arith.constant 0 : index
    %c0_110 = arith.constant 0 : index
    %531 = vector.load %arg13[%c0_109, %c0_110] : memref<128x8xf32, #tpu.memory_space<vmem>>, vector<128x8xf32>
    %cst_111 = arith.constant dense<0.000000e+00> : vector<8x8xf32>
    %532 = tpu.matmul %530, %531, %cst_111 {dimension_numbers = #tpu.dot_dimension_numbers<[1], [0], [0], [1], [0, 0, 1, 1], [], []>} : vector<8x128xf32>, vector<128x8xf32>, vector<8x8xf32> -> vector<8x8xf32>
    %c0_112 = arith.constant 0 : index
    %c0_113 = arith.constant 0 : index
    %533 = vector.load %arg14[%c0_112, %c0_113] : memref<1x8xf32, #tpu.memory_space<vmem>>, vector<1x8xf32>
    %534 = vector.broadcast %533 : vector<1x8xf32> to vector<8x8xf32>
    %535 = arith.addf %532, %534 : vector<8x8xf32>
    %cst_114 = arith.constant 0.000000e+00 : f32
    %536 = vector.broadcast %cst_114 : f32 to vector<8x8xf32>
    %537 = arith.maximumf %535, %536 : vector<8x8xf32>
    %c0_115 = arith.constant 0 : index
    %c0_116 = arith.constant 0 : index
    %538 = vector.load %arg15[%c0_115, %c0_116] : memref<1x8xf32, #tpu.memory_space<vmem>>, vector<1x8xf32>
    %539 = vector.broadcast %538 : vector<1x8xf32> to vector<8x8xf32>
    %540 = arith.mulf %537, %539 : vector<8x8xf32>
    %c0_117 = arith.constant 0 : index
    %c0_118 = arith.constant 0 : index
    %541 = vector.load %arg16[%c0_117, %c0_118] : memref<1x8xf32, #tpu.memory_space<vmem>>, vector<1x8xf32>
    %542 = vector.broadcast %541 : vector<1x8xf32> to vector<8x8xf32>
    %543 = arith.addf %540, %542 : vector<8x8xf32>
    %cst_119 = arith.constant dense<0xFF800000> : vector<8xf32>
    %544 = vector.multi_reduction <maximumf>, %543, %cst_119 [1] : vector<8x8xf32> to vector<8xf32>
    %545 = vector.shape_cast %544 : vector<8xf32> to vector<8x1xf32>
    %546 = vector.broadcast %545 : vector<8x1xf32> to vector<8x8xf32>
    %547 = arith.subf %543, %546 : vector<8x8xf32>
    %548 = math.exp %547 : vector<8x8xf32>
    %cst_120 = arith.constant dense<0.000000e+00> : vector<8xf32>
    %549 = vector.multi_reduction <add>, %548, %cst_120 [1] : vector<8x8xf32> to vector<8xf32>
    %550 = vector.shape_cast %549 : vector<8xf32> to vector<8x1xf32>
    %551 = math.log %550 : vector<8x1xf32>
    %552 = vector.broadcast %551 : vector<8x1xf32> to vector<8x8xf32>
    %553 = arith.subf %547, %552 : vector<8x8xf32>
    %c0_121 = arith.constant 0 : index
    %c0_122 = arith.constant 0 : index
    %554 = vector.load %arg17[%c0_121, %c0_122] : memref<8x8xf32, #tpu.memory_space<vmem>>, vector<8x8xf32>
    tpu.vector_store %arg17[%c0_121, %c0_122], %553 {strides = array<i32>} : memref<8x8xf32, #tpu.memory_space<vmem>>, vector<8x8xf32>,
    return
  }
  func.func @transform_0(%arg0: i32) -> (i32, i32) {
    %c0_i32 = arith.constant 0 : i32
    %c0_i32_0 = arith.constant 0 : i32
    %c0_i32_1 = arith.constant 0 : i32
    return %c0_i32, %c0_i32_0 : i32, i32
  }
  func.func @transform_1(%arg0: i32) -> (i32, i32) {
    %c0_i32 = arith.constant 0 : i32
    %c0_i32_0 = arith.constant 0 : i32
    %c0_i32_1 = arith.constant 0 : i32
    return %c0_i32, %c0_i32_0 : i32, i32
  }
  func.func @transform_2(%arg0: i32) -> (i32, i32) {
    %c0_i32 = arith.constant 0 : i32
    %c0_i32_0 = arith.constant 0 : i32
    %c0_i32_1 = arith.constant 0 : i32
    return %c0_i32, %c0_i32_0 : i32, i32
  }
  func.func @transform_3(%arg0: i32) -> (i32, i32) {
    %c0_i32 = arith.constant 0 : i32
    %c0_i32_0 = arith.constant 0 : i32
    %c0_i32_1 = arith.constant 0 : i32
    return %c0_i32, %c0_i32_0 : i32, i32
  }
  func.func @transform_4(%arg0: i32) -> (i32, i32) {
    %c0_i32 = arith.constant 0 : i32
    %c0_i32_0 = arith.constant 0 : i32
    %c0_i32_1 = arith.constant 0 : i32
    return %c0_i32, %c0_i32_0 : i32, i32
  }
  func.func @transform_5(%arg0: i32) -> (i32, i32) {
    %c0_i32 = arith.constant 0 : i32
    %c0_i32_0 = arith.constant 0 : i32
    %c0_i32_1 = arith.constant 0 : i32
    return %c0_i32, %c0_i32_0 : i32, i32
  }
  func.func @transform_6(%arg0: i32) -> (i32, i32) {
    %c0_i32 = arith.constant 0 : i32
    %c0_i32_0 = arith.constant 0 : i32
    %c0_i32_1 = arith.constant 0 : i32
    return %c0_i32, %c0_i32_0 : i32, i32
  }
  func.func @transform_7(%arg0: i32) -> (i32, i32) {
    %c0_i32 = arith.constant 0 : i32
    %c0_i32_0 = arith.constant 0 : i32
    %c0_i32_1 = arith.constant 0 : i32
    return %c0_i32, %c0_i32_0 : i32, i32
  }
  func.func @transform_8(%arg0: i32) -> (i32, i32) {
    %c0_i32 = arith.constant 0 : i32
    %c0_i32_0 = arith.constant 0 : i32
    %c0_i32_1 = arith.constant 0 : i32
    return %c0_i32, %c0_i32_0 : i32, i32
  }
  func.func @transform_9(%arg0: i32) -> (i32, i32) {
    %c0_i32 = arith.constant 0 : i32
    %c0_i32_0 = arith.constant 0 : i32
    %c0_i32_1 = arith.constant 0 : i32
    return %c0_i32, %c0_i32_0 : i32, i32
  }
  func.func @transform_10(%arg0: i32) -> (i32, i32) {
    %c0_i32 = arith.constant 0 : i32
    %c0_i32_0 = arith.constant 0 : i32
    %c0_i32_1 = arith.constant 0 : i32
    return %c0_i32, %c0_i32_0 : i32, i32
  }
  func.func @transform_11(%arg0: i32) -> (i32, i32) {
    %c0_i32 = arith.constant 0 : i32
    %c0_i32_0 = arith.constant 0 : i32
    %c0_i32_1 = arith.constant 0 : i32
    return %c0_i32, %c0_i32_0 : i32, i32
  }
  func.func @transform_12(%arg0: i32) -> (i32, i32) {
    %c0_i32 = arith.constant 0 : i32
    %c0_i32_0 = arith.constant 0 : i32
    %c0_i32_1 = arith.constant 0 : i32
    return %c0_i32, %c0_i32_0 : i32, i32
  }
  func.func @transform_13(%arg0: i32) -> (i32, i32) {
    %c0_i32 = arith.constant 0 : i32
    %c0_i32_0 = arith.constant 0 : i32
    %c0_i32_1 = arith.constant 0 : i32
    return %c0_i32, %c0_i32_0 : i32, i32
  }
  func.func @transform_14(%arg0: i32) -> (i32, i32) {
    %c0_i32 = arith.constant 0 : i32
    %c0_i32_0 = arith.constant 0 : i32
    %c0_i32_1 = arith.constant 0 : i32
    return %c0_i32, %c0_i32_0 : i32, i32
  }
  func.func @transform_15(%arg0: i32) -> (i32, i32) {
    %c0_i32 = arith.constant 0 : i32
    %c0_i32_0 = arith.constant 0 : i32
    %c0_i32_1 = arith.constant 0 : i32
    return %c0_i32, %c0_i32_0 : i32, i32
  }
  func.func @transform_16(%arg0: i32) -> (i32, i32) {
    %c0_i32 = arith.constant 0 : i32
    %c0_i32_0 = arith.constant 0 : i32
    %c0_i32_1 = arith.constant 0 : i32
    return %c0_i32, %c0_i32_0 : i32, i32
  }
}

</mosaic_0001>

<bundles_post_ra>
// kernel: tpu_custom_call.1
= control target key start
LH: loop header
LB: loop body
LE: loop exit
PB: predicated region body
PF: predicated region fallthrough
CT: control target
= control target key end

     0   :  { %s8907_s0 = inlined_call_operand.vmem [shape: f32[128,4], index: 0, kind: input, shape index: {}]   ;;  %s8908_s1 = inlined_call_operand.vmem [shape: bf16[12,16], index: 1, kind: input, shape index: {}]   ;;  %s8909_s2 = inlined_call_operand.vmem [shape: f32[1,16], index: 2, kind: input, shape index: {}]   ;;  %s8910_s3 = inlined_call_operand.vmem [shape: bf16[48,32], index: 3, kind: input, shape index: {}]   ;;  %s8911_s4 = inlined_call_operand.vmem [shape: f32[1,32], index: 4, kind: input, shape index: {}]   ;;  %s8912_s5 = inlined_call_operand.vmem [shape: bf16[96,64], index: 5, kind: input, shape index: {}]   ;;  %s8913_s6 = inlined_call_operand.vmem [shape: f32[1,64], index: 6, kind: input, shape index: {}]   ;;  %s8914_s7 = inlined_call_operand.vmem [shape: bf16[192,128], index: 7, kind: input, shape index: {}]   ;;  %s8915_s8 = inlined_call_operand.vmem [shape: f32[1,128], index: 8, kind: input, shape index: {}]   ;;  %s8916_s9 = inlined_call_operand.vmem [shape: bf16[128,512], index: 9, kind: input, shape index: {}]   ;;  %s8917_s10 = inlined_call_operand.hbm [shape: f32[128,512], index: 10, kind: input, shape index: {}]   ;;  %s8918_s11 = inlined_call_operand.vmem [shape: f32[1,512], index: 11, kind: input, shape index: {}]   ;;  %s8919_s12 = inlined_call_operand.vmem [shape: f32[128,8], index: 12, kind: input, shape index: {}]   ;;  %s8920_s13 = inlined_call_operand.vmem [shape: f32[1,8], index: 13, kind: input, shape index: {}]   ;;  %s8921_s14 = inlined_call_operand.vmem [shape: f32[1,8], index: 14, kind: input, shape index: {}]   ;;  %s8922_s15 = inlined_call_operand.vmem [shape: f32[1,8], index: 15, kind: input, shape index: {}]   ;;  %s8923_s16 = inlined_call_operand.hbm [shape: f32[8,8], index: 16, kind: output, shape index: {}]  }
   0x1   :  { %8927 = sst [smem:[#allocation57_spill]] %s8907_s0 }
   0x2   :  { %21 = vsyncpa [#allocation3], 0 }
   0x3   :  { %22 = vsyncpa [#allocation4], 0  ;;  %s7014_s21 = smov [#allocation2]   ;;  %s6966_s25 = scalar_lea.hbm %s8917_s10, 8192 }
   0x4   :  { %s48_s22 = sshll.u32 %s7014_s21, 4  ;;  %p6967_p0 = scmp.ne.s32.totalorder %s8917_s10, %s6966_s25  ;;  %s49_s22 = int_to_ptr.vmem [resolvable:$true] %s48_s22 }
   0x5   :  { %p6970_p1 = scmp.lt.u32.totalorder %s6966_s25, %s8917_s10 }
   0x7   :  { %p6972_p2 = pnand %p6970_p1, %p6967_p0 }
   0x9   :  { %6975 = shalt.err (!%p6972_p2)
}
   0xa   :  { %s6976_s30 = scalar_lea.vmem %s49_s22, 8192  ;;  %p6981_p4 = scmp.lt.s32.totalorder %s49_s22, %s49_s22 }
   0xb   :  { %p6977_p3 = scmp.ne.s32.totalorder %s49_s22, %s6976_s30  ;;  %p6982_p5 = scmp.lt.s32.totalorder %s6976_s30, %s6976_s30 }
   0xd   :  { %p6983_p6 = por %p6982_p5, %p6981_p4 }
   0xf   :  { %p6984_p7 = pnand %p6983_p6, %p6977_p3 }
  0x11   :  { %6987 = shalt.err (!%p6984_p7)
}
  0x12   :  { %s7015_s0 = smov 512   ;;  %s7016_s17 = smov 32  }
  0x13   :  { %54 = dma.hbm_to_vmem [thread:$0]  %s8917_s10, 8192, %s49_s22, [#allocation3], %s7015_s0, %s7015_s0, %s7016_s17  }
  0x14   :  { %7010 = dma.done.wait [#allocation3], 8192  }
  0x15   :  { %7011 = vsyncadd [#allocation3], 4294959104  ;;  %s8928_s23 = sld [smem:[#allocation57_spill]]  ;;  %s7017_s30 = smov 8   ;;  %vm439_vm0 = vcmask 1045504   ;;  %v8925_v33 = vmov 0.0  }
  0x16   :  { %s7018_s0 = smov 4   ;;  %v6636_v13 = vld [vmem:[%s8908_s1] sm:$0x3f]   ;;  %vm358_vm1 = vcmask 31744   ;;  %vm375_vm2 = vcmask 64512   ;;  %vm414_vm3 = vcmask 97280  }
  0x17   :  { %6342 = vmatprep.subr.msk.bf16.mxu0 %vm439_vm0, %v6636_v13  ;;  %v441_v16 = vsel %vm439_vm0, %v6636_v13, 0  ;;  %vm700_vm4 = vcmask 130048   ;;  %vm717_vm5 = vcmask 261120   ;;  %vm773_vm6 = vcmask 392192  }
  0x18   :  { %5192 = vmatpush3.bf16.msra.mxu0 %v441_v16  ;;  %vm1071_vm7 = vcmask 523264   ;;  %vm1151_vm8 = vcmask 785408   ;;  %vm7023_vm10 = vmmov 1   ;;  %vm7025_vm12 = vmmov 0  }
  0x19   :  { %vm5046_vm9 = vmneg %vm1071_vm7 }
  0x1a   :  { %vm5047_vm11 = vmpackc.low %vm7023_vm10, %vm5046_vm9 }
  0x1b   :  { %v7128_v0 = vld [vmem:[%s8928_s23 + $0x8] sm:$0xff]  ;;  %v7133_v1 = vld [vmem:[%s8928_s23 + $0x10] sm:$0xff]  ;;  %v7138_v2 = vld [vmem:[%s8928_s23] sm:$0xff] }
  0x1c   :  { %v6366_v3 = vpack.i.bf16 %v7133_v1, %v7128_v0  ;;  %v6356_v4 = vpack.i.bf16 %v7128_v0, %v7138_v2  ;;  %v7147_v5 = vld [vmem:[%s8928_s23 + $0x18] sm:$0xff]  ;;  %v7152_v6 = vld [vmem:[%s8928_s23 + $0x20] sm:$0xff]  ;;  %v7163_v9 = vld [vmem:[%s8928_s23 + $0x30] sm:$0xff] }
  0x1d   :  { %v6371_v7 = vpack.i.bf16 %v7152_v6, %v7147_v5  ;;  %v6361_v8 = vpack.i.bf16 %v7147_v5, %v7133_v1  ;;  %v7168_v10 = vld [vmem:[%s8928_s23 + $0x38] sm:$0xff]  ;;  %v7173_v11 = vld [vmem:[%s8928_s23 + $0x28] sm:$0xff]  ;;  %v7178_v12 = vld [vmem:[%s8928_s23 + $0x40] sm:$0xff] }
  0x1e   :  { %6367 = vrot.lane.b32.xlu1 %v6366_v3, %s7017_s30  ;;  %6357 = vrot.lane.b32.xlu0 %v6356_v4, %s7018_s0  ;;  %v6381_v14 = vpack.i.bf16 %v7168_v10, %v7163_v9  ;;  %v6376_v15 = vpack.i.bf16 %v7173_v11, %v7152_v6  ;;  %v7192_v17 = vld [vmem:[%s8928_s23 + $0x50] sm:$0xff]  ;;  %v7197_v18 = vld [vmem:[%s8928_s23 + $0x58] sm:$0xff]  ;;  %v6391_v20 = vpack.i.bf16 %v7178_v12, %v7168_v10 }
  0x1f   :  { %v7202_v19 = vld [vmem:[%s8928_s23 + $0x48] sm:$0xff]  ;;  %v6386_v21 = vpack.i.bf16 %v7163_v9, %v7173_v11  ;;  %v7213_v22 = vld [vmem:[%s8928_s23 + $0x60] sm:$0xff]  ;;  %v6401_v23 = vpack.i.bf16 %v7197_v18, %v7192_v17  ;;  %v7229_v26 = vld [vmem:[%s8928_s23 + $0x70] sm:$0xff] }
  0x20   :  { %v6396_v24 = vpack.i.bf16 %v7202_v19, %v7178_v12  ;;  %v7224_v25 = vld [vmem:[%s8928_s23 + $0x68] sm:$0xff]  ;;  %v84_v27 = vld [vmem:[%s8928_s23 + $0x78] sm:$0xff]  ;;  %v6411_v28 = vpack.i.bf16 %v7213_v22, %v7197_v18  ;;  %v6406_v29 = vpack.i.bf16 %v7192_v17, %v7202_v19 }
  0x21   :  { %v6416_v30 = vpack.i.bf16 %v7224_v25, %v7213_v22  ;;  %v6421_v31 = vpack.i.bf16 %v84_v27, %v7229_v26  ;;  %v6426_v32 = vpack.i.bf16 %v7229_v26, %v7224_v25  ;;  %v6431_v34 = vpack.i.bf16 %v8925_v33, %v84_v27 }
  0x22   :  { %6372 = vrot.lane.b32.xlu1 %v6371_v7, %s7017_s30  ;;  %6362 = vrot.lane.b32.xlu0 %v6361_v8, %s7018_s0 }
  0x26   :  { %6382 = vrot.lane.b32.xlu1 %v6381_v14, %s7018_s0  ;;  %6377 = vrot.lane.b32.xlu0 %v6376_v15, %s7018_s0 }
  0x2a   :  { %6392 = vrot.lane.b32.xlu1 %v6391_v20, %s7017_s30  ;;  %6387 = vrot.lane.b32.xlu0 %v6386_v21, %s7017_s30 }
  0x2e   :  { %6402 = vrot.lane.b32.xlu1 %v6401_v23, %s7018_s0  ;;  %6397 = vrot.lane.b32.xlu0 %v6396_v24, %s7018_s0 }
  0x32   :  { %6412 = vrot.lane.b32.xlu1 %v6411_v28, %s7017_s30  ;;  %6407 = vrot.lane.b32.xlu0 %v6406_v29, %s7017_s30 }
  0x36   :  { %6417 = vrot.lane.b32.xlu0 %v6416_v30, %s7018_s0  ;;  %6422 = vrot.lane.b32.xlu1 %v6421_v31, %s7018_s0 }
  0x3a   :  { %6427 = vrot.lane.b32.xlu0 %v6426_v32, %s7017_s30  ;;  %6432 = vrot.lane.b32.xlu1 %v6431_v34, %s7017_s30 }
  0x90   :  { %v6368_v35 = vpop.permute.xlu1 %6367  ;;  %v6358_v36 = vpop.permute.xlu0 %6357 }
  0x91   :  { %v6370_v37 = vunpack.i.h.bf16 %v6368_v35  ;;  %v6369_v38 = vunpack.i.l.bf16 %v6368_v35  ;;  %v6360_v39 = vunpack.i.h.bf16 %v6358_v36  ;;  %v6359_v40 = vunpack.i.l.bf16 %v6358_v36 }
  0x93   :  { %v359_v41 = vsel %vm358_vm1, 0.0, %v6359_v40  ;;  %v360_v42 = vsel %vm358_vm1, %v7138_v2, %v6360_v39 }
  0x94   :  { %v6373_v43 = vpop.permute.xlu1 %6372  ;;  %v6363_v44 = vpop.permute.xlu0 %6362  ;;  %v376_v45 = vsel %vm375_vm2, %v359_v41, %v6369_v38  ;;  %v377_v46 = vsel %vm375_vm2, %v360_v42, %v6370_v37 }
  0x95   :  { %v6375_v47 = vunpack.i.h.bf16 %v6373_v43  ;;  %v6374_v48 = vunpack.i.l.bf16 %v6373_v43  ;;  %v6365_v49 = vunpack.i.h.bf16 %v6363_v44  ;;  %v6364_v50 = vunpack.i.l.bf16 %v6363_v44 }
  0x96   :  { %v392_v51 = vpack.c.bf16 %v377_v46, %v376_v45 }
  0x97   :  { %v362_v52 = vsel %vm358_vm1, %v7133_v1, %v6365_v49  ;;  %v361_v53 = vsel %vm358_vm1, %v7128_v0, %v6364_v50 }
  0x98   :  { %5193 = vmatprep.mubr.msk.bf16.mxu0 %vm414_vm3, %v392_v51  ;;  %v6383_v54 = vpop.permute.xlu1 %6382  ;;  %v6378_v55 = vpop.permute.xlu0 %6377  ;;  %v378_v56 = vsel %vm375_vm2, %v361_v53, %v6374_v48  ;;  %v379_v57 = vsel %vm375_vm2, %v362_v52, %v6375_v47 }
  0x99   :  { %v6385_v58 = vunpack.i.h.bf16 %v6383_v54  ;;  %v6384_v59 = vunpack.i.l.bf16 %v6383_v54  ;;  %v6380_v60 = vunpack.i.h.bf16 %v6378_v55  ;;  %v6379_v61 = vunpack.i.l.bf16 %v6378_v55 }
  0x9a   :  { %v393_v62 = vpack.c.bf16 %v379_v57, %v378_v56 }
  0x9b   :  { %v366_v7 = vsel %vm358_vm1, %v7163_v9, %v6385_v58  ;;  %v365_v8 = vsel %vm358_vm1, %v7173_v11, %v6384_v59  ;;  %v364_v13 = vsel %vm358_vm1, %v7152_v6, %v6380_v60  ;;  %v363_v14 = vsel %vm358_vm1, %v7147_v5, %v6379_v61  ;;  %v6638_v61 = vld [vmem:[%s8910_s3 + $0x8] sm:$0xff]  }
  0x9c   :  { %5194 = vmatmul.mubr.msk.bf16.vlgmr.msra.gmra.mrb[0].mxu0 %vm414_vm3, %v393_v62  ;;  %v6393_v63 = vpop.permute.xlu1 %6392  ;;  %v6388_v1 = vpop.permute.xlu0 %6387 }
  0x9d   :  { %v6395_v2 = vunpack.i.h.bf16 %v6393_v63  ;;  %v6394_v3 = vunpack.i.l.bf16 %v6393_v63  ;;  %v6390_v0 = vunpack.i.h.bf16 %v6388_v1  ;;  %v6389_v4 = vunpack.i.l.bf16 %v6388_v1  ;;  %v4995_v63 = vld [vmem:[%s8909_s2] ss:$0 sm:$0xff]  ;;  %v6639_v1 = vld [vmem:[%s8910_s3 + $0x10] sm:$0xff]   ;;  %s7020_s2 = smov 16  }
  0x9f   :  { %v382_v15 = vsel %vm375_vm2, %v365_v8, %v6394_v3  ;;  %v383_v16 = vsel %vm375_vm2, %v366_v7, %v6395_v2  ;;  %v380_v20 = vsel %vm375_vm2, %v363_v14, %v6389_v4  ;;  %v381_v21 = vsel %vm375_vm2, %v364_v13, %v6390_v0 }
  0xa0   :  { %v395_v23 = vpack.c.bf16 %v383_v16, %v382_v15  ;;  %v394_v24 = vpack.c.bf16 %v381_v21, %v380_v20  ;;  %v6403_v9 = vpop.permute.xlu1 %6402  ;;  %v6398_v27 = vpop.permute.xlu0 %6397 }
  0xa1   :  { %v6405_v28 = vunpack.i.h.bf16 %v6403_v9  ;;  %v6404_v11 = vunpack.i.l.bf16 %v6403_v9  ;;  %v6400_v29 = vunpack.i.h.bf16 %v6398_v27  ;;  %v6399_v30 = vunpack.i.l.bf16 %v6398_v27 }
  0xa2   :  { %5197 = vmatprep.mubr.msk.bf16.mxu0 %vm414_vm3, %v394_v24 }
  0xa3   :  { %v370_v36 = vsel %vm358_vm1, %v7192_v17, %v6405_v28  ;;  %v369_v37 = vsel %vm358_vm1, %v7202_v19, %v6404_v11  ;;  %v368_v38 = vsel %vm358_vm1, %v7178_v12, %v6400_v29  ;;  %v367_v39 = vsel %vm358_vm1, %v7168_v10, %v6399_v30 }
  0xa4   :  { %5198 = vmatmul.mubr.msk.bf16.gmra.mrb[4].mxu0 %vm414_vm3, %v395_v23  ;;  %v6413_v5 = vpop.permute.xlu1 %6412  ;;  %v6408_v6 = vpop.permute.xlu0 %6407 }
  0xa5   :  { %v6415_v31 = vunpack.i.h.bf16 %v6413_v5  ;;  %v6414_v32 = vunpack.i.l.bf16 %v6413_v5  ;;  %v6410_v34 = vunpack.i.h.bf16 %v6408_v6  ;;  %v6409_v35 = vunpack.i.l.bf16 %v6408_v6 }
  0xa7   :  { %v386_v40 = vsel %vm375_vm2, %v369_v37, %v6414_v32  ;;  %v387_v41 = vsel %vm375_vm2, %v370_v36, %v6415_v31  ;;  %v384_v42 = vsel %vm375_vm2, %v367_v39, %v6409_v35  ;;  %v385_v43 = vsel %vm375_vm2, %v368_v38, %v6410_v34 }
  0xa8   :  { %v397_v44 = vpack.c.bf16 %v387_v41, %v386_v40  ;;  %v396_v45 = vpack.c.bf16 %v385_v43, %v384_v42  ;;  %v6418_v17 = vpop.permute.xlu0 %6417  ;;  %v6423_v46 = vpop.permute.xlu1 %6422 }
  0xa9   :  { %v6420_v47 = vunpack.i.h.bf16 %v6418_v17  ;;  %v6419_v19 = vunpack.i.l.bf16 %v6418_v17  ;;  %v6425_v48 = vunpack.i.h.bf16 %v6423_v46  ;;  %v6424_v49 = vunpack.i.l.bf16 %v6423_v46 }
  0xaa   :  { %5201 = vmatprep.mubr.msk.bf16.mxu0 %vm414_vm3, %v396_v45 }
  0xab   :  { %v372_v10 = vsel %vm358_vm1, %v7213_v22, %v6420_v47  ;;  %v371_v12 = vsel %vm358_vm1, %v7197_v18, %v6419_v19  ;;  %v374_v50 = vsel %vm358_vm1, %v7229_v26, %v6425_v48  ;;  %v373_v51 = vsel %vm358_vm1, %v7224_v25, %v6424_v49  ;;  %v6637_v25 = vld [vmem:[%s8910_s3] sm:$0xff]  }
  0xac   :  { %5202 = vmatmul.mubr.msk.bf16.gmra.mrb[8].mxu0 %vm414_vm3, %v397_v44  ;;  %v6428_v52 = vpop.permute.xlu0 %6427  ;;  %v6433_v53 = vpop.permute.xlu1 %6432  ;;  %5209 = vmatprep.subr.bf16.mxu1 %v6637_v25 }
  0xad   :  { %v6430_v54 = vunpack.i.h.bf16 %v6428_v52  ;;  %v6429_v55 = vunpack.i.l.bf16 %v6428_v52  ;;  %v6435_v56 = vunpack.i.h.bf16 %v6433_v53  ;;  %v6434_v57 = vunpack.i.l.bf16 %v6433_v53  ;;  %5210 = vmatpush3.bf16.msra.mxu1 %v6637_v25 }
  0xae   :  { %5211 = vmatprep.subr.bf16.mxu1 %v6638_v61 }
  0xaf   :  { %v388_v58 = vsel %vm375_vm2, %v371_v12, %v6429_v55  ;;  %v389_v22 = vsel %vm375_vm2, %v372_v10, %v6430_v54  ;;  %v390_v18 = vsel %vm375_vm2, %v373_v51, %v6434_v57  ;;  %v391_v59 = vsel %vm375_vm2, %v374_v50, %v6435_v56 }
  0xb0   :  { %v398_v26 = vpack.c.bf16 %v389_v22, %v388_v58  ;;  %v399_v60 = vpack.c.bf16 %v391_v59, %v390_v18 }
  0xb1   :  { %5212 = vmatpush3.bf16.msra.mxu1 %v6638_v61 }
  0xb2   :  { %5205 = vmatprep.mubr.msk.bf16.mxu0 %vm414_vm3, %v398_v26  ;;  %5213 = vmatprep.subr.bf16.mxu1 %v6639_v1 }
  0xb4   :  { %5206 = vmatmul.mubr.msk.bf16.gmra.mrb[12].mxu0 %vm414_vm3, %v399_v60 }
  0xb5   :  { %5214 = vmatpush3.bf16.msra.mxu1 %v6639_v1 }
 0x16f   :  { %v5195_v62 = vpop.f32.mrb[0].mxu0 }
 0x170   :  { %v477_v2 = vpop.f32.mrb[1].mxu0  ;;  %v7319_v0 = vadd.f32 %v5195_v62, %v4995_v63 }
 0x171   :  { %v5196_v3 = vpop.f32.mrb[2].mxu0  ;;  %v7323_v8 = vadd.f32 %v4995_v63, %v477_v2 }
 0x172   :  { %v7321_v4 = vadd.f32 %v5196_v3, %v4995_v63  ;;  %v480_v7 = vpop.f32.mrb[3].mxu0 }
 0x173   :  { %v7325_v13 = vadd.f32 %v4995_v63, %v480_v7 }
 0x174   :  { %v6436_v14 = vpack.i.bf16 %v7321_v4, %v7319_v0 }
 0x175   :  { %v6441_v15 = vpack.i.bf16 %v7325_v13, %v7323_v8  ;;  %v6446_v24 = vpack.i.bf16 %v7319_v0, %v7325_v13 }
 0x176   :  { %6437 = vrot.lane.b32.xlu1 %v6436_v14, %s7020_s2 }
 0x177   :  { %v5199_v16 = vpop.f32.mrb[4].mxu0  ;;  %6442 = vrot.lane.b32.xlu0 %v6441_v15, %s7020_s2 }
 0x178   :  { %v493_v20 = vpop.f32.mrb[5].mxu0  ;;  %v7344_v29 = vadd.f32 %v5199_v16, %v4995_v63 }
 0x179   :  { %v7333_v21 = vadd.f32 %v4995_v63, %v493_v20  ;;  %v5200_v23 = vpop.f32.mrb[6].mxu0 }
 0x17a   :  { %v496_v9 = vpop.f32.mrb[7].mxu0  ;;  %v7337_v27 = vadd.f32 %v5200_v23, %v4995_v63 }
 0x17b   :  { %v7339_v28 = vadd.f32 %v4995_v63, %v496_v9  ;;  %6447 = vrot.lane.b32.xlu0 %v6446_v24, %s7016_s17  ;;  %v6451_v11 = vpack.i.bf16 %v7333_v21, %v7321_v4 }
 0x17c   :  { %v6456_v6 = vpack.i.bf16 %v7337_v27, %v7344_v29 }
 0x17d   :  { %6452 = vrot.lane.b32.xlu1 %v6451_v11, %s7016_s17  ;;  %v6461_v30 = vpack.i.bf16 %v7339_v28, %v7333_v21  ;;  %v6466_v35 = vpack.i.bf16 %v7344_v29, %v7339_v28 }
 0x17f   :  { %v5203_v5 = vpop.f32.mrb[8].mxu0  ;;  %6462 = vrot.lane.b32.xlu0 %v6461_v30, %s7020_s2 }
 0x180   :  { %v509_v31 = vpop.f32.mrb[9].mxu0  ;;  %v7364_v40 = vadd.f32 %v5203_v5, %v4995_v63 }
 0x181   :  { %v7352_v32 = vadd.f32 %v4995_v63, %v509_v31  ;;  %v5204_v34 = vpop.f32.mrb[10].mxu0  ;;  %6457 = vrot.lane.b32.xlu1 %v6456_v6, %s7020_s2 }
 0x182   :  { %v512_v36 = vpop.f32.mrb[11].mxu0  ;;  %v7357_v37 = vadd.f32 %v5204_v34, %v4995_v63 }
 0x183   :  { %v7359_v38 = vadd.f32 %v4995_v63, %v512_v36  ;;  %6467 = vrot.lane.b32.xlu0 %v6466_v35, %s7016_s17  ;;  %v6471_v39 = vpack.i.bf16 %v7352_v32, %v7337_v27 }
 0x184   :  { %v6476_v43 = vpack.i.bf16 %v7357_v37, %v7364_v40 }
 0x185   :  { %6472 = vrot.lane.b32.xlu1 %v6471_v39, %s7016_s17  ;;  %v6481_v41 = vpack.i.bf16 %v7359_v38, %v7352_v32  ;;  %v6486_v47 = vpack.i.bf16 %v7364_v40, %v7359_v38 }
 0x187   :  { %v5207_v42 = vpop.f32.mrb[12].mxu0  ;;  %6482 = vrot.lane.b32.xlu0 %v6481_v41, %s7020_s2 }
 0x188   :  { %v525_v44 = vpop.f32.mrb[13].mxu0  ;;  %v7372_v45 = vadd.f32 %v5207_v42, %v4995_v63 }
 0x189   :  { %v7374_v17 = vadd.f32 %v4995_v63, %v525_v44  ;;  %v5208_v46 = vpop.f32.mrb[14].mxu0  ;;  %6477 = vrot.lane.b32.xlu1 %v6476_v43, %s7020_s2 }
 0x18a   :  { %v537_v19 = vadd.f32 %v5208_v46, %v4995_v63  ;;  %v528_v48 = vpop.f32.mrb[15].mxu0 }
 0x18b   :  { %v7379_v49 = vadd.f32 %v4995_v63, %v528_v48  ;;  %6487 = vrot.lane.b32.xlu0 %v6486_v47, %s7016_s17  ;;  %v6491_v10 = vpack.i.bf16 %v7374_v17, %v7357_v37 }
 0x18c   :  { %v6496_v12 = vpack.i.bf16 %v537_v19, %v7372_v45  ;;  %v6511_v52 = vpack.i.bf16 %v8925_v33, %v537_v19 }
 0x18d   :  { %6492 = vrot.lane.b32.xlu1 %v6491_v10, %s7016_s17  ;;  %v6501_v50 = vpack.i.bf16 %v7379_v49, %v7374_v17  ;;  %v6506_v51 = vpack.i.bf16 %v7372_v45, %v7379_v49 }
 0x18f   :  { %6502 = vrot.lane.b32.xlu0 %v6501_v50, %s7020_s2 }
 0x191   :  { %6497 = vrot.lane.b32.xlu1 %v6496_v12, %s7020_s2 }
 0x193   :  { %6507 = vrot.lane.b32.xlu0 %v6506_v51, %s7016_s17 }
 0x195   :  { %6512 = vrot.lane.b32.xlu1 %v6511_v52, %s7016_s17 }
 0x1e8   :  { %v6438_v54 = vpop.permute.xlu1 %6437 }
 0x1e9   :  { %v6443_v53 = vpop.permute.xlu0 %6442  ;;  %v6440_v57 = vunpack.i.h.bf16 %v6438_v54  ;;  %v6439_v58 = vunpack.i.l.bf16 %v6438_v54 }
 0x1ea   :  { %v6445_v55 = vunpack.i.h.bf16 %v6443_v53  ;;  %v6444_v56 = vunpack.i.l.bf16 %v6443_v53 }
 0x1eb   :  { %v704_v2 = vsel %vm700_vm4, %v7319_v0, %v6440_v57  ;;  %v703_v3 = vsel %vm700_vm4, %v7325_v13, %v6439_v58 }
 0x1ec   :  { %v701_v26 = vsel %vm700_vm4, 0.0, %v6444_v56  ;;  %v702_v25 = vsel %vm700_vm4, %v7323_v8, %v6445_v55 }
 0x1ed   :  { %v6448_v22 = vpop.permute.xlu0 %6447 }
 0x1ee   :  { %v6450_v18 = vunpack.i.h.bf16 %v6448_v22  ;;  %v6449_v59 = vunpack.i.l.bf16 %v6448_v22 }
 0x1ef   :  { %v6453_v60 = vpop.permute.xlu1 %6452 }
 0x1f0   :  { %v6455_v61 = vunpack.i.h.bf16 %v6453_v60  ;;  %v6454_v62 = vunpack.i.l.bf16 %v6453_v60  ;;  %v718_v63 = vsel %vm717_vm5, %v701_v26, %v6449_v59  ;;  %v719_v1 = vsel %vm717_vm5, %v702_v25, %v6450_v18 }
 0x1f1   :  { %v6463_v7 = vpop.permute.xlu0 %6462  ;;  %v734_v14 = vpack.c.bf16 %v719_v1, %v718_v63 }
 0x1f2   :  { %v721_v15 = vsel %vm717_vm5, %v704_v2, %v6455_v61  ;;  %v720_v16 = vsel %vm717_vm5, %v703_v3, %v6454_v62  ;;  %v6465_v20 = vunpack.i.h.bf16 %v6463_v7  ;;  %v6464_v23 = vunpack.i.l.bf16 %v6463_v7 }
 0x1f3   :  { %v735_v8 = vpack.c.bf16 %v721_v15, %v720_v16  ;;  %v6458_v24 = vpop.permute.xlu1 %6457  ;;  %5215 = vmatprep.mubr.msk.bf16.mxu1 %vm773_vm6, %v734_v14 }
 0x1f4   :  { %v6460_v9 = vunpack.i.h.bf16 %v6458_v24  ;;  %v6459_v11 = vunpack.i.l.bf16 %v6458_v24  ;;  %v706_v13 = vsel %vm700_vm4, %v7333_v21, %v6465_v20  ;;  %v705_v6 = vsel %vm700_vm4, %v7321_v4, %v6464_v23 }
 0x1f5   :  { %v6468_v30 = vpop.permute.xlu0 %6467  ;;  %5216 = vmatmul.mubr.msk.bf16.vlgmr.msra.gmra.mrb[0].mxu1 %vm773_vm6, %v735_v8 }
 0x1f6   :  { %v6470_v0 = vunpack.i.h.bf16 %v6468_v30  ;;  %v6469_v5 = vunpack.i.l.bf16 %v6468_v30  ;;  %v708_v41 = vsel %vm700_vm4, %v7344_v29, %v6460_v9  ;;  %v707_v42 = vsel %vm700_vm4, %v7339_v28, %v6459_v11  ;;  %v6643_v30 = vld [vmem:[%s8912_s5 + $0x18] sm:$0xff]  }
 0x1f7   :  { %v6473_v31 = vpop.permute.xlu1 %6472 }
 0x1f8   :  { %v722_v34 = vsel %vm717_vm5, %v705_v6, %v6469_v5  ;;  %v723_v35 = vsel %vm717_vm5, %v706_v13, %v6470_v0  ;;  %v6475_v36 = vunpack.i.h.bf16 %v6473_v31  ;;  %v6474_v39 = vunpack.i.l.bf16 %v6473_v31  ;;  %v6644_v0 = vld [vmem:[%s8912_s5 + $0x20] sm:$0xff]   ;;  %v6645_v6 = vld [vmem:[%s8912_s5 + $0x28] sm:$0xff]  }
 0x1f9   :  { %v736_v43 = vpack.c.bf16 %v723_v35, %v722_v34  ;;  %v6483_v44 = vpop.permute.xlu0 %6482  ;;  %v5005_v13 = vld [vmem:[%s8911_s4] ss:$0 sm:$0xff]  ;;  %s7021_s4 = smov 64  }
 0x1fa   :  { %v724_v21 = vsel %vm717_vm5, %v707_v42, %v6474_v39  ;;  %v725_v46 = vsel %vm717_vm5, %v708_v41, %v6475_v36  ;;  %v6485_v47 = vunpack.i.h.bf16 %v6483_v44  ;;  %v6484_v19 = vunpack.i.l.bf16 %v6483_v44 }
 0x1fb   :  { %v737_v4 = vpack.c.bf16 %v725_v46, %v724_v21  ;;  %v6478_v48 = vpop.permute.xlu1 %6477  ;;  %5219 = vmatprep.mubr.msk.bf16.mxu1 %vm773_vm6, %v736_v43 }
 0x1fc   :  { %v6480_v10 = vunpack.i.h.bf16 %v6478_v48  ;;  %v6479_v12 = vunpack.i.l.bf16 %v6478_v48  ;;  %v710_v28 = vsel %vm700_vm4, %v7352_v32, %v6485_v47  ;;  %v709_v52 = vsel %vm700_vm4, %v7337_v27, %v6484_v19 }
 0x1fd   :  { %v6488_v50 = vpop.permute.xlu0 %6487  ;;  %5220 = vmatmul.mubr.msk.bf16.gmra.mrb[4].mxu1 %vm773_vm6, %v737_v4 }
 0x1fe   :  { %v6490_v29 = vunpack.i.h.bf16 %v6488_v50  ;;  %v6489_v51 = vunpack.i.l.bf16 %v6488_v50  ;;  %v712_v58 = vsel %vm700_vm4, %v7364_v40, %v6480_v10  ;;  %v711_v22 = vsel %vm700_vm4, %v7359_v38, %v6479_v12 }
 0x1ff   :  { %v6493_v53 = vpop.permute.xlu1 %6492 }
 0x200   :  { %v726_v54 = vsel %vm717_vm5, %v709_v52, %v6489_v51  ;;  %v727_v55 = vsel %vm717_vm5, %v710_v28, %v6490_v29  ;;  %v6495_v56 = vunpack.i.h.bf16 %v6493_v53  ;;  %v6494_v57 = vunpack.i.l.bf16 %v6493_v53 }
 0x201   :  { %v738_v18 = vpack.c.bf16 %v727_v55, %v726_v54  ;;  %v6503_v59 = vpop.permute.xlu0 %6502 }
 0x202   :  { %v728_v32 = vsel %vm717_vm5, %v711_v22, %v6494_v57  ;;  %v729_v26 = vsel %vm717_vm5, %v712_v58, %v6495_v56  ;;  %v6505_v60 = vunpack.i.h.bf16 %v6503_v59  ;;  %v6504_v25 = vunpack.i.l.bf16 %v6503_v59 }
 0x203   :  { %v739_v27 = vpack.c.bf16 %v729_v26, %v728_v32  ;;  %v6498_v61 = vpop.permute.xlu1 %6497  ;;  %5223 = vmatprep.mubr.msk.bf16.mxu1 %vm773_vm6, %v738_v18 }
 0x204   :  { %v6500_v62 = vunpack.i.h.bf16 %v6498_v61  ;;  %v6499_v63 = vunpack.i.l.bf16 %v6498_v61  ;;  %v714_v38 = vsel %vm700_vm4, %v7374_v17, %v6505_v60  ;;  %v713_v3 = vsel %vm700_vm4, %v7357_v37, %v6504_v25  ;;  %v6640_v37 = vld [vmem:[%s8912_s5] sm:$0xff]  }
 0x205   :  { %v6508_v1 = vpop.permute.xlu0 %6507  ;;  %5224 = vmatmul.mubr.msk.bf16.gmra.mrb[8].mxu1 %vm773_vm6, %v739_v27  ;;  %5231 = vmatprep.subr.bf16.mxu0 %v6640_v37 }
 0x206   :  { %v6510_v40 = vunpack.i.h.bf16 %v6508_v1  ;;  %v6509_v2 = vunpack.i.l.bf16 %v6508_v1  ;;  %v716_v20 = vsel %vm700_vm4, %v7372_v45, %v6500_v62  ;;  %v715_v23 = vsel %vm700_vm4, %v7379_v49, %v6499_v63  ;;  %v6641_v45 = vld [vmem:[%s8912_s5 + $0x8] sm:$0xff]   ;;  %5232 = vmatpush3.bf16.msra.mxu0 %v6640_v37  ;;  %v6642_v49 = vld [vmem:[%s8912_s5 + $0x10] sm:$0xff]  }
 0x207   :  { %v6513_v7 = vpop.permute.xlu1 %6512  ;;  %5233 = vmatprep.subr.bf16.mxu0 %v6641_v45 }
 0x208   :  { %v730_v14 = vsel %vm717_vm5, %v713_v3, %v6509_v2  ;;  %v731_v15 = vsel %vm717_vm5, %v714_v38, %v6510_v40  ;;  %v6515_v16 = vunpack.i.h.bf16 %v6513_v7  ;;  %v6514_v8 = vunpack.i.l.bf16 %v6513_v7 }
 0x209   :  { %v740_v24 = vpack.c.bf16 %v731_v15, %v730_v14 }
 0x20a   :  { %v732_v9 = vsel %vm717_vm5, %v715_v23, %v6514_v8  ;;  %v733_v17 = vsel %vm717_vm5, %v716_v20, %v6515_v16  ;;  %5234 = vmatpush3.bf16.msra.mxu0 %v6641_v45 }
 0x20b   :  { %v741_v11 = vpack.c.bf16 %v733_v17, %v732_v9  ;;  %5227 = vmatprep.mubr.msk.bf16.mxu1 %vm773_vm6, %v740_v24  ;;  %5235 = vmatprep.subr.bf16.mxu0 %v6642_v49 }
 0x20d   :  { %5228 = vmatmul.mubr.msk.bf16.gmra.mrb[12].mxu1 %vm773_vm6, %v741_v11 }
 0x20e   :  { %5236 = vmatpush3.bf16.msra.mxu0 %v6642_v49 }
 0x20f   :  { %5237 = vmatprep.subr.bf16.mxu0 %v6643_v30 }
 0x212   :  { %5238 = vmatpush3.bf16.msra.mxu0 %v6643_v30 }
 0x213   :  { %5239 = vmatprep.subr.bf16.mxu0 %v6644_v0 }
 0x216   :  { %5240 = vmatpush3.bf16.msra.mxu0 %v6644_v0 }
 0x217   :  { %5241 = vmatprep.subr.bf16.mxu0 %v6645_v6 }
 0x21a   :  { %5242 = vmatpush3.bf16.msra.mxu0 %v6645_v6 }
 0x2c8   :  { %v5217_v5 = vpop.f32.mrb[0].mxu1 }
 0x2c9   :  { %v832_v31 = vpop.f32.mrb[1].mxu1  ;;  %v7471_v35 = vadd.f32 %v5217_v5, %v5005_v13 }
 0x2ca   :  { %v5218_v34 = vpop.f32.mrb[2].mxu1  ;;  %v7475_v41 = vadd.f32 %v5005_v13, %v832_v31 }
 0x2cb   :  { %v7473_v36 = vadd.f32 %v5218_v34, %v5005_v13  ;;  %v835_v39 = vpop.f32.mrb[3].mxu1 }
 0x2cc   :  { %v7477_v42 = vadd.f32 %v5005_v13, %v835_v39 }
 0x2cd   :  { %v6516_v43 = vpack.i.bf16 %v7473_v36, %v7471_v35 }
 0x2ce   :  { %v6521_v44 = vpack.i.bf16 %v7477_v42, %v7475_v41  ;;  %v6526_v19 = vpack.i.bf16 %v7471_v35, %v7477_v42 }
 0x2cf   :  { %6517 = vrot.lane.b32.xlu1 %v6516_v43, %s7016_s17 }
 0x2d0   :  { %v5221_v21 = vpop.f32.mrb[4].mxu1  ;;  %6522 = vrot.lane.b32.xlu0 %v6521_v44, %s7016_s17 }
 0x2d1   :  { %v848_v46 = vpop.f32.mrb[5].mxu1  ;;  %v7496_v29 = vadd.f32 %v5221_v21, %v5005_v13 }
 0x2d2   :  { %v7485_v4 = vadd.f32 %v5005_v13, %v848_v46  ;;  %v5222_v47 = vpop.f32.mrb[6].mxu1 }
 0x2d3   :  { %v851_v48 = vpop.f32.mrb[7].mxu1  ;;  %v7489_v10 = vadd.f32 %v5222_v47, %v5005_v13 }
 0x2d4   :  { %v7491_v12 = vadd.f32 %v5005_v13, %v851_v48  ;;  %6527 = vrot.lane.b32.xlu0 %v6526_v19, %s7021_s4  ;;  %v6531_v50 = vpack.i.bf16 %v7485_v4, %v7473_v36 }
 0x2d5   :  { %v6536_v52 = vpack.i.bf16 %v7489_v10, %v7496_v29 }
 0x2d6   :  { %6532 = vrot.lane.b32.xlu1 %v6531_v50, %s7021_s4  ;;  %v6541_v51 = vpack.i.bf16 %v7491_v12, %v7485_v4  ;;  %v6546_v56 = vpack.i.bf16 %v7496_v29, %v7491_v12 }
 0x2d8   :  { %v5225_v28 = vpop.f32.mrb[8].mxu1  ;;  %6542 = vrot.lane.b32.xlu0 %v6541_v51, %s7016_s17 }
 0x2d9   :  { %v864_v53 = vpop.f32.mrb[9].mxu1  ;;  %v7516_v59 = vadd.f32 %v5225_v28, %v5005_v13 }
 0x2da   :  { %v7504_v54 = vadd.f32 %v5005_v13, %v864_v53  ;;  %v5226_v55 = vpop.f32.mrb[10].mxu1  ;;  %6537 = vrot.lane.b32.xlu1 %v6536_v52, %s7016_s17 }
 0x2db   :  { %v867_v57 = vpop.f32.mrb[11].mxu1  ;;  %v7509_v58 = vadd.f32 %v5226_v55, %v5005_v13 }
 0x2dc   :  { %v7511_v22 = vadd.f32 %v5005_v13, %v867_v57  ;;  %6547 = vrot.lane.b32.xlu0 %v6546_v56, %s7021_s4  ;;  %v6551_v18 = vpack.i.bf16 %v7504_v54, %v7489_v10 }
 0x2dd   :  { %v6556_v27 = vpack.i.bf16 %v7509_v58, %v7516_v59 }
 0x2de   :  { %6552 = vrot.lane.b32.xlu1 %v6551_v18, %s7021_s4  ;;  %v6561_v32 = vpack.i.bf16 %v7511_v22, %v7504_v54  ;;  %v6566_v62 = vpack.i.bf16 %v7516_v59, %v7511_v22 }
 0x2e0   :  { %v5229_v26 = vpop.f32.mrb[12].mxu1  ;;  %6562 = vrot.lane.b32.xlu0 %v6561_v32, %s7016_s17 }
 0x2e1   :  { %v880_v60 = vpop.f32.mrb[13].mxu1  ;;  %v7534_v38 = vadd.f32 %v5229_v26, %v5005_v13 }
 0x2e2   :  { %v7524_v25 = vadd.f32 %v5005_v13, %v880_v60  ;;  %v5230_v61 = vpop.f32.mrb[14].mxu1  ;;  %6557 = vrot.lane.b32.xlu1 %v6556_v27, %s7016_s17 }
 0x2e3   :  { %v883_v63 = vpop.f32.mrb[15].mxu1  ;;  %v892_v1 = vadd.f32 %v5230_v61, %v5005_v13 }
 0x2e4   :  { %v7529_v40 = vadd.f32 %v5005_v13, %v883_v63  ;;  %6567 = vrot.lane.b32.xlu0 %v6566_v62, %s7021_s4  ;;  %v6571_v2 = vpack.i.bf16 %v7524_v25, %v7509_v58 }
 0x2e5   :  { %v6576_v7 = vpack.i.bf16 %v892_v1, %v7534_v38  ;;  %v6591_v15 = vpack.i.bf16 %v8925_v33, %v892_v1 }
 0x2e6   :  { %6572 = vrot.lane.b32.xlu1 %v6571_v2, %s7021_s4  ;;  %v6581_v3 = vpack.i.bf16 %v7529_v40, %v7524_v25  ;;  %v6586_v14 = vpack.i.bf16 %v7534_v38, %v7529_v40 }
 0x2e8   :  { %6582 = vrot.lane.b32.xlu0 %v6581_v3, %s7016_s17 }
 0x2ea   :  { %6577 = vrot.lane.b32.xlu1 %v6576_v7, %s7016_s17 }
 0x2ec   :  { %6587 = vrot.lane.b32.xlu0 %v6586_v14, %s7021_s4 }
 0x2ee   :  { %6592 = vrot.lane.b32.xlu1 %v6591_v15, %s7021_s4 }
 0x341   :  { %v6518_v8 = vpop.permute.xlu1 %6517 }
 0x342   :  { %v6523_v16 = vpop.permute.xlu0 %6522  ;;  %v6520_v24 = vunpack.i.h.bf16 %v6518_v8  ;;  %v6519_v9 = vunpack.i.l.bf16 %v6518_v8 }
 0x343   :  { %v6525_v20 = vunpack.i.h.bf16 %v6523_v16  ;;  %v6524_v23 = vunpack.i.l.bf16 %v6523_v16 }
 0x344   :  { %v1058_v31 = vsel %vm717_vm5, %v7471_v35, %v6520_v24  ;;  %v1057_v34 = vsel %vm717_vm5, %v7477_v42, %v6519_v9 }
 0x345   :  { %v1056_v45 = vsel %vm717_vm5, %v7475_v41, %v6525_v20  ;;  %v1055_v49 = vsel %vm717_vm5, 0.0, %v6524_v23 }
 0x346   :  { %v6528_v17 = vpop.permute.xlu0 %6527 }
 0x347   :  { %v6530_v11 = vunpack.i.h.bf16 %v6528_v17  ;;  %v6529_v37 = vunpack.i.l.bf16 %v6528_v17 }
 0x348   :  { %v6533_v30 = vpop.permute.xlu1 %6532 }
 0x349   :  { %v1072_v0 = vsel %vm1071_vm7, %v1055_v49, %v6529_v37  ;;  %v1073_v5 = vsel %vm1071_vm7, %v1056_v45, %v6530_v11  ;;  %v6535_v13 = vunpack.i.h.bf16 %v6533_v30  ;;  %v6534_v6 = vunpack.i.l.bf16 %v6533_v30 }
 0x34a   :  { %v1088_v39 = vpack.c.bf16 %v1073_v5, %v1072_v0  ;;  %v6543_v43 = vpop.permute.xlu0 %6542 }
 0x34b   :  { %v1075_v41 = vsel %vm1071_vm7, %v1058_v31, %v6535_v13  ;;  %v1074_v44 = vsel %vm1071_vm7, %v1057_v34, %v6534_v6  ;;  %v6545_v46 = vunpack.i.h.bf16 %v6543_v43  ;;  %v6544_v47 = vunpack.i.l.bf16 %v6543_v43 }
 0x34c   :  { %v1089_v21 = vpack.c.bf16 %v1075_v41, %v1074_v44  ;;  %v6538_v19 = vpop.permute.xlu1 %6537  ;;  %5243 = vmatprep.mubr.msk.bf16.mxu0 %vm1151_vm8, %v1088_v39 }
 0x34d   :  { %v6540_v48 = vunpack.i.h.bf16 %v6538_v19  ;;  %v6539_v50 = vunpack.i.l.bf16 %v6538_v19  ;;  %v1060_v42 = vsel %vm717_vm5, %v7485_v4, %v6545_v46  ;;  %v1059_v52 = vsel %vm717_vm5, %v7473_v36, %v6544_v47 }
 0x34e   :  { %v6548_v51 = vpop.permute.xlu0 %6547  ;;  %5244 = vmatmul.mubr.msk.bf16.vlgmr.msra.gmra.mrb[16].mxu0 %vm1151_vm8, %v1089_v21 }
 0x34f   :  { %v6550_v35 = vunpack.i.h.bf16 %v6548_v51  ;;  %v6549_v28 = vunpack.i.l.bf16 %v6548_v51  ;;  %v1062_v32 = vsel %vm717_vm5, %v7496_v29, %v6540_v48  ;;  %v1061_v26 = vsel %vm717_vm5, %v7491_v12, %v6539_v50 }
 0x350   :  { %v6553_v53 = vpop.permute.xlu1 %6552  ;;  %v7022_v51 = vmov 0  }
 0x351   :  { %v1076_v55 = vsel %vm1071_vm7, %v1059_v52, %v6549_v28  ;;  %v1077_v56 = vsel %vm1071_vm7, %v1060_v42, %v6550_v35  ;;  %v6555_v57 = vunpack.i.h.bf16 %v6553_v53  ;;  %v6554_v18 = vunpack.i.l.bf16 %v6553_v53  ;;  %1528 = vmatprep.subr.bf16.mxu1 %v7022_v51  ;;  %v6649_v35 = vld [vmem:[%s8914_s7 + $0x18] sm:$0xff]   ;;  %v6650_v28 = vld [vmem:[%s8914_s7 + $0x20] sm:$0xff]   ;;  %v6651_v42 = vld [vmem:[%s8914_s7 + $0x28] sm:$0xff]  }
 0x352   :  { %v1090_v27 = vpack.c.bf16 %v1077_v56, %v1076_v55  ;;  %v6563_v60 = vpop.permute.xlu0 %6562  ;;  %v6652_v52 = vld [vmem:[%s8914_s7 + $0x30] sm:$0xff]   ;;  %v6653_v53 = vld [vmem:[%s8914_s7 + $0x38] sm:$0xff]   ;;  %v6654_v55 = vld [vmem:[%s8914_s7 + $0x40] sm:$0xff]  }
 0x353   :  { %v1078_v4 = vsel %vm1071_vm7, %v1061_v26, %v6554_v18  ;;  %v1079_v61 = vsel %vm1071_vm7, %v1062_v32, %v6555_v57  ;;  %v6565_v62 = vunpack.i.h.bf16 %v6563_v60  ;;  %v6564_v63 = vunpack.i.l.bf16 %v6563_v60  ;;  %v6655_v56 = vld [vmem:[%s8914_s7 + $0x48] sm:$0xff]   ;;  %v6656_v57 = vld [vmem:[%s8914_s7 + $0x50] sm:$0xff]   ;;  %v6657_v18 = vld [vmem:[%s8914_s7 + $0x58] sm:$0xff]  }
 0x354   :  { %v1091_v36 = vpack.c.bf16 %v1079_v61, %v1078_v4  ;;  %v6558_v1 = vpop.permute.xlu1 %6557  ;;  %5247 = vmatprep.mubr.msk.bf16.mxu0 %vm1151_vm8, %v1090_v27  ;;  %v5017_v26 = vld [vmem:[%s8913_s6] ss:$0 sm:$0xff] }
 0x355   :  { %v6560_v2 = vunpack.i.h.bf16 %v6558_v1  ;;  %v6559_v3 = vunpack.i.l.bf16 %v6558_v1  ;;  %v1064_v12 = vsel %vm717_vm5, %v7504_v54, %v6565_v62  ;;  %v1063_v15 = vsel %vm717_vm5, %v7489_v10, %v6564_v63 }
 0x356   :  { %v6568_v7 = vpop.permute.xlu0 %6567  ;;  %5248 = vmatmul.mubr.msk.bf16.gmra.mrb[20].mxu0 %vm1151_vm8, %v1091_v36 }
 0x357   :  { %v6570_v29 = vunpack.i.h.bf16 %v6568_v7  ;;  %v6569_v14 = vunpack.i.l.bf16 %v6568_v7  ;;  %v1066_v9 = vsel %vm717_vm5, %v7516_v59, %v6560_v2  ;;  %v1065_v17 = vsel %vm717_vm5, %v7511_v22, %v6559_v3 }
 0x358   :  { %v6573_v16 = vpop.permute.xlu1 %6572 }
 0x359   :  { %v1080_v8 = vsel %vm1071_vm7, %v1063_v15, %v6569_v14  ;;  %v1081_v20 = vsel %vm1071_vm7, %v1064_v12, %v6570_v29  ;;  %v6575_v23 = vunpack.i.h.bf16 %v6573_v16  ;;  %v6574_v24 = vunpack.i.l.bf16 %v6573_v16 }
 0x35a   :  { %v1092_v11 = vpack.c.bf16 %v1081_v20, %v1080_v8  ;;  %v6583_v37 = vpop.permute.xlu0 %6582 }
 0x35b   :  { %v1082_v54 = vsel %vm1071_vm7, %v1065_v17, %v6574_v24  ;;  %v1083_v45 = vsel %vm1071_vm7, %v1066_v9, %v6575_v23  ;;  %v6585_v49 = vunpack.i.h.bf16 %v6583_v37  ;;  %v6584_v30 = vunpack.i.l.bf16 %v6583_v37 }
 0x35c   :  { %v1093_v10 = vpack.c.bf16 %v1083_v45, %v1082_v54  ;;  %v6578_v0 = vpop.permute.xlu1 %6577  ;;  %5251 = vmatprep.mubr.msk.bf16.mxu0 %vm1151_vm8, %v1092_v11 }
 0x35d   :  { %v6580_v5 = vunpack.i.h.bf16 %v6578_v0  ;;  %v6579_v13 = vunpack.i.l.bf16 %v6578_v0  ;;  %v1068_v22 = vsel %vm717_vm5, %v7524_v25, %v6585_v49  ;;  %v1067_v34 = vsel %vm717_vm5, %v7509_v58, %v6584_v30  ;;  %v6646_v58 = vld [vmem:[%s8914_s7] sm:$0xff]  }
 0x35e   :  { %v6588_v6 = vpop.permute.xlu0 %6587  ;;  %5252 = vmatmul.mubr.msk.bf16.gmra.mrb[24].mxu0 %vm1151_vm8, %v1093_v10  ;;  %1529 = vmatpush1.bf16.msra.mxu1 %v6646_v58  ;;  %v6676_v58 = vld [vmem:[%s8916_s9 + $0x60] ss:$16 sps:$4 sm:$0xff]  }
 0x35f   :  { %v6590_v59 = vunpack.i.h.bf16 %v6588_v6  ;;  %v6589_v31 = vunpack.i.l.bf16 %v6588_v6  ;;  %v1070_v46 = vsel %vm717_vm5, %v7534_v38, %v6580_v5  ;;  %v1069_v47 = vsel %vm717_vm5, %v7529_v40, %v6579_v13  ;;  %v6647_v40 = vld [vmem:[%s8914_s7 + $0x8] sm:$0xff]   ;;  %1530 = vmatprep.subr.bf16.mxu1 %v7022_v51  ;;  %v6648_v38 = vld [vmem:[%s8914_s7 + $0x10] sm:$0xff]  }
 0x360   :  { %v6593_v39 = vpop.permute.xlu1 %6592 }
 0x361   :  { %v1084_v43 = vsel %vm1071_vm7, %v1067_v34, %v6589_v31  ;;  %v1085_v41 = vsel %vm1071_vm7, %v1068_v22, %v6590_v59  ;;  %v6595_v44 = vunpack.i.h.bf16 %v6593_v39  ;;  %v6594_v21 = vunpack.i.l.bf16 %v6593_v39 }
 0x362   :  { %v1094_v19 = vpack.c.bf16 %v1085_v41, %v1084_v43  ;;  %1531 = vmatpush1.bf16.msra.mxu1 %v6647_v40  ;;  %v6684_v40 = vld [vmem:[%s8916_s9 + $0x84] ss:$16 sps:$4 sm:$0xff]  }
 0x363   :  { %v1086_v48 = vsel %vm1071_vm7, %v1069_v47, %v6594_v21  ;;  %v1087_v25 = vsel %vm1071_vm7, %v1070_v46, %v6595_v44  ;;  %1532 = vmatprep.subr.bf16.mxu1 %v7022_v51  ;;  %v6658_v44 = vld [vmem:[%s8916_s9] ss:$16 sps:$4 sm:$0xff]   ;;  %v6660_v21 = vld [vmem:[%s8916_s9 + $0x4] ss:$16 sps:$4 sm:$0xff]   ;;  %v6663_v46 = vld [vmem:[%s8916_s9 + $0xc] ss:$16 sps:$4 sm:$0xff]  }
 0x364   :  { %v1095_v50 = vpack.c.bf16 %v1087_v25, %v1086_v48  ;;  %5255 = vmatprep.mubr.msk.bf16.mxu0 %vm1151_vm8, %v1094_v19  ;;  %v6666_v47 = vld [vmem:[%s8916_s9 + $0x24] ss:$16 sps:$4 sm:$0xff]   ;;  %1847 = vmatprep.subr.bf16.mxu0 %v6660_v21  ;;  %v6664_v19 = vld [vmem:[%s8916_s9 + $0x20] ss:$16 sps:$4 sm:$0xff]  }
 0x365   :  { %1848 = vmatpush1.bf16.msra.mxu0 %v6658_v44  ;;  %v6672_v48 = vld [vmem:[%s8916_s9 + $0x44] ss:$16 sps:$4 sm:$0xff]   ;;  %v6670_v25 = vld [vmem:[%s8916_s9 + $0x40] ss:$16 sps:$4 sm:$0xff]  }
 0x366   :  { %5256 = vmatmul.mubr.msk.bf16.gmra.mrb[28].mxu0 %vm1151_vm8, %v1095_v50  ;;  %1533 = vmatpush1.bf16.msra.mxu1 %v6648_v38  ;;  %v6678_v50 = vld [vmem:[%s8916_s9 + $0x64] ss:$16 sps:$4 sm:$0xff]   ;;  %v6682_v38 = vld [vmem:[%s8916_s9 + $0x80] ss:$16 sps:$4 sm:$0xff]  }
 0x367   :  { %1879 = vmatprep.mubr.bf16.mxu0 %v7022_v51  ;;  %1534 = vmatprep.subr.bf16.mxu1 %v7022_v51 }
 0x368   :  { %1849 = vmatprep.subr.bf16.mxu0 %v6666_v47 }
 0x369   :  { %1850 = vmatpush1.bf16.msra.mxu0 %v6664_v19 }
 0x36a   :  { %1535 = vmatpush1.bf16.msra.mxu1 %v6649_v35  ;;  %1851 = vmatprep.subr.bf16.mxu0 %v6672_v48  ;;  %v6690_v35 = vld [vmem:[%s8916_s9 + $0xa4] ss:$16 sps:$4 sm:$0xff]  }
 0x36b   :  { %1536 = vmatprep.subr.bf16.mxu1 %v7022_v51 }
 0x36d   :  { %1852 = vmatpush1.bf16.msra.mxu0 %v6670_v25 }
 0x36e   :  { %1537 = vmatpush1.bf16.msra.mxu1 %v6650_v28  ;;  %1853 = vmatprep.subr.bf16.mxu0 %v6678_v50  ;;  %v6688_v28 = vld [vmem:[%s8916_s9 + $0xa0] ss:$16 sps:$4 sm:$0xff]  }
 0x36f   :  { %1538 = vmatprep.subr.bf16.mxu1 %v7022_v51 }
 0x371   :  { %1854 = vmatpush1.bf16.msra.mxu0 %v6676_v58 }
 0x372   :  { %1539 = vmatpush1.bf16.msra.mxu1 %v6651_v42  ;;  %1855 = vmatprep.subr.bf16.mxu0 %v6684_v40  ;;  %v6696_v42 = vld [vmem:[%s8916_s9 + $0xc4] ss:$16 sps:$4 sm:$0xff]  }
 0x373   :  { %1540 = vmatprep.subr.bf16.mxu1 %v7022_v51 }
 0x375   :  { %1856 = vmatpush1.bf16.msra.mxu0 %v6682_v38 }
 0x376   :  { %1541 = vmatpush1.bf16.msra.mxu1 %v6652_v52  ;;  %1857 = vmatprep.subr.bf16.mxu0 %v6690_v35  ;;  %v6694_v52 = vld [vmem:[%s8916_s9 + $0xc0] ss:$16 sps:$4 sm:$0xff]  }
 0x377   :  { %1542 = vmatprep.subr.bf16.mxu1 %v7022_v51 }
 0x379   :  { %1858 = vmatpush1.bf16.msra.mxu0 %v6688_v28 }
 0x37a   :  { %1543 = vmatpush1.bf16.msra.mxu1 %v6653_v53  ;;  %1859 = vmatprep.subr.bf16.mxu0 %v6696_v42 }
 0x37b   :  { %1544 = vmatprep.subr.bf16.mxu1 %v7022_v51 }
 0x37d   :  { %1860 = vmatpush1.bf16.msra.mxu0 %v6694_v52 }
 0x37e   :  { %1545 = vmatpush1.bf16.msra.mxu1 %v6654_v55 }
 0x37f   :  { %1546 = vmatprep.subr.bf16.mxu1 %v7022_v51 }
 0x382   :  { %1547 = vmatpush1.bf16.msra.mxu1 %v6655_v56 }
 0x383   :  { %1548 = vmatprep.subr.bf16.mxu1 %v7022_v51 }
 0x386   :  { %1549 = vmatpush1.bf16.msra.mxu1 %v6656_v57 }
 0x387   :  { %1550 = vmatprep.subr.bf16.mxu1 %v7022_v51 }
 0x38a   :  { %1551 = vmatpush1.bf16.msra.mxu1 %v6657_v18 }
 0x38b   :  { %1960 = vmatprep.subr.bf16.mxu1 %v6663_v46  ;;  %v6697_v46 = vld [vmem:[%s8916_s9 + $0xc8] ss:$16 sps:$4 sm:$0xff]  }
 0x421   :  { %v5245_v32 = vpop.f32.mrb[16].mxu0 }
 0x422   :  { %v1210_v27 = vpop.f32.mrb[17].mxu0  ;;  %v7654_v4 = vadd.f32 %v5245_v32, %v5017_v26  ;;  %v6661_v32 = vld [vmem:[%s8916_s9 + $0x8] ss:$16 sps:$4 sm:$0xff]  }
 0x423   :  { %v5246_v60 = vpop.f32.mrb[18].mxu0  ;;  %v7658_v62 = vadd.f32 %v5017_v26, %v1210_v27  ;;  %v6669_v27 = vld [vmem:[%s8916_s9 + $0x2c] ss:$16 sps:$4 sm:$0xff]  }
 0x424   :  { %v7656_v61 = vadd.f32 %v5246_v60, %v5017_v26  ;;  %v1213_v36 = vpop.f32.mrb[19].mxu0 }
 0x425   :  { %v7660_v63 = vadd.f32 %v5017_v26, %v1213_v36 }
 0x426   :  { %v6601_v1 = vpack.i.bf16 %v7656_v61, %v7654_v4 }
 0x427   :  { %v1386_v2 = vpack.c.bf16 %v7654_v4, %v7660_v63  ;;  %v6596_v3 = vpack.i.bf16 %v7658_v62, %v7660_v63 }
 0x428   :  { %6602 = vrot.lane.b32.xlu1 %v6601_v1, %s7021_s4 }
 0x429   :  { %v5249_v7 = vpop.f32.mrb[20].mxu0  ;;  %5045 = vmatprep.mubr.msk.bf16.mxu1 %vm1071_vm7, %v1386_v2  ;;  %6597 = vrot.lane.b32.xlu0 %v6596_v3, %s7021_s4  ;;  %v6675_v2 = vld [vmem:[%s8916_s9 + $0x4c] ss:$16 sps:$4 sm:$0xff]  }
 0x42a   :  { %v1226_v29 = vpop.f32.mrb[21].mxu0  ;;  %v7671_v12 = vadd.f32 %v5249_v7, %v5017_v26 }
 0x42b   :  { %v5250_v14 = vpop.f32.mrb[22].mxu0  ;;  %v7675_v8 = vadd.f32 %v5017_v26, %v1226_v29 }
 0x42c   :  { %v7673_v15 = vadd.f32 %v5250_v14, %v5017_v26  ;;  %v1229_v16 = vpop.f32.mrb[23].mxu0  ;;  %v6673_v14 = vld [vmem:[%s8916_s9 + $0x48] ss:$16 sps:$4 sm:$0xff]  }
 0x42d   :  { %v7677_v20 = vadd.f32 %v5017_v26, %v1229_v16  ;;  %v1388_v60 = vpack.c.bf16 %v7675_v8, %v7656_v61 }
 0x42e   :  { %v6611_v23 = vpack.i.bf16 %v7673_v15, %v7671_v12 }
 0x42f   :  { %v6606_v24 = vpack.i.bf16 %v7677_v20, %v7675_v8 }
 0x430   :  { %6612 = vrot.lane.b32.xlu1 %v6611_v23, %s7021_s4  ;;  %v6681_v23 = vld [vmem:[%s8916_s9 + $0x6c] ss:$16 sps:$4 sm:$0xff]  }
 0x431   :  { %v5253_v9 = vpop.f32.mrb[24].mxu0  ;;  %6607 = vrot.lane.b32.xlu0 %v6606_v24, %s7021_s4  ;;  %v1390_v24 = vpack.c.bf16 %v7671_v12, %v7677_v20 }
 0x432   :  { %v1242_v17 = vpop.f32.mrb[25].mxu0  ;;  %v7685_v37 = vadd.f32 %v5253_v9, %v5017_v26 }
 0x433   :  { %v5254_v11 = vpop.f32.mrb[26].mxu0  ;;  %v7689_v10 = vadd.f32 %v5017_v26, %v1242_v17  ;;  %v6687_v17 = vld [vmem:[%s8916_s9 + $0x8c] ss:$16 sps:$4 sm:$0xff]  }
 0x434   :  { %v7687_v54 = vadd.f32 %v5254_v11, %v5017_v26  ;;  %v1245_v45 = vpop.f32.mrb[27].mxu0 }
 0x435   :  { %v7691_v49 = vadd.f32 %v5017_v26, %v1245_v45 }
 0x436   :  { %v6621_v30 = vpack.i.bf16 %v7687_v54, %v7685_v37 }
 0x437   :  { %v6616_v0 = vpack.i.bf16 %v7691_v49, %v7689_v10  ;;  %v1394_v19 = vpack.c.bf16 %v7685_v37, %v7691_v49 }
 0x438   :  { %6622 = vrot.lane.b32.xlu1 %v6621_v30, %s7021_s4 }
 0x439   :  { %v5257_v5 = vpop.f32.mrb[28].mxu0  ;;  %6617 = vrot.lane.b32.xlu0 %v6616_v0, %s7021_s4  ;;  %v6685_v0 = vld [vmem:[%s8916_s9 + $0x88] ss:$16 sps:$4 sm:$0xff]  }
 0x43a   :  { %v1258_v13 = vpop.f32.mrb[29].mxu0  ;;  %v7699_v59 = vadd.f32 %v5257_v5, %v5017_v26 }
 0x43b   :  { %v5258_v6 = vpop.f32.mrb[30].mxu0  ;;  %v7703_v34 = vadd.f32 %v5017_v26, %v1258_v13  ;;  %v6693_v13 = vld [vmem:[%s8916_s9 + $0xac] ss:$16 sps:$4 sm:$0xff]  }
 0x43c   :  { %v7701_v31 = vadd.f32 %v5258_v6, %v5017_v26  ;;  %v1261_v22 = vpop.f32.mrb[31].mxu0  ;;  %v1392_v6 = vpack.c.bf16 %v7689_v10, %v7673_v15 }
 0x43d   :  { %v7705_v39 = vadd.f32 %v5017_v26, %v1261_v22  ;;  %v1396_v40 = vpack.c.bf16 %v7703_v34, %v7687_v54 }
 0x43e   :  { %v6631_v43 = vpack.i.bf16 %v7701_v31, %v7699_v59 }
 0x43f   :  { %v6626_v41 = vpack.i.bf16 %v7705_v39, %v7703_v34 }
 0x440   :  { %6632 = vrot.lane.b32.xlu1 %v6631_v43, %s7021_s4  ;;  %v6699_v43 = vld [vmem:[%s8916_s9 + $0xcc] ss:$16 sps:$4 sm:$0xff]  }
 0x441   :  { %6627 = vrot.lane.b32.xlu0 %v6626_v41, %s7021_s4 }
 0x49a   :  { %v6603_v57 = vpop.permute.xlu1 %6602 }
 0x49b   :  { %v6598_v53 = vpop.permute.xlu0 %6597  ;;  %v6605_v36 = vunpack.i.h.bf16 %v6603_v57  ;;  %v6604_v1 = vunpack.i.l.bf16 %v6603_v57 }
 0x49c   :  { %v6600_v55 = vunpack.i.h.bf16 %v6598_v53  ;;  %v6599_v56 = vunpack.i.l.bf16 %v6598_v53 }
 0x49d   :  { %v1371_v3 = vsel %vm1071_vm7, %v7660_v63, %v6604_v1  ;;  %v1372_v7 = vsel %vm1071_vm7, %v7654_v4, %v6605_v36  ;;  %v6679_v4 = vld [vmem:[%s8916_s9 + $0x68] ss:$16 sps:$4 sm:$0xff]   ;;  %v6700_v36 = vld [vmem:[%s8916_s9 + $0xe0] ss:$16 sps:$4 sm:$0xff]  }
 0x49e   :  { %v1370_v18 = vsel %vm1071_vm7, %v7658_v62, %v6599_v56  ;;  %v6667_v62 = vld [vmem:[%s8916_s9 + $0x28] ss:$16 sps:$4 sm:$0xff]   ;;  %v1387_v16 = vpack.c.bf16 %v1372_v7, %v1371_v3 }
 0x49f   :  { %v5048_v26 = vpack.c.bf16 %v1370_v18, %v6600_v55  ;;  %v2078_v1 = vld [vmem:[#allocation2 + $0x28] sm:$0xff] }
 0x4a1   :  { %5049 = vmatmul.mubr.msk.bf16.vlgmr.msra.gmra.mrb[16].mxu1 %vm5047_vm11, %v5048_v26 }
 0x4a2   :  { %5050 = vmatprep.mubr.msk.bf16.mxu1 %vm1071_vm7, %v1388_v60  ;;  %1961 = vmatpush1.bf16.msra.mxu1 %v6661_v32  ;;  %v6613_v30 = vpop.permute.xlu1 %6612 }
 0x4a3   :  { %1962 = vmatprep.subr.bf16.mxu1 %v6669_v27  ;;  %v6608_v29 = vpop.permute.xlu0 %6607  ;;  %v6615_v22 = vunpack.i.h.bf16 %v6613_v30 }
 0x4a4   :  { %v6610_v9 = vunpack.i.h.bf16 %v6608_v29  ;;  %v6609_v63 = vunpack.i.l.bf16 %v6608_v29  ;;  %v2073_v29 = vld [vmem:[#allocation2] sm:$0xff] }
 0x4a5   :  { %v1376_v44 = vsel %vm1071_vm7, %v7671_v12, %v6615_v22 }
 0x4a6   :  { %1963 = vmatpush1.bf16.msra.mxu1 %v6667_v62  ;;  %v1373_v11 = vsel %vm1071_vm7, %v7656_v61, %v6609_v63  ;;  %v1374_v45 = vsel %vm1071_vm7, %v7675_v8, %v6610_v9  ;;  %v6614_v61 = vunpack.i.l.bf16 %v6613_v30  ;;  %v6691_v8 = vld [vmem:[%s8916_s9 + $0xa8] ss:$16 sps:$4 sm:$0xff]   ;;  %v2081_v30 = vld [vmem:[#allocation2 + $0x40] sm:$0xff] }
 0x4a7   :  { %1964 = vmatprep.subr.bf16.mxu1 %v6675_v2  ;;  %v1389_v5 = vpack.c.bf16 %v1374_v45, %v1373_v11  ;;  %v7869_v2 = vld [vmem:[%s8915_s8] ss:$0 sm:$0xff] }
 0x4a8   :  { %v1375_v41 = vsel %vm1071_vm7, %v7677_v20, %v6614_v61 }
 0x4a9   :  { %1569 = vmatmul.mubr.bf16.gmra.mrb[20].mxu1 %v1387_v16  ;;  %v1391_v47 = vpack.c.bf16 %v1376_v44, %v1375_v41  ;;  %v2089_v41 = vld [vmem:[#allocation2 + $0x80] sm:$0xff] }
 0x4aa   :  { %5051 = vmatprep.mubr.msk.bf16.mxu1 %vm1071_vm7, %v1390_v24  ;;  %1965 = vmatpush1.bf16.msra.mxu1 %v6673_v14  ;;  %v6623_v50 = vpop.permute.xlu1 %6622  ;;  %v2077_v14 = vld [vmem:[#allocation2 + $0x20] sm:$0xff]  ;;  %v2086_v24 = vld [vmem:[#allocation2 + $0x68] sm:$0xff] }
 0x4ab   :  { %1966 = vmatprep.subr.bf16.mxu1 %v6681_v23  ;;  %v6618_v21 = vpop.permute.xlu0 %6617  ;;  %v6625_v38 = vunpack.i.h.bf16 %v6623_v50  ;;  %v6624_v35 = vunpack.i.l.bf16 %v6623_v50  ;;  %v2082_v23 = vld [vmem:[#allocation2 + $0x48] sm:$0xff]  ;;  %v2093_v44 = vld [vmem:[#allocation2 + $0xa0] sm:$0xff] }
 0x4ac   :  { %v6620_v48 = vunpack.i.h.bf16 %v6618_v21  ;;  %v6619_v25 = vunpack.i.l.bf16 %v6618_v21  ;;  %v7875_v45 = vpack.c.bf16 %v2086_v24, %v2082_v23  ;;  %v2097_v50 = vld [vmem:[#allocation2 + $0xc0] sm:$0xff]  ;;  %v2130_v23 = vld [vmem:[#allocation2 + $0x1c8] sm:$0xff] }
 0x4ad   :  { %v1379_v28 = vsel %vm1071_vm7, %v7691_v49, %v6624_v35  ;;  %v1380_v42 = vsel %vm1071_vm7, %v7685_v37, %v6625_v38  ;;  %v1400_v37 = vpack.c.bf16 %v8925_v33, %v7701_v31  ;;  %v6705_v31 = vld [vmem:[%s8916_s9 + $0xec] ss:$16 sps:$4 sm:$0xff]  }
 0x4ae   :  { %1967 = vmatpush1.bf16.msra.mxu1 %v6679_v4  ;;  %v1377_v12 = vsel %vm1071_vm7, %v7673_v15, %v6619_v25  ;;  %v1378_v20 = vsel %vm1071_vm7, %v7689_v10, %v6620_v48  ;;  %v1395_v52 = vpack.c.bf16 %v1380_v42, %v1379_v28  ;;  %v1398_v10 = vpack.c.bf16 %v7699_v59, %v7705_v39  ;;  %v2102_v48 = vld [vmem:[#allocation2 + $0xe8] sm:$0xff] }
 0x4af   :  { %1968 = vmatprep.subr.bf16.mxu1 %v6687_v17  ;;  %v1393_v58 = vpack.c.bf16 %v1378_v20, %v1377_v12  ;;  %v7873_v17 = vpack.c.bf16 %v2077_v14, %v2073_v29  ;;  %v7891_v12 = vpack.c.bf16 %v2093_v44, %v2089_v41  ;;  %v2110_v38 = vld [vmem:[#allocation2 + $0x128] sm:$0xff] }
 0x4b0   :  { %v2134_v24 = vld [vmem:[#allocation2 + $0x1e8] sm:$0xff] }
 0x4b1   :  { %1577 = vmatmul.mubr.bf16.gmra.mrb[24].mxu1 %v1389_v5  ;;  %v2090_v5 = vld [vmem:[#allocation2 + $0x88] sm:$0xff] }
 0x4b2   :  { %5052 = vmatprep.mubr.msk.bf16.mxu1 %vm1071_vm7, %v1392_v6  ;;  %1969 = vmatpush1.bf16.msra.mxu1 %v6685_v0  ;;  %v6633_v49 = vpop.permute.xlu1 %6632  ;;  %v2085_v0 = vld [vmem:[#allocation2 + $0x60] sm:$0xff] }
 0x4b3   :  { %1970 = vmatprep.subr.bf16.mxu1 %v6693_v13  ;;  %v6628_v15 = vpop.permute.xlu0 %6627  ;;  %v6635_v32 = vunpack.i.h.bf16 %v6633_v49  ;;  %v6634_v26 = vunpack.i.l.bf16 %v6633_v49  ;;  %v2094_v13 = vld [vmem:[#allocation2 + $0xa8] sm:$0xff]  ;;  %v7879_v22 = vpack.c.bf16 %v2085_v0, %v2081_v30  ;;  %v2133_v30 = vld [vmem:[#allocation2 + $0x1e0] sm:$0xff]  ;;  %v2076_v0 = vld [vmem:[#allocation2 + $0x18] sm:$0xff] }
 0x4b4   :  { %v6630_v53 = vunpack.i.h.bf16 %v6628_v15  ;;  %v6629_v55 = vunpack.i.l.bf16 %v6628_v15  ;;  %v2114_v49 = vld [vmem:[#allocation2 + $0x148] sm:$0xff] }
 0x4b5   :  { %v1383_v27 = vsel %vm1071_vm7, %v7705_v39, %v6634_v26  ;;  %v1384_v60 = vsel %vm1071_vm7, %v7699_v59, %v6635_v32  ;;  %v6703_v59 = vld [vmem:[%s8916_s9 + $0xe8] ss:$16 sps:$4 sm:$0xff]  }
 0x4b6   :  { %1971 = vmatpush1.bf16.msra.mxu1 %v6691_v8  ;;  %v1381_v56 = vsel %vm1071_vm7, %v7687_v54, %v6629_v55  ;;  %v1382_v57 = vsel %vm1071_vm7, %v7703_v34, %v6630_v53  ;;  %v1399_v54 = vpack.c.bf16 %v1384_v60, %v1383_v27  ;;  %v6702_v34 = vld [vmem:[%s8916_s9 + $0xe4] ss:$16 sps:$4 sm:$0xff]   ;;  %v2074_v39 = vld [vmem:[#allocation2 + $0x8] sm:$0xff]  ;;  %v7883_v8 = vpack.c.bf16 %v2094_v13, %v2090_v5  ;;  %v2080_v5 = vld [vmem:[#allocation2 + $0x38] sm:$0xff] }
 0x4b7   :  { %1972 = vmatprep.subr.bf16.mxu1 %v6699_v43  ;;  %v1397_v18 = vpack.c.bf16 %v1382_v57, %v1381_v56  ;;  %1861 = vmatprep.subr.bf16.mxu0 %v6702_v34  ;;  %v7862_v62 = vpack.c.bf16 %v2078_v1, %v2074_v39  ;;  %v2109_v53 = vld [vmem:[#allocation2 + $0x120] sm:$0xff]  ;;  %v2126_v34 = vld [vmem:[#allocation2 + $0x1a8] sm:$0xff]  ;;  %v7943_v41 = vpack.c.bf16 %v2080_v5, %v2076_v0 }
 0x4b8   :  { %1862 = vmatpush1.bf16.msra.mxu0 %v6700_v36  ;;  %v2113_v27 = vld [vmem:[#allocation2 + $0x140] sm:$0xff] }
 0x4b9   :  { %1585 = vmatmul.mubr.bf16.gmra.mrb[28].mxu1 %v1391_v47  ;;  %5295 = vmatprep.subr.bf16.mxu0 %v7862_v62  ;;  %v2117_v60 = vld [vmem:[#allocation2 + $0x160] sm:$0xff] }
 0x4ba   :  { %5053 = vmatprep.mubr.msk.bf16.mxu1 %vm1071_vm7, %v1394_v19  ;;  %1973 = vmatpush1.bf16.msra.mxu1 %v6697_v46  ;;  %v2098_v19 = vld [vmem:[#allocation2 + $0xc8] sm:$0xff] }
 0x4bb   :  { %1974 = vmatprep.subr.bf16.mxu1 %v6705_v31  ;;  %v7893_v20 = vpack.c.bf16 %v2102_v48, %v2098_v19 }
 0x4be   :  { %1975 = vmatpush1.bf16.msra.mxu1 %v6703_v59  ;;  %v7919_v59 = vpack.c.bf16 %v2117_v60, %v2113_v27 }
 0x4bf   :  { %5359 = vmatprep.subr.bf16.mxu1 %v7862_v62 }
 0x4c1   :  { %1593 = vmatmul.mubr.bf16.gmra.mrb[32].mxu1 %v1393_v58  ;;  %v2101_v58 = vld [vmem:[#allocation2 + $0xe0] sm:$0xff] }
 0x4c2   :  { %5054 = vmatprep.mubr.msk.bf16.mxu1 %vm1071_vm7, %v1396_v40  ;;  %v2106_v40 = vld [vmem:[#allocation2 + $0x108] sm:$0xff]  ;;  %v7899_v42 = vpack.c.bf16 %v2101_v58, %v2097_v50 }
 0x4c9   :  { %1601 = vmatmul.mubr.bf16.gmra.mrb[36].mxu1 %v1395_v52  ;;  %v7903_v52 = vpack.c.bf16 %v2110_v38, %v2106_v40 }
 0x4ca   :  { %5055 = vmatprep.mubr.msk.bf16.mxu1 %vm1071_vm7, %v1398_v10  ;;  %v2105_v10 = vld [vmem:[#allocation2 + $0x100] sm:$0xff] }
 0x4cb   :  { %v7910_v32 = vpack.c.bf16 %v2109_v53, %v2105_v10 }
 0x4d1   :  { %1609 = vmatmul.mubr.bf16.gmra.mrb[40].mxu1 %v1397_v18  ;;  %v2118_v18 = vld [vmem:[#allocation2 + $0x168] sm:$0xff] }
 0x4d2   :  { %5056 = vmatprep.mubr.msk.bf16.mxu1 %vm1071_vm7, %v1400_v37  ;;  %v7913_v26 = vpack.c.bf16 %v2118_v18, %v2114_v49 }
 0x4d9   :  { %1617 = vmatmul.mubr.bf16.gmra.mrb[44].mxu1 %v1399_v54  ;;  %v2122_v54 = vld [vmem:[#allocation2 + $0x188] sm:$0xff] }
 0x4da   :  { %1992 = vmatprep.mubr.bf16.mxu1 %v7022_v51  ;;  %v7923_v1 = vpack.c.bf16 %v2126_v34, %v2122_v54  ;;  %v2075_v34 = vld [vmem:[#allocation2 + $0x10] sm:$0xff] }
 0x574   :  { %v1562_v3 = vpop.f32.mrb[16].mxu1 }
 0x575   :  { %v1564_v7 = vpop.f32.mrb[17].mxu1  ;;  %v1563_v9 = vadd.f32 %v7869_v2, %v1562_v3  ;;  %v2121_v3 = vld [vmem:[#allocation2 + $0x180] sm:$0xff] }
 0x576   :  { %v1565_v16 = vpop.f32.mrb[18].mxu1  ;;  %v2125_v7 = vld [vmem:[#allocation2 + $0x1a0] sm:$0xff] }
 0x577   :  { %v1566_v63 = vadd.f32 %v7869_v2, %v1565_v16  ;;  %v1567_v4 = vpop.f32.mrb[19].mxu1 }
 0x578   :  { %v7933_v4 = vpack.c.bf16 %v2134_v24, %v2130_v23  ;;  %v2091_v24 = vld [vmem:[#allocation2 + $0x90] sm:$0xff] }
 0x579   :  { %v1625_v11 = vpack.c.bf16 %v1566_v63, %v1563_v9  ;;  %v7930_v63 = vpack.c.bf16 %v2125_v7, %v2121_v3  ;;  %v2083_v7 = vld [vmem:[#allocation2 + $0x50] sm:$0xff] }
 0x57b   :  { %1880 = vmatmul.mubr.bf16.vlgmr.msra.gmra.mrb[32].mxu0 %v1625_v11  ;;  %1993 = vmatmul.mubr.bf16.vlgmr.msra.gmra.mrb[48].mxu1 %v1625_v11  ;;  %v2129_v11 = vld [vmem:[#allocation2 + $0x1c0] sm:$0xff] }
 0x57c   :  { %5297 = vmatpush1.bf16.msra.mxu0 %v7873_v17  ;;  %v1570_v6 = vpop.f32.mrb[20].mxu1  ;;  %1889 = vmatprep.mubr.bf16.mxu0 %v7022_v51 }
 0x57d   :  { %v1572_v61 = vpop.f32.mrb[21].mxu1  ;;  %2002 = vmatprep.mubr.bf16.mxu1 %v7022_v51  ;;  %5299 = vmatprep.subr.bf16.mxu0 %v7875_v45  ;;  %v1571_v21 = vadd.f32 %v7869_v2, %v1570_v6 }
 0x57e   :  { %v1573_v43 = vpop.f32.mrb[22].mxu1  ;;  %5361 = vmatpush1.bf16.msra.mxu1 %v7873_v17  ;;  %v7939_v61 = vpack.c.bf16 %v2133_v30, %v2129_v11  ;;  %v2100_v11 = vld [vmem:[#allocation2 + $0xd8] sm:$0xff] }
 0x57f   :  { %v1574_v46 = vadd.f32 %v7869_v2, %v1573_v43  ;;  %v1575_v47 = vpop.f32.mrb[23].mxu1  ;;  %5363 = vmatprep.subr.bf16.mxu1 %v7875_v45  ;;  %v2104_v30 = vld [vmem:[#allocation2 + $0xf8] sm:$0xff] }
 0x580   :  { %5301 = vmatpush1.bf16.msra.mxu0 %v7879_v22  ;;  %v7983_v5 = vpack.c.bf16 %v2104_v30, %v2100_v11 }
 0x581   :  { %v1626_v25 = vpack.c.bf16 %v1574_v46, %v1571_v21  ;;  %5303 = vmatprep.subr.bf16.mxu0 %v7883_v8 }
 0x582   :  { %5365 = vmatpush1.bf16.msra.mxu1 %v7879_v22 }
 0x583   :  { %1890 = vmatmul.mubr.bf16.gmra.mrb[36].mxu0 %v1626_v25  ;;  %2003 = vmatmul.mubr.bf16.gmra.mrb[52].mxu1 %v1626_v25 }
 0x584   :  { %v1578_v35 = vpop.f32.mrb[24].mxu1  ;;  %1899 = vmatprep.mubr.bf16.mxu0 %v7022_v51  ;;  %2012 = vmatprep.mubr.bf16.mxu1 %v7022_v51 }
 0x585   :  { %v1580_v28 = vpop.f32.mrb[25].mxu1  ;;  %5305 = vmatpush1.bf16.msra.mxu0 %v7891_v12  ;;  %5367 = vmatprep.subr.bf16.mxu1 %v7883_v8  ;;  %v1579_v55 = vadd.f32 %v7869_v2, %v1578_v35 }
 0x586   :  { %v1581_v15 = vpop.f32.mrb[26].mxu1  ;;  %5307 = vmatprep.subr.bf16.mxu0 %v7893_v20  ;;  %5369 = vmatpush1.bf16.msra.mxu1 %v7891_v12 }
 0x587   :  { %v1582_v56 = vadd.f32 %v7869_v2, %v1581_v15  ;;  %v1583_v57 = vpop.f32.mrb[27].mxu1  ;;  %5371 = vmatprep.subr.bf16.mxu1 %v7893_v20 }
 0x589   :  { %v1627_v37 = vpack.c.bf16 %v1582_v56, %v1579_v55  ;;  %5309 = vmatpush1.bf16.msra.mxu0 %v7899_v42 }
 0x58a   :  { %5311 = vmatprep.subr.bf16.mxu0 %v7903_v52  ;;  %5373 = vmatpush1.bf16.msra.mxu1 %v7899_v42 }
 0x58b   :  { %1900 = vmatmul.mubr.bf16.gmra.mrb[40].mxu0 %v1627_v37  ;;  %2013 = vmatmul.mubr.bf16.gmra.mrb[56].mxu1 %v1627_v37 }
 0x58c   :  { %v1586_v31 = vpop.f32.mrb[28].mxu1  ;;  %1909 = vmatprep.mubr.bf16.mxu0 %v7022_v51  ;;  %2022 = vmatprep.mubr.bf16.mxu1 %v7022_v51 }
 0x58d   :  { %v1588_v36 = vpop.f32.mrb[29].mxu1  ;;  %5313 = vmatpush1.bf16.msra.mxu0 %v7910_v32  ;;  %5375 = vmatprep.subr.bf16.mxu1 %v7903_v52  ;;  %v1587_v29 = vadd.f32 %v7869_v2, %v1586_v31  ;;  %v2079_v31 = vld [vmem:[#allocation2 + $0x30] sm:$0xff] }
 0x58e   :  { %v1589_v39 = vpop.f32.mrb[30].mxu1  ;;  %5315 = vmatprep.subr.bf16.mxu0 %v7913_v26  ;;  %5377 = vmatpush1.bf16.msra.mxu1 %v7910_v32  ;;  %v2084_v36 = vld [vmem:[#allocation2 + $0x58] sm:$0xff]  ;;  %v7967_v3 = vpack.c.bf16 %v2079_v31, %v2075_v34 }
 0x58f   :  { %v1590_v14 = vadd.f32 %v7869_v2, %v1589_v39  ;;  %v1591_v16 = vpop.f32.mrb[31].mxu1  ;;  %5379 = vmatprep.subr.bf16.mxu1 %v7913_v26  ;;  %v2088_v39 = vld [vmem:[#allocation2 + $0x78] sm:$0xff] }
 0x591   :  { %v1628_v9 = vpack.c.bf16 %v1590_v14, %v1587_v29  ;;  %5317 = vmatpush1.bf16.msra.mxu0 %v7919_v59  ;;  %v2087_v29 = vld [vmem:[#allocation2 + $0x70] sm:$0xff]  ;;  %v2092_v14 = vld [vmem:[#allocation2 + $0x98] sm:$0xff] }
 0x592   :  { %5319 = vmatprep.subr.bf16.mxu0 %v7923_v1  ;;  %5381 = vmatpush1.bf16.msra.mxu1 %v7919_v59  ;;  %v7973_v16 = vpack.c.bf16 %v2087_v29, %v2083_v7 }
 0x593   :  { %1910 = vmatmul.mubr.bf16.gmra.mrb[44].mxu0 %v1628_v9  ;;  %2023 = vmatmul.mubr.bf16.gmra.mrb[60].mxu1 %v1628_v9  ;;  %v2095_v9 = vld [vmem:[#allocation2 + $0xb0] sm:$0xff] }
 0x594   :  { %v1594_v13 = vpop.f32.mrb[32].mxu1  ;;  %1919 = vmatprep.mubr.bf16.mxu0 %v7022_v51  ;;  %2032 = vmatprep.mubr.bf16.mxu1 %v7022_v51  ;;  %v7980_v0 = vpack.c.bf16 %v2095_v9, %v2091_v24 }
 0x595   :  { %v1596_v6 = vpop.f32.mrb[33].mxu1  ;;  %5321 = vmatpush1.bf16.msra.mxu0 %v7930_v63  ;;  %5383 = vmatprep.subr.bf16.mxu1 %v7923_v1  ;;  %v1595_v44 = vadd.f32 %v7869_v2, %v1594_v13  ;;  %v2099_v13 = vld [vmem:[#allocation2 + $0xd0] sm:$0xff] }
 0x596   :  { %v1597_v43 = vpop.f32.mrb[34].mxu1  ;;  %5323 = vmatprep.subr.bf16.mxu0 %v7933_v4  ;;  %5385 = vmatpush1.bf16.msra.mxu1 %v7930_v63  ;;  %v2103_v6 = vld [vmem:[#allocation2 + $0xf0] sm:$0xff] }
 0x597   :  { %v1598_v21 = vadd.f32 %v7869_v2, %v1597_v43  ;;  %v1599_v46 = vpop.f32.mrb[35].mxu1  ;;  %5387 = vmatprep.subr.bf16.mxu1 %v7933_v4  ;;  %v2108_v43 = vld [vmem:[#allocation2 + $0x118] sm:$0xff] }
 0x599   :  { %v1629_v47 = vpack.c.bf16 %v1598_v21, %v1595_v44  ;;  %5325 = vmatpush1.bf16.msra.mxu0 %v7939_v61  ;;  %v2112_v44 = vld [vmem:[#allocation2 + $0x138] sm:$0xff]  ;;  %v7986_v21 = vpack.c.bf16 %v2103_v6, %v2099_v13 }
 0x59a   :  { %5327 = vmatprep.subr.bf16.mxu0 %v7943_v41  ;;  %5389 = vmatpush1.bf16.msra.mxu1 %v7939_v61  ;;  %v7989_v46 = vpack.c.bf16 %v2112_v44, %v2108_v43 }
 0x59b   :  { %1920 = vmatmul.mubr.bf16.gmra.mrb[48].mxu0 %v1629_v47  ;;  %2033 = vmatmul.mubr.bf16.gmra.mrb[64].mxu1 %v1629_v47  ;;  %v2107_v47 = vld [vmem:[#allocation2 + $0x110] sm:$0xff] }
 0x59c   :  { %v1602_v19 = vpop.f32.mrb[36].mxu1  ;;  %1929 = vmatprep.mubr.bf16.mxu0 %v7022_v51  ;;  %2042 = vmatprep.mubr.bf16.mxu1 %v7022_v51 }
 0x59d   :  { %v1604_v48 = vpop.f32.mrb[37].mxu1  ;;  %5423 = vmatprep.subr.bf16.mxu1 %v7862_v62  ;;  %v1603_v50 = vadd.f32 %v7869_v2, %v1602_v19  ;;  %v2111_v19 = vld [vmem:[#allocation2 + $0x130] sm:$0xff] }
 0x59e   :  { %v1605_v25 = vpop.f32.mrb[38].mxu1  ;;  %v2116_v48 = vld [vmem:[#allocation2 + $0x158] sm:$0xff] }
 0x59f   :  { %v1606_v58 = vadd.f32 %v7869_v2, %v1605_v25  ;;  %v1607_v40 = vpop.f32.mrb[39].mxu1  ;;  %v2120_v25 = vld [vmem:[#allocation2 + $0x178] sm:$0xff] }
 0x5a0   :  { %v2115_v40 = vld [vmem:[#allocation2 + $0x150] sm:$0xff] }
 0x5a1   :  { %v1630_v38 = vpack.c.bf16 %v1606_v58, %v1603_v50  ;;  %v7992_v50 = vpack.c.bf16 %v2111_v19, %v2107_v47  ;;  %v7995_v58 = vpack.c.bf16 %v2120_v25, %v2116_v48 }
 0x5a3   :  { %1930 = vmatmul.mubr.bf16.gmra.mrb[52].mxu0 %v1630_v38  ;;  %2043 = vmatmul.mubr.bf16.gmra.mrb[68].mxu1 %v1630_v38  ;;  %v2119_v38 = vld [vmem:[#allocation2 + $0x170] sm:$0xff] }
 0x5a4   :  { %v1610_v35 = vpop.f32.mrb[40].mxu1  ;;  %1939 = vmatprep.mubr.bf16.mxu0 %v7022_v51  ;;  %2052 = vmatprep.mubr.bf16.mxu1 %v7022_v51 }
 0x5a5   :  { %v1612_v28 = vpop.f32.mrb[41].mxu1  ;;  %v1611_v10 = vadd.f32 %v7869_v2, %v1610_v35  ;;  %v2124_v35 = vld [vmem:[#allocation2 + $0x198] sm:$0xff] }
 0x5a6   :  { %v1613_v15 = vpop.f32.mrb[42].mxu1  ;;  %v2128_v28 = vld [vmem:[#allocation2 + $0x1b8] sm:$0xff] }
 0x5a7   :  { %v1614_v53 = vadd.f32 %v7869_v2, %v1613_v15  ;;  %v1615_v55 = vpop.f32.mrb[43].mxu1  ;;  %v7998_v15 = vpack.c.bf16 %v2119_v38, %v2115_v40 }
 0x5a8   :  { %v2127_v55 = vld [vmem:[#allocation2 + $0x1b0] sm:$0xff] }
 0x5a9   :  { %v1631_v56 = vpack.c.bf16 %v1614_v53, %v1611_v10  ;;  %v8001_v10 = vpack.c.bf16 %v2128_v28, %v2124_v35  ;;  %v2123_v53 = vld [vmem:[#allocation2 + $0x190] sm:$0xff] }
 0x5ab   :  { %1940 = vmatmul.mubr.bf16.gmra.mrb[56].mxu0 %v1631_v56  ;;  %2053 = vmatmul.mubr.bf16.gmra.mrb[72].mxu1 %v1631_v56  ;;  %v2132_v56 = vld [vmem:[#allocation2 + $0x1d8] sm:$0xff] }
 0x5ac   :  { %v1618_v57 = vpop.f32.mrb[44].mxu1  ;;  %1949 = vmatprep.mubr.bf16.mxu0 %v7022_v51  ;;  %2062 = vmatprep.mubr.bf16.mxu1 %v7022_v51  ;;  %v7969_v51 = vpack.c.bf16 %v2088_v39, %v2084_v36  ;;  %v1665_v39 = vld [vmem:[%s8918_s11] sm:$0xf] }
 0x5ad   :  { %v1620_v49 = vpop.f32.mrb[45].mxu1  ;;  %v1619_v37 = vadd.f32 %v7869_v2, %v1618_v57  ;;  %v2136_v57 = vld [vmem:[#allocation2 + $0x1f8] sm:$0xff] }
 0x5ae   :  { %v1621_v18 = vpop.f32.mrb[46].mxu1  ;;  %v8004_v49 = vpack.c.bf16 %v2127_v55, %v2123_v53 }
 0x5af   :  { %v1622_v27 = vadd.f32 %v7869_v2, %v1621_v18  ;;  %v1623_v60 = vpop.f32.mrb[47].mxu1  ;;  %v2096_v2 = vld [vmem:[#allocation2 + $0xb8] sm:$0xff]  ;;  %v8007_v18 = vpack.c.bf16 %v2136_v57, %v2132_v56 }
 0x5b0   :  { %v7977_v23 = vpack.c.bf16 %v2096_v2, %v2092_v14 }
 0x5b1   :  { %v1632_v54 = vpack.c.bf16 %v1622_v27, %v1619_v37  ;;  %v2131_v37 = vld [vmem:[#allocation2 + $0x1d0] sm:$0xff] }
 0x5b2   :  { %v2135_v27 = vld [vmem:[#allocation2 + $0x1f0] sm:$0xff] }
 0x5b3   :  { %1950 = vmatmul.mubr.bf16.gmra.mrb[60].mxu0 %v1632_v54  ;;  %2063 = vmatmul.mubr.bf16.gmra.mrb[76].mxu1 %v1632_v54  ;;  %v8010_v60 = vpack.c.bf16 %v2135_v27, %v2131_v37  ;;  %v1667_v54 = vlaneseq }
 0x5b4   :  { %2201 = vmatprep.mubr.f32.mxu0 %v8925_v33  ;;  %2371 = vmatprep.mubr.f32.mxu1 %v8925_v33 }
 0x5b5   :  { %v1668_v34 = vshrl.u32 %v1667_v54, 7 }
 0x5b7   :  { %v1669_v31 = vsub.s32 0, %v1668_v34  ;;  %v1677_v36 = vsub.s32 2, %v1668_v34  ;;  %v1673_v7 = vsub.s32 1, %v1668_v34  ;;  %v1681_v29 = vsub.s32 3, %v1668_v34 }
 0x5b9   :  { %v8040_v24 = vrot.slane %v1665_v39, %v1669_v31  ;;  %v8042_v9 = vrot.slane %v1665_v39, %v1677_v36  ;;  %v8048_v13 = vrot.slane %v1665_v39, %v1673_v7  ;;  %v8050_v6 = vrot.slane %v1665_v39, %v1681_v29 }
 0x5bb   :  { %2202 = vmatmul.mubr.f32.vlgmr.msra.gmra.mrb[64].mxu0 %v8925_v33 }
 0x5bc   :  { %5329 = vmatpush1.bf16.msra.mxu0 %v7967_v3  ;;  %2272 = vmatprep.mubr.f32.mxu0 %v8925_v33 }
 0x5bd   :  { %5331 = vmatprep.subr.bf16.mxu0 %v7969_v51 }
 0x5c0   :  { %5333 = vmatpush1.bf16.msra.mxu0 %v7973_v16 }
 0x5c1   :  { %5335 = vmatprep.subr.bf16.mxu0 %v7977_v23 }
 0x5c4   :  { %5337 = vmatpush1.bf16.msra.mxu0 %v7980_v0 }
 0x5c5   :  { %5339 = vmatprep.subr.bf16.mxu0 %v7983_v5 }
 0x5c8   :  { %5341 = vmatpush1.bf16.msra.mxu0 %v7986_v21 }
 0x5c9   :  { %5343 = vmatprep.subr.bf16.mxu0 %v7989_v46 }
 0x5cc   :  { %5345 = vmatpush1.bf16.msra.mxu0 %v7992_v50 }
 0x5cd   :  { %5347 = vmatprep.subr.bf16.mxu0 %v7995_v58 }
 0x5d0   :  { %5349 = vmatpush1.bf16.msra.mxu0 %v7998_v15 }
 0x5d1   :  { %5351 = vmatprep.subr.bf16.mxu0 %v8001_v10 }
 0x5d4   :  { %5353 = vmatpush1.bf16.msra.mxu0 %v8004_v49 }
 0x5d5   :  { %5355 = vmatprep.subr.bf16.mxu0 %v8007_v18 }
 0x5d8   :  { %5357 = vmatpush1.bf16.msra.mxu0 %v8010_v60 }
 0x5d9   :  { %5391 = vmatprep.subr.bf16.mxu0 %v7943_v41 }
 0x5db   :  { %2273 = vmatmul.mubr.f32.vlgmr.msra.gmra.mrb[66].mxu0 %v8925_v33 }
 0x5dc   :  { %5393 = vmatpush1.bf16.msra.mxu0 %v7967_v3  ;;  %2442 = vmatprep.mubr.f32.mxu0 %v8925_v33 }
 0x5dd   :  { %5395 = vmatprep.subr.bf16.mxu0 %v7969_v51 }
 0x5e0   :  { %5397 = vmatpush1.bf16.msra.mxu0 %v7973_v16 }
 0x5e1   :  { %5399 = vmatprep.subr.bf16.mxu0 %v7977_v23 }
 0x5e4   :  { %5401 = vmatpush1.bf16.msra.mxu0 %v7980_v0 }
 0x5e5   :  { %5403 = vmatprep.subr.bf16.mxu0 %v7983_v5 }
 0x5e8   :  { %5405 = vmatpush1.bf16.msra.mxu0 %v7986_v21 }
 0x5e9   :  { %5407 = vmatprep.subr.bf16.mxu0 %v7989_v46 }
 0x5ec   :  { %5409 = vmatpush1.bf16.msra.mxu0 %v7992_v50 }
 0x5ed   :  { %5411 = vmatprep.subr.bf16.mxu0 %v7995_v58 }
 0x5f0   :  { %5413 = vmatpush1.bf16.msra.mxu0 %v7998_v15 }
 0x5f1   :  { %5415 = vmatprep.subr.bf16.mxu0 %v8001_v10 }
 0x5f4   :  { %5417 = vmatpush1.bf16.msra.mxu0 %v8004_v49 }
 0x5f5   :  { %5419 = vmatprep.subr.bf16.mxu0 %v8007_v18 }
 0x5f8   :  { %5421 = vmatpush1.bf16.msra.mxu0 %v8010_v60 }
 0x5f9   :  { %5455 = vmatprep.subr.bf16.mxu0 %v7943_v41 }
 0x64e   :  { %v8036_v14 = vpop.f32.mrb[32].mxu0  ;;  %v8038_v2 = vpop.f32.mrb[48].mxu1 }
 0x64f   :  { %v8044_v11 = vpop.f32.mrb[33].mxu0  ;;  %v8046_v30 = vpop.f32.mrb[49].mxu1 }
 0x650   :  { %v1885_v43 = vpop.f32.mrb[34].mxu0  ;;  %v1998_v44 = vpop.f32.mrb[50].mxu1 }
 0x651   :  { %v8053_v47 = vadd.f32 %v1885_v43, %v8040_v24  ;;  %v8056_v19 = vadd.f32 %v1998_v44, %v8042_v9  ;;  %v1887_v48 = vpop.f32.mrb[35].mxu0  ;;  %v2000_v25 = vpop.f32.mrb[51].mxu1 }
 0x652   :  { %v8059_v40 = vadd.f32 %v1887_v48, %v8048_v13  ;;  %v8062_v38 = vadd.f32 %v2000_v25, %v8050_v6 }
 0x656   :  { %v1891_v35 = vpop.f32.mrb[36].mxu0  ;;  %v2004_v28 = vpop.f32.mrb[52].mxu1 }
 0x657   :  { %v8065_v53 = vadd.f32 %v1891_v35, %v8040_v24  ;;  %v8068_v55 = vadd.f32 %v2004_v28, %v8042_v9  ;;  %v1893_v56 = vpop.f32.mrb[37].mxu0  ;;  %v2006_v57 = vpop.f32.mrb[53].mxu1 }
 0x658   :  { %v8071_v37 = vadd.f32 %v1893_v56, %v8048_v13  ;;  %v8074_v27 = vadd.f32 %v2006_v57, %v8050_v6  ;;  %v1895_v54 = vpop.f32.mrb[38].mxu0  ;;  %v2008_v34 = vpop.f32.mrb[54].mxu1 }
 0x659   :  { %v8077_v31 = vadd.f32 %v1895_v54, %v8040_v24  ;;  %v8080_v36 = vadd.f32 %v2008_v34, %v8042_v9  ;;  %v1897_v39 = vpop.f32.mrb[39].mxu0  ;;  %v2010_v7 = vpop.f32.mrb[55].mxu1 }
 0x65a   :  { %v8083_v29 = vadd.f32 %v1897_v39, %v8048_v13  ;;  %v8086_v43 = vadd.f32 %v2010_v7, %v8050_v6 }
 0x65c   :  { %8929 = vst [vmem:[#allocation8_spill] sm:$0xff] %v8083_v29  ;;  %8930 = vst [vmem:[#allocation9_spill] sm:$0xff] %v8086_v43 }
 0x65e   :  { %v1901_v44 = vpop.f32.mrb[40].mxu0  ;;  %v2014_v48 = vpop.f32.mrb[56].mxu1 }
 0x65f   :  { %v8089_v25 = vadd.f32 %v1901_v44, %v8040_v24  ;;  %v8092_v35 = vadd.f32 %v2014_v48, %v8042_v9  ;;  %v1903_v28 = vpop.f32.mrb[41].mxu0  ;;  %v2016_v56 = vpop.f32.mrb[57].mxu1 }
 0x660   :  { %v8095_v57 = vadd.f32 %v1903_v28, %v8048_v13  ;;  %v8098_v54 = vadd.f32 %v2016_v56, %v8050_v6  ;;  %v1905_v34 = vpop.f32.mrb[42].mxu0  ;;  %v2018_v39 = vpop.f32.mrb[58].mxu1 }
 0x661   :  { %8931 = vst [vmem:[#allocation10_spill] sm:$0xff] %v8089_v25  ;;  %8932 = vst [vmem:[#allocation11_spill] sm:$0xff] %v8092_v35  ;;  %v8101_v7 = vadd.f32 %v1905_v34, %v8040_v24  ;;  %v8104_v33 = vadd.f32 %v2018_v39, %v8042_v9  ;;  %v1907_v44 = vpop.f32.mrb[43].mxu0  ;;  %v2020_v25 = vpop.f32.mrb[59].mxu1 }
 0x662   :  { %8933 = vst [vmem:[#allocation12_spill] sm:$0xff] %v8095_v57  ;;  %8934 = vst [vmem:[#allocation13_spill] sm:$0xff] %v8098_v54  ;;  %v8107_v48 = vadd.f32 %v1907_v44, %v8048_v13  ;;  %v8110_v35 = vadd.f32 %v2020_v25, %v8050_v6 }
 0x663   :  { %8935 = vst [vmem:[#allocation14_spill] sm:$0xff] %v8101_v7  ;;  %8936 = vst [vmem:[#allocation15_spill] sm:$0xff] %v8104_v33 }
 0x664   :  { %8937 = vst [vmem:[#allocation16_spill] sm:$0xff] %v8107_v48  ;;  %8938 = vst [vmem:[#allocation17_spill] sm:$0xff] %v8110_v35 }
 0x666   :  { %v1911_v28 = vpop.f32.mrb[44].mxu0  ;;  %v2024_v57 = vpop.f32.mrb[60].mxu1 }
 0x667   :  { %v8113_v56 = vadd.f32 %v1911_v28, %v8040_v24  ;;  %v8116_v54 = vadd.f32 %v2024_v57, %v8042_v9  ;;  %v1913_v34 = vpop.f32.mrb[45].mxu0  ;;  %v2026_v7 = vpop.f32.mrb[61].mxu1 }
 0x668   :  { %v8119_v39 = vadd.f32 %v1913_v34, %v8048_v13  ;;  %v8122_v33 = vadd.f32 %v2026_v7, %v8050_v6  ;;  %v1915_v44 = vpop.f32.mrb[46].mxu0  ;;  %v2028_v48 = vpop.f32.mrb[62].mxu1 }
 0x669   :  { %8939 = vst [vmem:[#allocation18_spill] sm:$0xff] %v8113_v56  ;;  %8940 = vst [vmem:[#allocation19_spill] sm:$0xff] %v8116_v54  ;;  %v8125_v25 = vadd.f32 %v1915_v44, %v8040_v24  ;;  %v8128_v35 = vadd.f32 %v2028_v48, %v8042_v9  ;;  %v1917_v28 = vpop.f32.mrb[47].mxu0  ;;  %v2030_v56 = vpop.f32.mrb[63].mxu1 }
 0x66a   :  { %8941 = vst [vmem:[#allocation20_spill] sm:$0xff] %v8119_v39  ;;  %8942 = vst [vmem:[#allocation21_spill] sm:$0xff] %v8122_v33  ;;  %v8131_v57 = vadd.f32 %v1917_v28, %v8048_v13  ;;  %v8134_v54 = vadd.f32 %v2030_v56, %v8050_v6 }
 0x66b   :  { %8943 = vst [vmem:[#allocation22_spill] sm:$0xff] %v8125_v25  ;;  %8944 = vst [vmem:[#allocation23_spill] sm:$0xff] %v8128_v35 }
 0x66c   :  { %8945 = vst [vmem:[#allocation24_spill] sm:$0xff] %v8131_v57  ;;  %8946 = vst [vmem:[#allocation25_spill] sm:$0xff] %v8134_v54 }
 0x66e   :  { %v1921_v34 = vpop.f32.mrb[48].mxu0  ;;  %v2034_v39 = vpop.f32.mrb[64].mxu1 }
 0x66f   :  { %v8137_v7 = vadd.f32 %v1921_v34, %v8040_v24  ;;  %v8140_v33 = vadd.f32 %v2034_v39, %v8042_v9  ;;  %v1923_v44 = vpop.f32.mrb[49].mxu0  ;;  %v2036_v25 = vpop.f32.mrb[65].mxu1 }
 0x670   :  { %v8143_v48 = vadd.f32 %v1923_v44, %v8048_v13  ;;  %v8146_v35 = vadd.f32 %v2036_v25, %v8050_v6  ;;  %v1925_v28 = vpop.f32.mrb[50].mxu0  ;;  %v2038_v57 = vpop.f32.mrb[66].mxu1 }
 0x671   :  { %8947 = vst [vmem:[#allocation26_spill] sm:$0xff] %v8137_v7  ;;  %8948 = vst [vmem:[#allocation27_spill] sm:$0xff] %v8140_v33  ;;  %v8149_v56 = vadd.f32 %v1925_v28, %v8040_v24  ;;  %v8152_v54 = vadd.f32 %v2038_v57, %v8042_v9  ;;  %v1927_v34 = vpop.f32.mrb[51].mxu0  ;;  %v2040_v7 = vpop.f32.mrb[67].mxu1 }
 0x672   :  { %8949 = vst [vmem:[#allocation28_spill] sm:$0xff] %v8143_v48  ;;  %8950 = vst [vmem:[#allocation29_spill] sm:$0xff] %v8146_v35  ;;  %v8155_v39 = vadd.f32 %v1927_v34, %v8048_v13  ;;  %v8158_v33 = vadd.f32 %v2040_v7, %v8050_v6 }
 0x673   :  { %8951 = vst [vmem:[#allocation30_spill] sm:$0xff] %v8149_v56  ;;  %8952 = vst [vmem:[#allocation31_spill] sm:$0xff] %v8152_v54 }
 0x674   :  { %8953 = vst [vmem:[#allocation32_spill] sm:$0xff] %v8155_v39  ;;  %8954 = vst [vmem:[#allocation33_spill] sm:$0xff] %v8158_v33 }
 0x676   :  { %v1931_v44 = vpop.f32.mrb[52].mxu0  ;;  %v2044_v48 = vpop.f32.mrb[68].mxu1 }
 0x677   :  { %v8161_v25 = vadd.f32 %v1931_v44, %v8040_v24  ;;  %v8164_v35 = vadd.f32 %v2044_v48, %v8042_v9  ;;  %v1933_v28 = vpop.f32.mrb[53].mxu0  ;;  %v2046_v56 = vpop.f32.mrb[69].mxu1 }
 0x678   :  { %v8167_v57 = vadd.f32 %v1933_v28, %v8048_v13  ;;  %v8170_v54 = vadd.f32 %v2046_v56, %v8050_v6  ;;  %v1935_v34 = vpop.f32.mrb[54].mxu0  ;;  %v2048_v39 = vpop.f32.mrb[70].mxu1 }
 0x679   :  { %8955 = vst [vmem:[#allocation34_spill] sm:$0xff] %v8161_v25  ;;  %8956 = vst [vmem:[#allocation35_spill] sm:$0xff] %v8164_v35  ;;  %v8173_v7 = vadd.f32 %v1935_v34, %v8040_v24  ;;  %v8176_v33 = vadd.f32 %v2048_v39, %v8042_v9  ;;  %v1937_v44 = vpop.f32.mrb[55].mxu0  ;;  %v2050_v25 = vpop.f32.mrb[71].mxu1 }
 0x67a   :  { %8957 = vst [vmem:[#allocation36_spill] sm:$0xff] %v8167_v57  ;;  %8958 = vst [vmem:[#allocation37_spill] sm:$0xff] %v8170_v54  ;;  %v8179_v48 = vadd.f32 %v1937_v44, %v8048_v13  ;;  %v8182_v35 = vadd.f32 %v2050_v25, %v8050_v6 }
 0x67b   :  { %8959 = vst [vmem:[#allocation38_spill] sm:$0xff] %v8173_v7  ;;  %8960 = vst [vmem:[#allocation39_spill] sm:$0xff] %v8176_v33 }
 0x67c   :  { %8961 = vst [vmem:[#allocation40_spill] sm:$0xff] %v8179_v48  ;;  %8962 = vst [vmem:[#allocation41_spill] sm:$0xff] %v8182_v35 }
 0x67e   :  { %v1941_v28 = vpop.f32.mrb[56].mxu0  ;;  %v2054_v57 = vpop.f32.mrb[72].mxu1 }
 0x67f   :  { %v8185_v56 = vadd.f32 %v1941_v28, %v8040_v24  ;;  %v8188_v54 = vadd.f32 %v2054_v57, %v8042_v9  ;;  %v1943_v34 = vpop.f32.mrb[57].mxu0  ;;  %v2056_v7 = vpop.f32.mrb[73].mxu1 }
 0x680   :  { %v8191_v39 = vadd.f32 %v1943_v34, %v8048_v13  ;;  %v8194_v33 = vadd.f32 %v2056_v7, %v8050_v6  ;;  %v1945_v44 = vpop.f32.mrb[58].mxu0  ;;  %v2058_v48 = vpop.f32.mrb[74].mxu1 }
 0x681   :  { %8963 = vst [vmem:[#allocation42_spill] sm:$0xff] %v8185_v56  ;;  %8964 = vst [vmem:[#allocation43_spill] sm:$0xff] %v8188_v54  ;;  %v8197_v25 = vadd.f32 %v1945_v44, %v8040_v24  ;;  %v8200_v35 = vadd.f32 %v2058_v48, %v8042_v9  ;;  %v1947_v28 = vpop.f32.mrb[59].mxu0  ;;  %v2060_v56 = vpop.f32.mrb[75].mxu1 }
 0x682   :  { %8965 = vst [vmem:[#allocation44_spill] sm:$0xff] %v8191_v39  ;;  %8966 = vst [vmem:[#allocation45_spill] sm:$0xff] %v8194_v33  ;;  %v8203_v57 = vadd.f32 %v1947_v28, %v8048_v13  ;;  %v8206_v54 = vadd.f32 %v2060_v56, %v8050_v6 }
 0x683   :  { %8967 = vst [vmem:[#allocation46_spill] sm:$0xff] %v8197_v25  ;;  %8968 = vst [vmem:[#allocation47_spill] sm:$0xff] %v8200_v35 }
 0x684   :  { %8969 = vst [vmem:[#allocation48_spill] sm:$0xff] %v8203_v57  ;;  %8970 = vst [vmem:[#allocation49_spill] sm:$0xff] %v8206_v54 }
 0x686   :  { %v1951_v34 = vpop.f32.mrb[60].mxu0  ;;  %v2064_v39 = vpop.f32.mrb[76].mxu1 }
 0x687   :  { %v8209_v7 = vadd.f32 %v1951_v34, %v8040_v24  ;;  %v8212_v33 = vadd.f32 %v2064_v39, %v8042_v9  ;;  %v1953_v44 = vpop.f32.mrb[61].mxu0  ;;  %v2066_v25 = vpop.f32.mrb[77].mxu1 }
 0x688   :  { %v8215_v48 = vadd.f32 %v1953_v44, %v8048_v13  ;;  %v8218_v35 = vadd.f32 %v2066_v25, %v8050_v6  ;;  %v1955_v28 = vpop.f32.mrb[62].mxu0  ;;  %v2068_v57 = vpop.f32.mrb[78].mxu1  ;;  %v1882_v25 = vadd.f32 %v8036_v14, %v8040_v24  ;;  %v1884_v44 = vadd.f32 %v8044_v11, %v8048_v13 }
 0x689   :  { %8971 = vst [vmem:[#allocation50_spill] sm:$0xff] %v8209_v7  ;;  %8972 = vst [vmem:[#allocation51_spill] sm:$0xff] %v8212_v33  ;;  %v8221_v56 = vadd.f32 %v1955_v28, %v8040_v24  ;;  %v8224_v54 = vadd.f32 %v2068_v57, %v8042_v9  ;;  %v1957_v34 = vpop.f32.mrb[63].mxu0  ;;  %v2070_v7 = vpop.f32.mrb[79].mxu1  ;;  %v1997_v14 = vadd.f32 %v8046_v30, %v8050_v6 }
 0x68a   :  { %8973 = vst [vmem:[#allocation52_spill] sm:$0xff] %v8215_v48  ;;  %8974 = vst [vmem:[#allocation53_spill] sm:$0xff] %v8218_v35  ;;  %v8227_v39 = vadd.f32 %v1957_v34, %v8048_v13  ;;  %v8230_v33 = vadd.f32 %v2070_v7, %v8050_v6  ;;  %v1995_v7 = vadd.f32 %v8038_v2, %v8042_v9 }
 0x68b   :  { %8975 = vst [vmem:[#allocation54_spill] sm:$0xff] %v8221_v56  ;;  %8976 = vst [vmem:[#allocation55_spill] sm:$0xff] %v8224_v54 }
 0x68c   :  { %8977 = vst [vmem:[#allocation56_spill] sm:$0xff] %v8227_v39 }
 0x68e   :  { %v2203_v35 = vpop.f32.mrb[64].mxu0 }
 0x68f   :  { %v2279_v28 = vadd.f32 %v2203_v35, %v1882_v25  ;;  %v2205_v56 = vpop.f32.mrb[65].mxu0 }
 0x690   :  { %v2280_v48 = vadd.f32 %v2205_v56, %v1884_v44 }
 0x691   :  { %v5089_v54 = vmul.f32 -1.442695, %v2279_v28 }
 0x692   :  { %v5090_v57 = vmul.f32 -1.442695, %v2280_v48 }
 0x694   :  { %6706 = vpow2.f32 %v5090_v57 }
 0x695   :  { %6708 = vpow2.f32 %v5089_v54 }
 0x69e   :  { %v6707_v43 = vpop.eup %6706 }
 0x69f   :  { %v6709_v34 = vpop.eup %6708  ;;  %v2292_v39 = vadd.f32 1.0, %v6707_v43 }
 0x6a0   :  { %v2286_v29 = vadd.f32 1.0, %v6709_v34 }
 0x6a1   :  { %6710 = vrcp.f32 %v2292_v39 }
 0x6a2   :  { %6712 = vrcp.f32 %v2286_v29  ;;  %v8978_v29 = vmov 0.0  }
 0x6ab   :  { %v6711_v54 = vpop.eup %6710 }
 0x6ac   :  { %v6713_v56 = vpop.eup %6712  ;;  %v2302_v43 = vmul.f32 0.0, %v6711_v54 }
 0x6ae   :  { %v2274_v24 = vpop.f32.mrb[66].mxu0 }
 0x6af   :  { %v2281_v11 = vadd.f32 %v2274_v24, %v1995_v7  ;;  %v2276_v13 = vpop.f32.mrb[67].mxu0 }
 0x6b0   :  { %v2282_v35 = vadd.f32 %v2276_v13, %v1997_v14 }
 0x6b1   :  { %6714 = vtanh.f32 %v2281_v11 }
 0x6b2   :  { %v5091_v48 = vmul.f32 -1.442695, %v2282_v35 }
 0x6b4   :  { %6716 = vpow2.f32 %v5091_v48 }
 0x6bb   :  { %v6715_v25 = vpop.eup %6714 }
 0x6bc   :  { %v2303_v44 = vmul.f32 %v6715_v25, %v6713_v56 }
 0x6be   :  { %v6717_v28 = vpop.eup %6716  ;;  %v8240_v57 = vadd.f32 %v2303_v44, %v2302_v43 }
 0x6bf   :  { %v2299_v2 = vadd.f32 1.0, %v6717_v28 }
 0x6c0   :  { %6718 = vtanh.f32 %v8240_v57 }
 0x6c1   :  { %6720 = vrcp.f32 %v2299_v2 }
 0x6ca   :  { %v6719_v9 = vpop.eup %6718 }
 0x6cb   :  { %v6721_v30 = vpop.eup %6720 }
 0x6cc   :  { %v2306_v6 = vmul.f32 %v6721_v30, %v6719_v9 }
 0x6ce   :  { %2372 = vmatmul.mubr.f32.vlgmr.msra.gmra.mrb[80].mxu1 %v2306_v6  ;;  %2443 = vmatmul.mubr.f32.vlgmr.msra.gmra.mrb[68].mxu0 %v2306_v6 }
 0x6cf   :  { %5425 = vmatpush1.bf16.msra.mxu1 %v7873_v17  ;;  %5457 = vmatpush1.bf16.msra.mxu0 %v7967_v3 }
 0x6d0   :  { %5427 = vmatprep.subr.bf16.mxu1 %v7875_v45  ;;  %5459 = vmatprep.subr.bf16.mxu0 %v7969_v51 }
 0x6d1   :  { %2541 = vmatprep.mubr.f32.mxu1 %v8978_v29  ;;  %2612 = vmatprep.mubr.f32.mxu0 %v8978_v29 }
 0x6d3   :  { %5429 = vmatpush1.bf16.msra.mxu1 %v7879_v22  ;;  %5461 = vmatpush1.bf16.msra.mxu0 %v7973_v16 }
 0x6d4   :  { %5431 = vmatprep.subr.bf16.mxu1 %v7883_v8  ;;  %5463 = vmatprep.subr.bf16.mxu0 %v7977_v23 }
 0x6d7   :  { %5433 = vmatpush1.bf16.msra.mxu1 %v7891_v12  ;;  %5465 = vmatpush1.bf16.msra.mxu0 %v7980_v0 }
 0x6d8   :  { %5435 = vmatprep.subr.bf16.mxu1 %v7893_v20  ;;  %5467 = vmatprep.subr.bf16.mxu0 %v7983_v5 }
 0x6db   :  { %5437 = vmatpush1.bf16.msra.mxu1 %v7899_v42  ;;  %5469 = vmatpush1.bf16.msra.mxu0 %v7986_v21 }
 0x6dc   :  { %5439 = vmatprep.subr.bf16.mxu1 %v7903_v52  ;;  %5471 = vmatprep.subr.bf16.mxu0 %v7989_v46 }
 0x6df   :  { %5441 = vmatpush1.bf16.msra.mxu1 %v7910_v32  ;;  %5473 = vmatpush1.bf16.msra.mxu0 %v7992_v50 }
 0x6e0   :  { %5443 = vmatprep.subr.bf16.mxu1 %v7913_v26  ;;  %5475 = vmatprep.subr.bf16.mxu0 %v7995_v58 }
 0x6e3   :  { %5445 = vmatpush1.bf16.msra.mxu1 %v7919_v59  ;;  %5477 = vmatpush1.bf16.msra.mxu0 %v7998_v15 }
 0x6e4   :  { %5447 = vmatprep.subr.bf16.mxu1 %v7923_v1  ;;  %5479 = vmatprep.subr.bf16.mxu0 %v8001_v10 }
 0x6e7   :  { %5449 = vmatpush1.bf16.msra.mxu1 %v7930_v63  ;;  %5481 = vmatpush1.bf16.msra.mxu0 %v8004_v49 }
 0x6e8   :  { %5451 = vmatprep.subr.bf16.mxu1 %v7933_v4  ;;  %5483 = vmatprep.subr.bf16.mxu0 %v8007_v18 }
 0x6eb   :  { %5453 = vmatpush1.bf16.msra.mxu1 %v7939_v61  ;;  %5485 = vmatpush1.bf16.msra.mxu0 %v8010_v60 }
 0x6ec   :  { %5487 = vmatprep.subr.bf16.mxu1 %v7862_v62  ;;  %5519 = vmatprep.subr.bf16.mxu0 %v7943_v41 }
 0x7a1   :  { %v2373_v39 = vpop.f32.mrb[80].mxu1  ;;  %v2444_v34 = vpop.f32.mrb[68].mxu0 }
 0x7a2   :  { %v2449_v7 = vadd.f32 %v2373_v39, %v8053_v47  ;;  %v2451_v14 = vadd.f32 %v2444_v34, %v8056_v19  ;;  %v2375_v24 = vpop.f32.mrb[81].mxu1  ;;  %v2446_v11 = vpop.f32.mrb[69].mxu0 }
 0x7a3   :  { %v2450_v13 = vadd.f32 %v2375_v24, %v8059_v40  ;;  %v2452_v35 = vadd.f32 %v2446_v11, %v8062_v38 }
 0x7a4   :  { %v5092_v48 = vmul.f32 -1.442695, %v2449_v7 }
 0x7a5   :  { %v5093_v54 = vmul.f32 -1.442695, %v2450_v13  ;;  %v5094_v56 = vmul.f32 -1.442695, %v2452_v35 }
 0x7a6   :  { %6722 = vpow2.f32 %v5092_v48 }
 0x7a7   :  { %6724 = vpow2.f32 %v5093_v54 }
 0x7a8   :  { %6726 = vpow2.f32 %v5094_v56 }
 0x7a9   :  { %6728 = vtanh.f32 %v2451_v14 }
 0x7b0   :  { %v6723_v25 = vpop.eup %6722 }
 0x7b1   :  { %v6725_v43 = vpop.eup %6724  ;;  %v2456_v44 = vadd.f32 1.0, %v6723_v25 }
 0x7b2   :  { %v2462_v28 = vadd.f32 1.0, %v6725_v43  ;;  %v6727_v47 = vpop.eup %6726 }
 0x7b3   :  { %6730 = vrcp.f32 %v2456_v44  ;;  %v6729_v19 = vpop.eup %6728  ;;  %v2469_v30 = vadd.f32 1.0, %v6727_v47 }
 0x7b4   :  { %6732 = vrcp.f32 %v2462_v28 }
 0x7b5   :  { %6734 = vrcp.f32 %v2469_v30 }
 0x7bd   :  { %v6731_v2 = vpop.eup %6730 }
 0x7be   :  { %v6733_v9 = vpop.eup %6732  ;;  %v2473_v40 = vmul.f32 %v6731_v2, %v6729_v19 }
 0x7bf   :  { %v2472_v38 = vmul.f32 %v6733_v9, %v8240_v57  ;;  %v6735_v39 = vpop.eup %6734 }
 0x7c1   :  { %v8282_v6 = vadd.f32 %v2473_v40, %v2472_v38 }
 0x7c3   :  { %6736 = vtanh.f32 %v8282_v6 }
 0x7cd   :  { %v6737_v34 = vpop.eup %6736 }
 0x7ce   :  { %v2476_v7 = vmul.f32 %v6737_v34, %v6735_v39 }
 0x7d0   :  { %2542 = vmatmul.mubr.f32.vlgmr.msra.gmra.mrb[82].mxu1 %v2476_v7  ;;  %2613 = vmatmul.mubr.f32.vlgmr.msra.gmra.mrb[70].mxu0 %v2476_v7 }
 0x7d1   :  { %5489 = vmatpush1.bf16.msra.mxu1 %v7873_v17  ;;  %5521 = vmatpush1.bf16.msra.mxu0 %v7967_v3 }
 0x7d2   :  { %5491 = vmatprep.subr.bf16.mxu1 %v7875_v45  ;;  %5523 = vmatprep.subr.bf16.mxu0 %v7969_v51 }
 0x7d3   :  { %2711 = vmatprep.mubr.f32.mxu1 %v8978_v29  ;;  %2782 = vmatprep.mubr.f32.mxu0 %v8978_v29 }
 0x7d5   :  { %5493 = vmatpush1.bf16.msra.mxu1 %v7879_v22  ;;  %5525 = vmatpush1.bf16.msra.mxu0 %v7973_v16 }
 0x7d6   :  { %5495 = vmatprep.subr.bf16.mxu1 %v7883_v8  ;;  %5527 = vmatprep.subr.bf16.mxu0 %v7977_v23 }
 0x7d9   :  { %5497 = vmatpush1.bf16.msra.mxu1 %v7891_v12  ;;  %5529 = vmatpush1.bf16.msra.mxu0 %v7980_v0 }
 0x7da   :  { %5499 = vmatprep.subr.bf16.mxu1 %v7893_v20  ;;  %5531 = vmatprep.subr.bf16.mxu0 %v7983_v5 }
 0x7dd   :  { %5501 = vmatpush1.bf16.msra.mxu1 %v7899_v42  ;;  %5533 = vmatpush1.bf16.msra.mxu0 %v7986_v21 }
 0x7de   :  { %5503 = vmatprep.subr.bf16.mxu1 %v7903_v52  ;;  %5535 = vmatprep.subr.bf16.mxu0 %v7989_v46 }
 0x7e1   :  { %5505 = vmatpush1.bf16.msra.mxu1 %v7910_v32  ;;  %5537 = vmatpush1.bf16.msra.mxu0 %v7992_v50 }
 0x7e2   :  { %5507 = vmatprep.subr.bf16.mxu1 %v7913_v26  ;;  %5539 = vmatprep.subr.bf16.mxu0 %v7995_v58 }
 0x7e5   :  { %5509 = vmatpush1.bf16.msra.mxu1 %v7919_v59  ;;  %5541 = vmatpush1.bf16.msra.mxu0 %v7998_v15 }
 0x7e6   :  { %5511 = vmatprep.subr.bf16.mxu1 %v7923_v1  ;;  %5543 = vmatprep.subr.bf16.mxu0 %v8001_v10 }
 0x7e9   :  { %5513 = vmatpush1.bf16.msra.mxu1 %v7930_v63  ;;  %5545 = vmatpush1.bf16.msra.mxu0 %v8004_v49 }
 0x7ea   :  { %5515 = vmatprep.subr.bf16.mxu1 %v7933_v4  ;;  %5547 = vmatprep.subr.bf16.mxu0 %v8007_v18 }
 0x7ed   :  { %5517 = vmatpush1.bf16.msra.mxu1 %v7939_v61  ;;  %5549 = vmatpush1.bf16.msra.mxu0 %v8010_v60 }
 0x7ee   :  { %5551 = vmatprep.subr.bf16.mxu1 %v7862_v62  ;;  %5583 = vmatprep.subr.bf16.mxu0 %v7943_v41 }
 0x8a3   :  { %v2543_v57 = vpop.f32.mrb[82].mxu1  ;;  %v2614_v14 = vpop.f32.mrb[70].mxu0 }
 0x8a4   :  { %v2619_v24 = vadd.f32 %v2543_v57, %v8065_v53  ;;  %v2621_v11 = vadd.f32 %v2614_v14, %v8068_v55  ;;  %v2545_v13 = vpop.f32.mrb[83].mxu1  ;;  %v2616_v35 = vpop.f32.mrb[71].mxu0 }
 0x8a5   :  { %v2620_v48 = vadd.f32 %v2545_v13, %v8071_v37  ;;  %v2622_v54 = vadd.f32 %v2616_v35, %v8074_v27  ;;  %v8979_v13 = vld [vmem:[#allocation8_spill] sm:$0xff] }
 0x8a6   :  { %v5095_v56 = vmul.f32 -1.442695, %v2619_v24 }
 0x8a7   :  { %v5096_v25 = vmul.f32 -1.442695, %v2620_v48  ;;  %v5097_v43 = vmul.f32 -1.442695, %v2622_v54  ;;  %v8980_v48 = vld [vmem:[#allocation9_spill] sm:$0xff] }
 0x8a8   :  { %6738 = vpow2.f32 %v5095_v56 }
 0x8a9   :  { %6740 = vpow2.f32 %v5096_v25 }
 0x8aa   :  { %6742 = vpow2.f32 %v5097_v43 }
 0x8ab   :  { %6744 = vtanh.f32 %v2621_v11 }
 0x8b2   :  { %v6739_v44 = vpop.eup %6738 }
 0x8b3   :  { %v6741_v28 = vpop.eup %6740  ;;  %v2626_v47 = vadd.f32 1.0, %v6739_v44 }
 0x8b4   :  { %v2632_v19 = vadd.f32 1.0, %v6741_v28  ;;  %v6743_v53 = vpop.eup %6742 }
 0x8b5   :  { %6746 = vrcp.f32 %v2626_v47  ;;  %v6745_v55 = vpop.eup %6744  ;;  %v2639_v40 = vadd.f32 1.0, %v6743_v53 }
 0x8b6   :  { %6748 = vrcp.f32 %v2632_v19 }
 0x8b7   :  { %6750 = vrcp.f32 %v2639_v40 }
 0x8bf   :  { %v6747_v2 = vpop.eup %6746 }
 0x8c0   :  { %v6749_v9 = vpop.eup %6748  ;;  %v2643_v37 = vmul.f32 %v6747_v2, %v6745_v55 }
 0x8c1   :  { %v2642_v27 = vmul.f32 %v6749_v9, %v8282_v6  ;;  %v6751_v38 = vpop.eup %6750 }
 0x8c3   :  { %v8324_v30 = vadd.f32 %v2643_v37, %v2642_v27 }
 0x8c5   :  { %6752 = vtanh.f32 %v8324_v30 }
 0x8cf   :  { %v6753_v39 = vpop.eup %6752 }
 0x8d0   :  { %v2646_v34 = vmul.f32 %v6753_v39, %v6751_v38 }
 0x8d2   :  { %2712 = vmatmul.mubr.f32.vlgmr.msra.gmra.mrb[84].mxu1 %v2646_v34  ;;  %2783 = vmatmul.mubr.f32.vlgmr.msra.gmra.mrb[72].mxu0 %v2646_v34 }
 0x8d3   :  { %5553 = vmatpush1.bf16.msra.mxu1 %v7873_v17  ;;  %5585 = vmatpush1.bf16.msra.mxu0 %v7967_v3 }
 0x8d4   :  { %5555 = vmatprep.subr.bf16.mxu1 %v7875_v45  ;;  %5587 = vmatprep.subr.bf16.mxu0 %v7969_v51 }
 0x8d5   :  { %2881 = vmatprep.mubr.f32.mxu1 %v8978_v29  ;;  %2952 = vmatprep.mubr.f32.mxu0 %v8978_v29 }
 0x8d7   :  { %5557 = vmatpush1.bf16.msra.mxu1 %v7879_v22  ;;  %5589 = vmatpush1.bf16.msra.mxu0 %v7973_v16 }
 0x8d8   :  { %5559 = vmatprep.subr.bf16.mxu1 %v7883_v8  ;;  %5591 = vmatprep.subr.bf16.mxu0 %v7977_v23 }
 0x8db   :  { %5561 = vmatpush1.bf16.msra.mxu1 %v7891_v12  ;;  %5593 = vmatpush1.bf16.msra.mxu0 %v7980_v0 }
 0x8dc   :  { %5563 = vmatprep.subr.bf16.mxu1 %v7893_v20  ;;  %5595 = vmatprep.subr.bf16.mxu0 %v7983_v5 }
 0x8df   :  { %5565 = vmatpush1.bf16.msra.mxu1 %v7899_v42  ;;  %5597 = vmatpush1.bf16.msra.mxu0 %v7986_v21 }
 0x8e0   :  { %5567 = vmatprep.subr.bf16.mxu1 %v7903_v52  ;;  %5599 = vmatprep.subr.bf16.mxu0 %v7989_v46 }
 0x8e3   :  { %5569 = vmatpush1.bf16.msra.mxu1 %v7910_v32  ;;  %5601 = vmatpush1.bf16.msra.mxu0 %v7992_v50 }
 0x8e4   :  { %5571 = vmatprep.subr.bf16.mxu1 %v7913_v26  ;;  %5603 = vmatprep.subr.bf16.mxu0 %v7995_v58 }
 0x8e7   :  { %5573 = vmatpush1.bf16.msra.mxu1 %v7919_v59  ;;  %5605 = vmatpush1.bf16.msra.mxu0 %v7998_v15 }
 0x8e8   :  { %5575 = vmatprep.subr.bf16.mxu1 %v7923_v1  ;;  %5607 = vmatprep.subr.bf16.mxu0 %v8001_v10 }
 0x8eb   :  { %5577 = vmatpush1.bf16.msra.mxu1 %v7930_v63  ;;  %5609 = vmatpush1.bf16.msra.mxu0 %v8004_v49 }
 0x8ec   :  { %5579 = vmatprep.subr.bf16.mxu1 %v7933_v4  ;;  %5611 = vmatprep.subr.bf16.mxu0 %v8007_v18 }
 0x8ef   :  { %5581 = vmatpush1.bf16.msra.mxu1 %v7939_v61  ;;  %5613 = vmatpush1.bf16.msra.mxu0 %v8010_v60 }
 0x8f0   :  { %5615 = vmatprep.subr.bf16.mxu1 %v7862_v62  ;;  %5647 = vmatprep.subr.bf16.mxu0 %v7943_v41 }
 0x9a5   :  { %v2713_v6 = vpop.f32.mrb[84].mxu1  ;;  %v2784_v7 = vpop.f32.mrb[72].mxu0 }
 0x9a6   :  { %v2789_v57 = vadd.f32 %v2713_v6, %v8077_v31  ;;  %v2791_v14 = vadd.f32 %v2784_v7, %v8080_v36  ;;  %v2715_v24 = vpop.f32.mrb[85].mxu1  ;;  %v2786_v11 = vpop.f32.mrb[73].mxu0  ;;  %v8981_v6 = vld [vmem:[#allocation10_spill] sm:$0xff] }
 0x9a7   :  { %v2790_v35 = vadd.f32 %v2715_v24, %v8979_v13  ;;  %v2792_v54 = vadd.f32 %v2786_v11, %v8980_v48  ;;  %v8983_v13 = vld [vmem:[#allocation12_spill] sm:$0xff]  ;;  %v8984_v48 = vld [vmem:[#allocation13_spill] sm:$0xff] }
 0x9a8   :  { %v5098_v56 = vmul.f32 -1.442695, %v2789_v57  ;;  %v8982_v57 = vld [vmem:[#allocation11_spill] sm:$0xff] }
 0x9a9   :  { %v5099_v25 = vmul.f32 -1.442695, %v2790_v35  ;;  %v5100_v43 = vmul.f32 -1.442695, %v2792_v54 }
 0x9aa   :  { %6754 = vpow2.f32 %v5098_v56 }
 0x9ab   :  { %6756 = vpow2.f32 %v5099_v25 }
 0x9ac   :  { %6758 = vpow2.f32 %v5100_v43 }
 0x9ad   :  { %6760 = vtanh.f32 %v2791_v14 }
 0x9b4   :  { %v6755_v44 = vpop.eup %6754 }
 0x9b5   :  { %v6757_v28 = vpop.eup %6756  ;;  %v2796_v47 = vadd.f32 1.0, %v6755_v44 }
 0x9b6   :  { %v2802_v19 = vadd.f32 1.0, %v6757_v28  ;;  %v6759_v31 = vpop.eup %6758 }
 0x9b7   :  { %6762 = vrcp.f32 %v2796_v47  ;;  %v6761_v36 = vpop.eup %6760  ;;  %v2809_v9 = vadd.f32 1.0, %v6759_v31 }
 0x9b8   :  { %6764 = vrcp.f32 %v2802_v19 }
 0x9b9   :  { %6766 = vrcp.f32 %v2809_v9 }
 0x9c1   :  { %v6763_v53 = vpop.eup %6762 }
 0x9c2   :  { %v6765_v55 = vpop.eup %6764  ;;  %v2813_v2 = vmul.f32 %v6763_v53, %v6761_v36 }
 0x9c3   :  { %v2812_v37 = vmul.f32 %v6765_v55, %v8324_v30  ;;  %v6767_v27 = vpop.eup %6766 }
 0x9c5   :  { %v8366_v40 = vadd.f32 %v2813_v2, %v2812_v37 }
 0x9c7   :  { %6768 = vtanh.f32 %v8366_v40 }
 0x9d1   :  { %v6769_v38 = vpop.eup %6768 }
 0x9d2   :  { %v2816_v39 = vmul.f32 %v6769_v38, %v6767_v27 }
 0x9d4   :  { %2882 = vmatmul.mubr.f32.vlgmr.msra.gmra.mrb[86].mxu1 %v2816_v39  ;;  %2953 = vmatmul.mubr.f32.vlgmr.msra.gmra.mrb[74].mxu0 %v2816_v39 }
 0x9d5   :  { %5617 = vmatpush1.bf16.msra.mxu1 %v7873_v17  ;;  %5649 = vmatpush1.bf16.msra.mxu0 %v7967_v3 }
 0x9d6   :  { %5619 = vmatprep.subr.bf16.mxu1 %v7875_v45  ;;  %5651 = vmatprep.subr.bf16.mxu0 %v7969_v51 }
 0x9d7   :  { %3051 = vmatprep.mubr.f32.mxu1 %v8978_v29  ;;  %3122 = vmatprep.mubr.f32.mxu0 %v8978_v29 }
 0x9d9   :  { %5621 = vmatpush1.bf16.msra.mxu1 %v7879_v22  ;;  %5653 = vmatpush1.bf16.msra.mxu0 %v7973_v16 }
 0x9da   :  { %5623 = vmatprep.subr.bf16.mxu1 %v7883_v8  ;;  %5655 = vmatprep.subr.bf16.mxu0 %v7977_v23 }
 0x9dd   :  { %5625 = vmatpush1.bf16.msra.mxu1 %v7891_v12  ;;  %5657 = vmatpush1.bf16.msra.mxu0 %v7980_v0 }
 0x9de   :  { %5627 = vmatprep.subr.bf16.mxu1 %v7893_v20  ;;  %5659 = vmatprep.subr.bf16.mxu0 %v7983_v5 }
 0x9e1   :  { %5629 = vmatpush1.bf16.msra.mxu1 %v7899_v42  ;;  %5661 = vmatpush1.bf16.msra.mxu0 %v7986_v21 }
 0x9e2   :  { %5631 = vmatprep.subr.bf16.mxu1 %v7903_v52  ;;  %5663 = vmatprep.subr.bf16.mxu0 %v7989_v46 }
 0x9e5   :  { %5633 = vmatpush1.bf16.msra.mxu1 %v7910_v32  ;;  %5665 = vmatpush1.bf16.msra.mxu0 %v7992_v50 }
 0x9e6   :  { %5635 = vmatprep.subr.bf16.mxu1 %v7913_v26  ;;  %5667 = vmatprep.subr.bf16.mxu0 %v7995_v58 }
 0x9e9   :  { %5637 = vmatpush1.bf16.msra.mxu1 %v7919_v59  ;;  %5669 = vmatpush1.bf16.msra.mxu0 %v7998_v15 }
 0x9ea   :  { %5639 = vmatprep.subr.bf16.mxu1 %v7923_v1  ;;  %5671 = vmatprep.subr.bf16.mxu0 %v8001_v10 }
 0x9ed   :  { %5641 = vmatpush1.bf16.msra.mxu1 %v7930_v63  ;;  %5673 = vmatpush1.bf16.msra.mxu0 %v8004_v49 }
 0x9ee   :  { %5643 = vmatprep.subr.bf16.mxu1 %v7933_v4  ;;  %5675 = vmatprep.subr.bf16.mxu0 %v8007_v18 }
 0x9f1   :  { %5645 = vmatpush1.bf16.msra.mxu1 %v7939_v61  ;;  %5677 = vmatpush1.bf16.msra.mxu0 %v8010_v60 }
 0x9f2   :  { %5679 = vmatprep.subr.bf16.mxu1 %v7862_v62  ;;  %5711 = vmatprep.subr.bf16.mxu0 %v7943_v41 }
 0xaa7   :  { %v2883_v30 = vpop.f32.mrb[86].mxu1  ;;  %v2954_v34 = vpop.f32.mrb[74].mxu0 }
 0xaa8   :  { %v2959_v7 = vadd.f32 %v2883_v30, %v8981_v6  ;;  %v2961_v14 = vadd.f32 %v2954_v34, %v8982_v57  ;;  %v2885_v24 = vpop.f32.mrb[87].mxu1  ;;  %v2956_v11 = vpop.f32.mrb[75].mxu0  ;;  %v8985_v6 = vld [vmem:[#allocation14_spill] sm:$0xff]  ;;  %v8986_v57 = vld [vmem:[#allocation15_spill] sm:$0xff] }
 0xaa9   :  { %v2960_v35 = vadd.f32 %v2885_v24, %v8983_v13  ;;  %v2962_v54 = vadd.f32 %v2956_v11, %v8984_v48  ;;  %v8987_v13 = vld [vmem:[#allocation16_spill] sm:$0xff]  ;;  %v8988_v48 = vld [vmem:[#allocation17_spill] sm:$0xff] }
 0xaaa   :  { %v5101_v56 = vmul.f32 -1.442695, %v2959_v7 }
 0xaab   :  { %v5102_v25 = vmul.f32 -1.442695, %v2960_v35  ;;  %v5103_v43 = vmul.f32 -1.442695, %v2962_v54 }
 0xaac   :  { %6770 = vpow2.f32 %v5101_v56 }
 0xaad   :  { %6772 = vpow2.f32 %v5102_v25 }
 0xaae   :  { %6774 = vpow2.f32 %v5103_v43 }
 0xaaf   :  { %6776 = vtanh.f32 %v2961_v14 }
 0xab6   :  { %v6771_v44 = vpop.eup %6770 }
 0xab7   :  { %v6773_v28 = vpop.eup %6772  ;;  %v2966_v47 = vadd.f32 1.0, %v6771_v44 }
 0xab8   :  { %v2972_v19 = vadd.f32 1.0, %v6773_v28  ;;  %v6775_v31 = vpop.eup %6774 }
 0xab9   :  { %6778 = vrcp.f32 %v2966_v47  ;;  %v6777_v36 = vpop.eup %6776  ;;  %v2979_v9 = vadd.f32 1.0, %v6775_v31 }
 0xaba   :  { %6780 = vrcp.f32 %v2972_v19 }
 0xabb   :  { %6782 = vrcp.f32 %v2979_v9 }
 0xac3   :  { %v6779_v53 = vpop.eup %6778 }
 0xac4   :  { %v6781_v55 = vpop.eup %6780  ;;  %v2983_v2 = vmul.f32 %v6779_v53, %v6777_v36 }
 0xac5   :  { %v2982_v37 = vmul.f32 %v6781_v55, %v8366_v40  ;;  %v6783_v38 = vpop.eup %6782 }
 0xac7   :  { %v8408_v27 = vadd.f32 %v2983_v2, %v2982_v37 }
 0xac9   :  { %6784 = vtanh.f32 %v8408_v27 }
 0xad3   :  { %v6785_v39 = vpop.eup %6784 }
 0xad4   :  { %v2986_v30 = vmul.f32 %v6785_v39, %v6783_v38 }
 0xad6   :  { %3052 = vmatmul.mubr.f32.vlgmr.msra.gmra.mrb[88].mxu1 %v2986_v30  ;;  %3123 = vmatmul.mubr.f32.vlgmr.msra.gmra.mrb[76].mxu0 %v2986_v30 }
 0xad7   :  { %5681 = vmatpush1.bf16.msra.mxu1 %v7873_v17  ;;  %5713 = vmatpush1.bf16.msra.mxu0 %v7967_v3 }
 0xad8   :  { %5683 = vmatprep.subr.bf16.mxu1 %v7875_v45  ;;  %5715 = vmatprep.subr.bf16.mxu0 %v7969_v51 }
 0xad9   :  { %3221 = vmatprep.mubr.f32.mxu1 %v8978_v29  ;;  %3292 = vmatprep.mubr.f32.mxu0 %v8978_v29 }
 0xadb   :  { %5685 = vmatpush1.bf16.msra.mxu1 %v7879_v22  ;;  %5717 = vmatpush1.bf16.msra.mxu0 %v7973_v16 }
 0xadc   :  { %5687 = vmatprep.subr.bf16.mxu1 %v7883_v8  ;;  %5719 = vmatprep.subr.bf16.mxu0 %v7977_v23 }
 0xadf   :  { %5689 = vmatpush1.bf16.msra.mxu1 %v7891_v12  ;;  %5721 = vmatpush1.bf16.msra.mxu0 %v7980_v0 }
 0xae0   :  { %5691 = vmatprep.subr.bf16.mxu1 %v7893_v20  ;;  %5723 = vmatprep.subr.bf16.mxu0 %v7983_v5 }
 0xae3   :  { %5693 = vmatpush1.bf16.msra.mxu1 %v7899_v42  ;;  %5725 = vmatpush1.bf16.msra.mxu0 %v7986_v21 }
 0xae4   :  { %5695 = vmatprep.subr.bf16.mxu1 %v7903_v52  ;;  %5727 = vmatprep.subr.bf16.mxu0 %v7989_v46 }
 0xae7   :  { %5697 = vmatpush1.bf16.msra.mxu1 %v7910_v32  ;;  %5729 = vmatpush1.bf16.msra.mxu0 %v7992_v50 }
 0xae8   :  { %5699 = vmatprep.subr.bf16.mxu1 %v7913_v26  ;;  %5731 = vmatprep.subr.bf16.mxu0 %v7995_v58 }
 0xaeb   :  { %5701 = vmatpush1.bf16.msra.mxu1 %v7919_v59  ;;  %5733 = vmatpush1.bf16.msra.mxu0 %v7998_v15 }
 0xaec   :  { %5703 = vmatprep.subr.bf16.mxu1 %v7923_v1  ;;  %5735 = vmatprep.subr.bf16.mxu0 %v8001_v10 }
 0xaef   :  { %5705 = vmatpush1.bf16.msra.mxu1 %v7930_v63  ;;  %5737 = vmatpush1.bf16.msra.mxu0 %v8004_v49 }
 0xaf0   :  { %5707 = vmatprep.subr.bf16.mxu1 %v7933_v4  ;;  %5739 = vmatprep.subr.bf16.mxu0 %v8007_v18 }
 0xaf3   :  { %5709 = vmatpush1.bf16.msra.mxu1 %v7939_v61  ;;  %5741 = vmatpush1.bf16.msra.mxu0 %v8010_v60 }
 0xaf4   :  { %5743 = vmatprep.subr.bf16.mxu1 %v7862_v62  ;;  %5775 = vmatprep.subr.bf16.mxu0 %v7943_v41 }
 0xba9   :  { %v3053_v40 = vpop.f32.mrb[88].mxu1  ;;  %v3124_v34 = vpop.f32.mrb[76].mxu0 }
 0xbaa   :  { %v3129_v7 = vadd.f32 %v3053_v40, %v8985_v6  ;;  %v3131_v14 = vadd.f32 %v3124_v34, %v8986_v57  ;;  %v3055_v24 = vpop.f32.mrb[89].mxu1  ;;  %v3126_v11 = vpop.f32.mrb[77].mxu0  ;;  %v8989_v6 = vld [vmem:[#allocation18_spill] sm:$0xff]  ;;  %v8990_v57 = vld [vmem:[#allocation19_spill] sm:$0xff] }
 0xbab   :  { %v3130_v35 = vadd.f32 %v3055_v24, %v8987_v13  ;;  %v3132_v54 = vadd.f32 %v3126_v11, %v8988_v48  ;;  %v8991_v13 = vld [vmem:[#allocation20_spill] sm:$0xff]  ;;  %v8992_v48 = vld [vmem:[#allocation21_spill] sm:$0xff] }
 0xbac   :  { %v5104_v56 = vmul.f32 -1.442695, %v3129_v7 }
 0xbad   :  { %v5105_v25 = vmul.f32 -1.442695, %v3130_v35  ;;  %v5106_v43 = vmul.f32 -1.442695, %v3132_v54 }
 0xbae   :  { %6786 = vpow2.f32 %v5104_v56 }
 0xbaf   :  { %6788 = vpow2.f32 %v5105_v25 }
 0xbb0   :  { %6790 = vpow2.f32 %v5106_v43 }
 0xbb1   :  { %6792 = vtanh.f32 %v3131_v14 }
 0xbb8   :  { %v6787_v44 = vpop.eup %6786 }
 0xbb9   :  { %v6789_v28 = vpop.eup %6788  ;;  %v3136_v47 = vadd.f32 1.0, %v6787_v44 }
 0xbba   :  { %v3142_v19 = vadd.f32 1.0, %v6789_v28  ;;  %v6791_v31 = vpop.eup %6790 }
 0xbbb   :  { %6794 = vrcp.f32 %v3136_v47  ;;  %v6793_v36 = vpop.eup %6792  ;;  %v3149_v9 = vadd.f32 1.0, %v6791_v31 }
 0xbbc   :  { %6796 = vrcp.f32 %v3142_v19 }
 0xbbd   :  { %6798 = vrcp.f32 %v3149_v9 }
 0xbc5   :  { %v6795_v53 = vpop.eup %6794 }
 0xbc6   :  { %v6797_v55 = vpop.eup %6796  ;;  %v3153_v2 = vmul.f32 %v6795_v53, %v6793_v36 }
 0xbc7   :  { %v3152_v37 = vmul.f32 %v6797_v55, %v8408_v27  ;;  %v6799_v39 = vpop.eup %6798 }
 0xbc9   :  { %v8450_v38 = vadd.f32 %v3153_v2, %v3152_v37 }
 0xbcb   :  { %6800 = vtanh.f32 %v8450_v38 }
 0xbd5   :  { %v6801_v30 = vpop.eup %6800 }
 0xbd6   :  { %v3156_v40 = vmul.f32 %v6801_v30, %v6799_v39 }
 0xbd8   :  { %3222 = vmatmul.mubr.f32.vlgmr.msra.gmra.mrb[90].mxu1 %v3156_v40  ;;  %3293 = vmatmul.mubr.f32.vlgmr.msra.gmra.mrb[78].mxu0 %v3156_v40 }
 0xbd9   :  { %5745 = vmatpush1.bf16.msra.mxu1 %v7873_v17  ;;  %5777 = vmatpush1.bf16.msra.mxu0 %v7967_v3 }
 0xbda   :  { %5747 = vmatprep.subr.bf16.mxu1 %v7875_v45  ;;  %5779 = vmatprep.subr.bf16.mxu0 %v7969_v51 }
 0xbdb   :  { %3391 = vmatprep.mubr.f32.mxu1 %v8978_v29  ;;  %3462 = vmatprep.mubr.f32.mxu0 %v8978_v29 }
 0xbdd   :  { %5749 = vmatpush1.bf16.msra.mxu1 %v7879_v22  ;;  %5781 = vmatpush1.bf16.msra.mxu0 %v7973_v16 }
 0xbde   :  { %5751 = vmatprep.subr.bf16.mxu1 %v7883_v8  ;;  %5783 = vmatprep.subr.bf16.mxu0 %v7977_v23 }
 0xbe1   :  { %5753 = vmatpush1.bf16.msra.mxu1 %v7891_v12  ;;  %5785 = vmatpush1.bf16.msra.mxu0 %v7980_v0 }
 0xbe2   :  { %5755 = vmatprep.subr.bf16.mxu1 %v7893_v20  ;;  %5787 = vmatprep.subr.bf16.mxu0 %v7983_v5 }
 0xbe5   :  { %5757 = vmatpush1.bf16.msra.mxu1 %v7899_v42  ;;  %5789 = vmatpush1.bf16.msra.mxu0 %v7986_v21 }
 0xbe6   :  { %5759 = vmatprep.subr.bf16.mxu1 %v7903_v52  ;;  %5791 = vmatprep.subr.bf16.mxu0 %v7989_v46 }
 0xbe9   :  { %5761 = vmatpush1.bf16.msra.mxu1 %v7910_v32  ;;  %5793 = vmatpush1.bf16.msra.mxu0 %v7992_v50 }
 0xbea   :  { %5763 = vmatprep.subr.bf16.mxu1 %v7913_v26  ;;  %5795 = vmatprep.subr.bf16.mxu0 %v7995_v58 }
 0xbed   :  { %5765 = vmatpush1.bf16.msra.mxu1 %v7919_v59  ;;  %5797 = vmatpush1.bf16.msra.mxu0 %v7998_v15 }
 0xbee   :  { %5767 = vmatprep.subr.bf16.mxu1 %v7923_v1  ;;  %5799 = vmatprep.subr.bf16.mxu0 %v8001_v10 }
 0xbf1   :  { %5769 = vmatpush1.bf16.msra.mxu1 %v7930_v63  ;;  %5801 = vmatpush1.bf16.msra.mxu0 %v8004_v49 }
 0xbf2   :  { %5771 = vmatprep.subr.bf16.mxu1 %v7933_v4  ;;  %5803 = vmatprep.subr.bf16.mxu0 %v8007_v18 }
 0xbf5   :  { %5773 = vmatpush1.bf16.msra.mxu1 %v7939_v61  ;;  %5805 = vmatpush1.bf16.msra.mxu0 %v8010_v60 }
 0xbf6   :  { %5807 = vmatprep.subr.bf16.mxu1 %v7862_v62  ;;  %5839 = vmatprep.subr.bf16.mxu0 %v7943_v41 }
 0xcab   :  { %v3223_v27 = vpop.f32.mrb[90].mxu1  ;;  %v3294_v34 = vpop.f32.mrb[78].mxu0 }
 0xcac   :  { %v3299_v7 = vadd.f32 %v3223_v27, %v8989_v6  ;;  %v3301_v14 = vadd.f32 %v3294_v34, %v8990_v57  ;;  %v3225_v24 = vpop.f32.mrb[91].mxu1  ;;  %v3296_v11 = vpop.f32.mrb[79].mxu0  ;;  %v8993_v6 = vld [vmem:[#allocation22_spill] sm:$0xff]  ;;  %v8994_v57 = vld [vmem:[#allocation23_spill] sm:$0xff] }
 0xcad   :  { %v3300_v35 = vadd.f32 %v3225_v24, %v8991_v13  ;;  %v3302_v54 = vadd.f32 %v3296_v11, %v8992_v48  ;;  %v8995_v13 = vld [vmem:[#allocation24_spill] sm:$0xff]  ;;  %v8996_v48 = vld [vmem:[#allocation25_spill] sm:$0xff] }
 0xcae   :  { %v5107_v56 = vmul.f32 -1.442695, %v3299_v7 }
 0xcaf   :  { %v5108_v25 = vmul.f32 -1.442695, %v3300_v35  ;;  %v5109_v43 = vmul.f32 -1.442695, %v3302_v54 }
 0xcb0   :  { %6802 = vpow2.f32 %v5107_v56 }
 0xcb1   :  { %6804 = vpow2.f32 %v5108_v25 }
 0xcb2   :  { %6806 = vpow2.f32 %v5109_v43 }
 0xcb3   :  { %6808 = vtanh.f32 %v3301_v14 }
 0xcba   :  { %v6803_v44 = vpop.eup %6802 }
 0xcbb   :  { %v6805_v28 = vpop.eup %6804  ;;  %v3306_v47 = vadd.f32 1.0, %v6803_v44 }
 0xcbc   :  { %v3312_v19 = vadd.f32 1.0, %v6805_v28  ;;  %v6807_v31 = vpop.eup %6806 }
 0xcbd   :  { %6810 = vrcp.f32 %v3306_v47  ;;  %v6809_v36 = vpop.eup %6808  ;;  %v3319_v9 = vadd.f32 1.0, %v6807_v31 }
 0xcbe   :  { %6812 = vrcp.f32 %v3312_v19 }
 0xcbf   :  { %6814 = vrcp.f32 %v3319_v9 }
 0xcc7   :  { %v6811_v53 = vpop.eup %6810 }
 0xcc8   :  { %v6813_v55 = vpop.eup %6812  ;;  %v3323_v2 = vmul.f32 %v6811_v53, %v6809_v36 }
 0xcc9   :  { %v3322_v37 = vmul.f32 %v6813_v55, %v8450_v38  ;;  %v6815_v30 = vpop.eup %6814 }
 0xccb   :  { %v8492_v39 = vadd.f32 %v3323_v2, %v3322_v37 }
 0xccd   :  { %6816 = vtanh.f32 %v8492_v39 }
 0xcd7   :  { %v6817_v40 = vpop.eup %6816 }
 0xcd8   :  { %v3326_v27 = vmul.f32 %v6817_v40, %v6815_v30 }
 0xcda   :  { %3392 = vmatmul.mubr.f32.vlgmr.msra.gmra.mrb[92].mxu1 %v3326_v27  ;;  %3463 = vmatmul.mubr.f32.vlgmr.msra.gmra.mrb[80].mxu0 %v3326_v27 }
 0xcdb   :  { %5809 = vmatpush1.bf16.msra.mxu1 %v7873_v17  ;;  %5841 = vmatpush1.bf16.msra.mxu0 %v7967_v3 }
 0xcdc   :  { %5811 = vmatprep.subr.bf16.mxu1 %v7875_v45  ;;  %5843 = vmatprep.subr.bf16.mxu0 %v7969_v51 }
 0xcdd   :  { %3561 = vmatprep.mubr.f32.mxu1 %v8978_v29  ;;  %3632 = vmatprep.mubr.f32.mxu0 %v8978_v29 }
 0xcdf   :  { %5813 = vmatpush1.bf16.msra.mxu1 %v7879_v22  ;;  %5845 = vmatpush1.bf16.msra.mxu0 %v7973_v16 }
 0xce0   :  { %5815 = vmatprep.subr.bf16.mxu1 %v7883_v8  ;;  %5847 = vmatprep.subr.bf16.mxu0 %v7977_v23 }
 0xce3   :  { %5817 = vmatpush1.bf16.msra.mxu1 %v7891_v12  ;;  %5849 = vmatpush1.bf16.msra.mxu0 %v7980_v0 }
 0xce4   :  { %5819 = vmatprep.subr.bf16.mxu1 %v7893_v20  ;;  %5851 = vmatprep.subr.bf16.mxu0 %v7983_v5 }
 0xce7   :  { %5821 = vmatpush1.bf16.msra.mxu1 %v7899_v42  ;;  %5853 = vmatpush1.bf16.msra.mxu0 %v7986_v21 }
 0xce8   :  { %5823 = vmatprep.subr.bf16.mxu1 %v7903_v52  ;;  %5855 = vmatprep.subr.bf16.mxu0 %v7989_v46 }
 0xceb   :  { %5825 = vmatpush1.bf16.msra.mxu1 %v7910_v32  ;;  %5857 = vmatpush1.bf16.msra.mxu0 %v7992_v50 }
 0xcec   :  { %5827 = vmatprep.subr.bf16.mxu1 %v7913_v26  ;;  %5859 = vmatprep.subr.bf16.mxu0 %v7995_v58 }
 0xcef   :  { %5829 = vmatpush1.bf16.msra.mxu1 %v7919_v59  ;;  %5861 = vmatpush1.bf16.msra.mxu0 %v7998_v15 }
 0xcf0   :  { %5831 = vmatprep.subr.bf16.mxu1 %v7923_v1  ;;  %5863 = vmatprep.subr.bf16.mxu0 %v8001_v10 }
 0xcf3   :  { %5833 = vmatpush1.bf16.msra.mxu1 %v7930_v63  ;;  %5865 = vmatpush1.bf16.msra.mxu0 %v8004_v49 }
 0xcf4   :  { %5835 = vmatprep.subr.bf16.mxu1 %v7933_v4  ;;  %5867 = vmatprep.subr.bf16.mxu0 %v8007_v18 }
 0xcf7   :  { %5837 = vmatpush1.bf16.msra.mxu1 %v7939_v61  ;;  %5869 = vmatpush1.bf16.msra.mxu0 %v8010_v60 }
 0xcf8   :  { %5871 = vmatprep.subr.bf16.mxu1 %v7862_v62  ;;  %5903 = vmatprep.subr.bf16.mxu0 %v7943_v41 }
 0xdad   :  { %v3393_v38 = vpop.f32.mrb[92].mxu1  ;;  %v3464_v34 = vpop.f32.mrb[80].mxu0 }
 0xdae   :  { %v3469_v7 = vadd.f32 %v3393_v38, %v8993_v6  ;;  %v3471_v14 = vadd.f32 %v3464_v34, %v8994_v57  ;;  %v3395_v24 = vpop.f32.mrb[93].mxu1  ;;  %v3466_v11 = vpop.f32.mrb[81].mxu0  ;;  %v8997_v6 = vld [vmem:[#allocation26_spill] sm:$0xff]  ;;  %v8998_v57 = vld [vmem:[#allocation27_spill] sm:$0xff] }
 0xdaf   :  { %v3470_v35 = vadd.f32 %v3395_v24, %v8995_v13  ;;  %v3472_v54 = vadd.f32 %v3466_v11, %v8996_v48  ;;  %v8999_v13 = vld [vmem:[#allocation28_spill] sm:$0xff]  ;;  %v9000_v48 = vld [vmem:[#allocation29_spill] sm:$0xff] }
 0xdb0   :  { %v5110_v56 = vmul.f32 -1.442695, %v3469_v7 }
 0xdb1   :  { %v5111_v25 = vmul.f32 -1.442695, %v3470_v35  ;;  %v5112_v43 = vmul.f32 -1.442695, %v3472_v54 }
 0xdb2   :  { %6818 = vpow2.f32 %v5110_v56 }
 0xdb3   :  { %6820 = vpow2.f32 %v5111_v25 }
 0xdb4   :  { %6822 = vpow2.f32 %v5112_v43 }
 0xdb5   :  { %6824 = vtanh.f32 %v3471_v14 }
 0xdbc   :  { %v6819_v44 = vpop.eup %6818 }
 0xdbd   :  { %v6821_v28 = vpop.eup %6820  ;;  %v3476_v47 = vadd.f32 1.0, %v6819_v44 }
 0xdbe   :  { %v3482_v19 = vadd.f32 1.0, %v6821_v28  ;;  %v6823_v31 = vpop.eup %6822 }
 0xdbf   :  { %6826 = vrcp.f32 %v3476_v47  ;;  %v6825_v36 = vpop.eup %6824  ;;  %v3489_v9 = vadd.f32 1.0, %v6823_v31 }
 0xdc0   :  { %6828 = vrcp.f32 %v3482_v19 }
 0xdc1   :  { %6830 = vrcp.f32 %v3489_v9 }
 0xdc9   :  { %v6827_v53 = vpop.eup %6826 }
 0xdca   :  { %v6829_v55 = vpop.eup %6828  ;;  %v3493_v2 = vmul.f32 %v6827_v53, %v6825_v36 }
 0xdcb   :  { %v3492_v37 = vmul.f32 %v6829_v55, %v8492_v39  ;;  %v6831_v40 = vpop.eup %6830 }
 0xdcd   :  { %v8534_v30 = vadd.f32 %v3493_v2, %v3492_v37 }
 0xdcf   :  { %6832 = vtanh.f32 %v8534_v30 }
 0xdd9   :  { %v6833_v27 = vpop.eup %6832 }
 0xdda   :  { %v3496_v38 = vmul.f32 %v6833_v27, %v6831_v40 }
 0xddc   :  { %3562 = vmatmul.mubr.f32.vlgmr.msra.gmra.mrb[94].mxu1 %v3496_v38  ;;  %3633 = vmatmul.mubr.f32.vlgmr.msra.gmra.mrb[82].mxu0 %v3496_v38 }
 0xddd   :  { %5873 = vmatpush1.bf16.msra.mxu1 %v7873_v17  ;;  %5905 = vmatpush1.bf16.msra.mxu0 %v7967_v3 }
 0xdde   :  { %5875 = vmatprep.subr.bf16.mxu1 %v7875_v45  ;;  %5907 = vmatprep.subr.bf16.mxu0 %v7969_v51 }
 0xddf   :  { %3731 = vmatprep.mubr.f32.mxu1 %v8978_v29  ;;  %3802 = vmatprep.mubr.f32.mxu0 %v8978_v29 }
 0xde1   :  { %5877 = vmatpush1.bf16.msra.mxu1 %v7879_v22  ;;  %5909 = vmatpush1.bf16.msra.mxu0 %v7973_v16 }
 0xde2   :  { %5879 = vmatprep.subr.bf16.mxu1 %v7883_v8  ;;  %5911 = vmatprep.subr.bf16.mxu0 %v7977_v23 }
 0xde5   :  { %5881 = vmatpush1.bf16.msra.mxu1 %v7891_v12  ;;  %5913 = vmatpush1.bf16.msra.mxu0 %v7980_v0 }
 0xde6   :  { %5883 = vmatprep.subr.bf16.mxu1 %v7893_v20  ;;  %5915 = vmatprep.subr.bf16.mxu0 %v7983_v5 }
 0xde9   :  { %5885 = vmatpush1.bf16.msra.mxu1 %v7899_v42  ;;  %5917 = vmatpush1.bf16.msra.mxu0 %v7986_v21 }
 0xdea   :  { %5887 = vmatprep.subr.bf16.mxu1 %v7903_v52  ;;  %5919 = vmatprep.subr.bf16.mxu0 %v7989_v46 }
 0xded   :  { %5889 = vmatpush1.bf16.msra.mxu1 %v7910_v32  ;;  %5921 = vmatpush1.bf16.msra.mxu0 %v7992_v50 }
 0xdee   :  { %5891 = vmatprep.subr.bf16.mxu1 %v7913_v26  ;;  %5923 = vmatprep.subr.bf16.mxu0 %v7995_v58 }
 0xdf1   :  { %5893 = vmatpush1.bf16.msra.mxu1 %v7919_v59  ;;  %5925 = vmatpush1.bf16.msra.mxu0 %v7998_v15 }
 0xdf2   :  { %5895 = vmatprep.subr.bf16.mxu1 %v7923_v1  ;;  %5927 = vmatprep.subr.bf16.mxu0 %v8001_v10 }
 0xdf5   :  { %5897 = vmatpush1.bf16.msra.mxu1 %v7930_v63  ;;  %5929 = vmatpush1.bf16.msra.mxu0 %v8004_v49 }
 0xdf6   :  { %5899 = vmatprep.subr.bf16.mxu1 %v7933_v4  ;;  %5931 = vmatprep.subr.bf16.mxu0 %v8007_v18 }
 0xdf9   :  { %5901 = vmatpush1.bf16.msra.mxu1 %v7939_v61  ;;  %5933 = vmatpush1.bf16.msra.mxu0 %v8010_v60 }
 0xdfa   :  { %5935 = vmatprep.subr.bf16.mxu1 %v7862_v62  ;;  %5967 = vmatprep.subr.bf16.mxu0 %v7943_v41 }
 0xeaf   :  { %v3563_v39 = vpop.f32.mrb[94].mxu1  ;;  %v3634_v34 = vpop.f32.mrb[82].mxu0 }
 0xeb0   :  { %v3639_v7 = vadd.f32 %v3563_v39, %v8997_v6  ;;  %v3641_v14 = vadd.f32 %v3634_v34, %v8998_v57  ;;  %v3565_v24 = vpop.f32.mrb[95].mxu1  ;;  %v3636_v11 = vpop.f32.mrb[83].mxu0  ;;  %v9001_v6 = vld [vmem:[#allocation30_spill] sm:$0xff]  ;;  %v9002_v57 = vld [vmem:[#allocation31_spill] sm:$0xff] }
 0xeb1   :  { %v3640_v35 = vadd.f32 %v3565_v24, %v8999_v13  ;;  %v3642_v54 = vadd.f32 %v3636_v11, %v9000_v48  ;;  %v9003_v13 = vld [vmem:[#allocation32_spill] sm:$0xff]  ;;  %v9004_v48 = vld [vmem:[#allocation33_spill] sm:$0xff] }
 0xeb2   :  { %v5113_v56 = vmul.f32 -1.442695, %v3639_v7 }
 0xeb3   :  { %v5114_v25 = vmul.f32 -1.442695, %v3640_v35  ;;  %v5115_v43 = vmul.f32 -1.442695, %v3642_v54 }
 0xeb4   :  { %6834 = vpow2.f32 %v5113_v56 }
 0xeb5   :  { %6836 = vpow2.f32 %v5114_v25 }
 0xeb6   :  { %6838 = vpow2.f32 %v5115_v43 }
 0xeb7   :  { %6840 = vtanh.f32 %v3641_v14 }
 0xebe   :  { %v6835_v44 = vpop.eup %6834 }
 0xebf   :  { %v6837_v28 = vpop.eup %6836  ;;  %v3646_v47 = vadd.f32 1.0, %v6835_v44 }
 0xec0   :  { %v3652_v19 = vadd.f32 1.0, %v6837_v28  ;;  %v6839_v31 = vpop.eup %6838 }
 0xec1   :  { %6842 = vrcp.f32 %v3646_v47  ;;  %v6841_v36 = vpop.eup %6840  ;;  %v3659_v9 = vadd.f32 1.0, %v6839_v31 }
 0xec2   :  { %6844 = vrcp.f32 %v3652_v19 }
 0xec3   :  { %6846 = vrcp.f32 %v3659_v9 }
 0xecb   :  { %v6843_v53 = vpop.eup %6842 }
 0xecc   :  { %v6845_v55 = vpop.eup %6844  ;;  %v3663_v2 = vmul.f32 %v6843_v53, %v6841_v36 }
 0xecd   :  { %v3662_v37 = vmul.f32 %v6845_v55, %v8534_v30  ;;  %v6847_v27 = vpop.eup %6846 }
 0xecf   :  { %v8576_v40 = vadd.f32 %v3663_v2, %v3662_v37 }
 0xed1   :  { %6848 = vtanh.f32 %v8576_v40 }
 0xedb   :  { %v6849_v38 = vpop.eup %6848 }
 0xedc   :  { %v3666_v39 = vmul.f32 %v6849_v38, %v6847_v27 }
 0xede   :  { %3732 = vmatmul.mubr.f32.vlgmr.msra.gmra.mrb[96].mxu1 %v3666_v39  ;;  %3803 = vmatmul.mubr.f32.vlgmr.msra.gmra.mrb[84].mxu0 %v3666_v39 }
 0xedf   :  { %5937 = vmatpush1.bf16.msra.mxu1 %v7873_v17  ;;  %5969 = vmatpush1.bf16.msra.mxu0 %v7967_v3 }
 0xee0   :  { %5939 = vmatprep.subr.bf16.mxu1 %v7875_v45  ;;  %5971 = vmatprep.subr.bf16.mxu0 %v7969_v51 }
 0xee1   :  { %3901 = vmatprep.mubr.f32.mxu1 %v8978_v29  ;;  %3972 = vmatprep.mubr.f32.mxu0 %v8978_v29 }
 0xee3   :  { %5941 = vmatpush1.bf16.msra.mxu1 %v7879_v22  ;;  %5973 = vmatpush1.bf16.msra.mxu0 %v7973_v16 }
 0xee4   :  { %5943 = vmatprep.subr.bf16.mxu1 %v7883_v8  ;;  %5975 = vmatprep.subr.bf16.mxu0 %v7977_v23 }
 0xee7   :  { %5945 = vmatpush1.bf16.msra.mxu1 %v7891_v12  ;;  %5977 = vmatpush1.bf16.msra.mxu0 %v7980_v0 }
 0xee8   :  { %5947 = vmatprep.subr.bf16.mxu1 %v7893_v20  ;;  %5979 = vmatprep.subr.bf16.mxu0 %v7983_v5 }
 0xeeb   :  { %5949 = vmatpush1.bf16.msra.mxu1 %v7899_v42  ;;  %5981 = vmatpush1.bf16.msra.mxu0 %v7986_v21 }
 0xeec   :  { %5951 = vmatprep.subr.bf16.mxu1 %v7903_v52  ;;  %5983 = vmatprep.subr.bf16.mxu0 %v7989_v46 }
 0xeef   :  { %5953 = vmatpush1.bf16.msra.mxu1 %v7910_v32  ;;  %5985 = vmatpush1.bf16.msra.mxu0 %v7992_v50 }
 0xef0   :  { %5955 = vmatprep.subr.bf16.mxu1 %v7913_v26  ;;  %5987 = vmatprep.subr.bf16.mxu0 %v7995_v58 }
 0xef3   :  { %5957 = vmatpush1.bf16.msra.mxu1 %v7919_v59  ;;  %5989 = vmatpush1.bf16.msra.mxu0 %v7998_v15 }
 0xef4   :  { %5959 = vmatprep.subr.bf16.mxu1 %v7923_v1  ;;  %5991 = vmatprep.subr.bf16.mxu0 %v8001_v10 }
 0xef7   :  { %5961 = vmatpush1.bf16.msra.mxu1 %v7930_v63  ;;  %5993 = vmatpush1.bf16.msra.mxu0 %v8004_v49 }
 0xef8   :  { %5963 = vmatprep.subr.bf16.mxu1 %v7933_v4  ;;  %5995 = vmatprep.subr.bf16.mxu0 %v8007_v18 }
 0xefb   :  { %5965 = vmatpush1.bf16.msra.mxu1 %v7939_v61  ;;  %5997 = vmatpush1.bf16.msra.mxu0 %v8010_v60 }
 0xefc   :  { %5999 = vmatprep.subr.bf16.mxu1 %v7862_v62  ;;  %6031 = vmatprep.subr.bf16.mxu0 %v7943_v41 }
 0xfb1   :  { %v3733_v30 = vpop.f32.mrb[96].mxu1  ;;  %v3804_v34 = vpop.f32.mrb[84].mxu0 }
 0xfb2   :  { %v3809_v7 = vadd.f32 %v3733_v30, %v9001_v6  ;;  %v3811_v14 = vadd.f32 %v3804_v34, %v9002_v57  ;;  %v3735_v24 = vpop.f32.mrb[97].mxu1  ;;  %v3806_v11 = vpop.f32.mrb[85].mxu0  ;;  %v9005_v6 = vld [vmem:[#allocation34_spill] sm:$0xff]  ;;  %v9006_v57 = vld [vmem:[#allocation35_spill] sm:$0xff] }
 0xfb3   :  { %v3810_v35 = vadd.f32 %v3735_v24, %v9003_v13  ;;  %v3812_v54 = vadd.f32 %v3806_v11, %v9004_v48  ;;  %v9007_v13 = vld [vmem:[#allocation36_spill] sm:$0xff]  ;;  %v9008_v48 = vld [vmem:[#allocation37_spill] sm:$0xff] }
 0xfb4   :  { %v5116_v56 = vmul.f32 -1.442695, %v3809_v7 }
 0xfb5   :  { %v5117_v25 = vmul.f32 -1.442695, %v3810_v35  ;;  %v5118_v43 = vmul.f32 -1.442695, %v3812_v54 }
 0xfb6   :  { %6850 = vpow2.f32 %v5116_v56 }
 0xfb7   :  { %6852 = vpow2.f32 %v5117_v25 }
 0xfb8   :  { %6854 = vpow2.f32 %v5118_v43 }
 0xfb9   :  { %6856 = vtanh.f32 %v3811_v14 }
 0xfc0   :  { %v6851_v44 = vpop.eup %6850 }
 0xfc1   :  { %v6853_v28 = vpop.eup %6852  ;;  %v3816_v47 = vadd.f32 1.0, %v6851_v44 }
 0xfc2   :  { %v3822_v19 = vadd.f32 1.0, %v6853_v28  ;;  %v6855_v31 = vpop.eup %6854 }
 0xfc3   :  { %6858 = vrcp.f32 %v3816_v47  ;;  %v6857_v36 = vpop.eup %6856  ;;  %v3829_v9 = vadd.f32 1.0, %v6855_v31 }
 0xfc4   :  { %6860 = vrcp.f32 %v3822_v19 }
 0xfc5   :  { %6862 = vrcp.f32 %v3829_v9 }
 0xfcd   :  { %v6859_v53 = vpop.eup %6858 }
 0xfce   :  { %v6861_v55 = vpop.eup %6860  ;;  %v3833_v2 = vmul.f32 %v6859_v53, %v6857_v36 }
 0xfcf   :  { %v3832_v37 = vmul.f32 %v6861_v55, %v8576_v40  ;;  %v6863_v38 = vpop.eup %6862 }
 0xfd1   :  { %v8618_v27 = vadd.f32 %v3833_v2, %v3832_v37 }
 0xfd3   :  { %6864 = vtanh.f32 %v8618_v27 }
 0xfdd   :  { %v6865_v39 = vpop.eup %6864 }
 0xfde   :  { %v3836_v30 = vmul.f32 %v6865_v39, %v6863_v38 }
 0xfe0   :  { %3902 = vmatmul.mubr.f32.vlgmr.msra.gmra.mrb[98].mxu1 %v3836_v30  ;;  %3973 = vmatmul.mubr.f32.vlgmr.msra.gmra.mrb[86].mxu0 %v3836_v30 }
 0xfe1   :  { %6001 = vmatpush1.bf16.msra.mxu1 %v7873_v17  ;;  %6033 = vmatpush1.bf16.msra.mxu0 %v7967_v3 }
 0xfe2   :  { %6003 = vmatprep.subr.bf16.mxu1 %v7875_v45  ;;  %6035 = vmatprep.subr.bf16.mxu0 %v7969_v51 }
 0xfe3   :  { %4071 = vmatprep.mubr.f32.mxu1 %v8978_v29  ;;  %4142 = vmatprep.mubr.f32.mxu0 %v8978_v29 }
 0xfe5   :  { %6005 = vmatpush1.bf16.msra.mxu1 %v7879_v22  ;;  %6037 = vmatpush1.bf16.msra.mxu0 %v7973_v16 }
 0xfe6   :  { %6007 = vmatprep.subr.bf16.mxu1 %v7883_v8  ;;  %6039 = vmatprep.subr.bf16.mxu0 %v7977_v23 }
 0xfe9   :  { %6009 = vmatpush1.bf16.msra.mxu1 %v7891_v12  ;;  %6041 = vmatpush1.bf16.msra.mxu0 %v7980_v0 }
 0xfea   :  { %6011 = vmatprep.subr.bf16.mxu1 %v7893_v20  ;;  %6043 = vmatprep.subr.bf16.mxu0 %v7983_v5 }
 0xfed   :  { %6013 = vmatpush1.bf16.msra.mxu1 %v7899_v42  ;;  %6045 = vmatpush1.bf16.msra.mxu0 %v7986_v21 }
 0xfee   :  { %6015 = vmatprep.subr.bf16.mxu1 %v7903_v52  ;;  %6047 = vmatprep.subr.bf16.mxu0 %v7989_v46 }
 0xff1   :  { %6017 = vmatpush1.bf16.msra.mxu1 %v7910_v32  ;;  %6049 = vmatpush1.bf16.msra.mxu0 %v7992_v50 }
 0xff2   :  { %6019 = vmatprep.subr.bf16.mxu1 %v7913_v26  ;;  %6051 = vmatprep.subr.bf16.mxu0 %v7995_v58 }
 0xff5   :  { %6021 = vmatpush1.bf16.msra.mxu1 %v7919_v59  ;;  %6053 = vmatpush1.bf16.msra.mxu0 %v7998_v15 }
 0xff6   :  { %6023 = vmatprep.subr.bf16.mxu1 %v7923_v1  ;;  %6055 = vmatprep.subr.bf16.mxu0 %v8001_v10 }
 0xff9   :  { %6025 = vmatpush1.bf16.msra.mxu1 %v7930_v63  ;;  %6057 = vmatpush1.bf16.msra.mxu0 %v8004_v49 }
 0xffa   :  { %6027 = vmatprep.subr.bf16.mxu1 %v7933_v4  ;;  %6059 = vmatprep.subr.bf16.mxu0 %v8007_v18 }
 0xffd   :  { %6029 = vmatpush1.bf16.msra.mxu1 %v7939_v61  ;;  %6061 = vmatpush1.bf16.msra.mxu0 %v8010_v60 }
 0xffe   :  { %6063 = vmatprep.subr.bf16.mxu1 %v7862_v62  ;;  %6095 = vmatprep.subr.bf16.mxu0 %v7943_v41 }
0x10b3   :  { %v3903_v40 = vpop.f32.mrb[98].mxu1  ;;  %v3974_v34 = vpop.f32.mrb[86].mxu0 }
0x10b4   :  { %v3979_v7 = vadd.f32 %v3903_v40, %v9005_v6  ;;  %v3981_v14 = vadd.f32 %v3974_v34, %v9006_v57  ;;  %v3905_v24 = vpop.f32.mrb[99].mxu1  ;;  %v3976_v11 = vpop.f32.mrb[87].mxu0  ;;  %v9009_v6 = vld [vmem:[#allocation38_spill] sm:$0xff]  ;;  %v9010_v57 = vld [vmem:[#allocation39_spill] sm:$0xff] }
0x10b5   :  { %v3980_v35 = vadd.f32 %v3905_v24, %v9007_v13  ;;  %v3982_v54 = vadd.f32 %v3976_v11, %v9008_v48  ;;  %v9011_v13 = vld [vmem:[#allocation40_spill] sm:$0xff]  ;;  %v9012_v48 = vld [vmem:[#allocation41_spill] sm:$0xff] }
0x10b6   :  { %v5119_v56 = vmul.f32 -1.442695, %v3979_v7 }
0x10b7   :  { %v5120_v25 = vmul.f32 -1.442695, %v3980_v35  ;;  %v5121_v43 = vmul.f32 -1.442695, %v3982_v54 }
0x10b8   :  { %6866 = vpow2.f32 %v5119_v56 }
0x10b9   :  { %6868 = vpow2.f32 %v5120_v25 }
0x10ba   :  { %6870 = vpow2.f32 %v5121_v43 }
0x10bb   :  { %6872 = vtanh.f32 %v3981_v14 }
0x10c2   :  { %v6867_v44 = vpop.eup %6866 }
0x10c3   :  { %v6869_v28 = vpop.eup %6868  ;;  %v3986_v47 = vadd.f32 1.0, %v6867_v44 }
0x10c4   :  { %v3992_v19 = vadd.f32 1.0, %v6869_v28  ;;  %v6871_v31 = vpop.eup %6870 }
0x10c5   :  { %6874 = vrcp.f32 %v3986_v47  ;;  %v6873_v36 = vpop.eup %6872  ;;  %v3999_v9 = vadd.f32 1.0, %v6871_v31 }
0x10c6   :  { %6876 = vrcp.f32 %v3992_v19 }
0x10c7   :  { %6878 = vrcp.f32 %v3999_v9 }
0x10cf   :  { %v6875_v53 = vpop.eup %6874 }
0x10d0   :  { %v6877_v55 = vpop.eup %6876  ;;  %v4003_v2 = vmul.f32 %v6875_v53, %v6873_v36 }
0x10d1   :  { %v4002_v37 = vmul.f32 %v6877_v55, %v8618_v27  ;;  %v6879_v39 = vpop.eup %6878 }
0x10d3   :  { %v8660_v38 = vadd.f32 %v4003_v2, %v4002_v37 }
0x10d5   :  { %6880 = vtanh.f32 %v8660_v38 }
0x10df   :  { %v6881_v30 = vpop.eup %6880 }
0x10e0   :  { %v4006_v40 = vmul.f32 %v6881_v30, %v6879_v39 }
0x10e2   :  { %4072 = vmatmul.mubr.f32.vlgmr.msra.gmra.mrb[100].mxu1 %v4006_v40  ;;  %4143 = vmatmul.mubr.f32.vlgmr.msra.gmra.mrb[88].mxu0 %v4006_v40 }
0x10e3   :  { %6065 = vmatpush1.bf16.msra.mxu1 %v7873_v17  ;;  %6097 = vmatpush1.bf16.msra.mxu0 %v7967_v3 }
0x10e4   :  { %6067 = vmatprep.subr.bf16.mxu1 %v7875_v45  ;;  %6099 = vmatprep.subr.bf16.mxu0 %v7969_v51 }
0x10e5   :  { %4241 = vmatprep.mubr.f32.mxu1 %v8978_v29  ;;  %4312 = vmatprep.mubr.f32.mxu0 %v8978_v29 }
0x10e7   :  { %6069 = vmatpush1.bf16.msra.mxu1 %v7879_v22  ;;  %6101 = vmatpush1.bf16.msra.mxu0 %v7973_v16 }
0x10e8   :  { %6071 = vmatprep.subr.bf16.mxu1 %v7883_v8  ;;  %6103 = vmatprep.subr.bf16.mxu0 %v7977_v23 }
0x10eb   :  { %6073 = vmatpush1.bf16.msra.mxu1 %v7891_v12  ;;  %6105 = vmatpush1.bf16.msra.mxu0 %v7980_v0 }
0x10ec   :  { %6075 = vmatprep.subr.bf16.mxu1 %v7893_v20  ;;  %6107 = vmatprep.subr.bf16.mxu0 %v7983_v5 }
0x10ef   :  { %6077 = vmatpush1.bf16.msra.mxu1 %v7899_v42  ;;  %6109 = vmatpush1.bf16.msra.mxu0 %v7986_v21 }
0x10f0   :  { %6079 = vmatprep.subr.bf16.mxu1 %v7903_v52  ;;  %6111 = vmatprep.subr.bf16.mxu0 %v7989_v46 }
0x10f3   :  { %6081 = vmatpush1.bf16.msra.mxu1 %v7910_v32  ;;  %6113 = vmatpush1.bf16.msra.mxu0 %v7992_v50 }
0x10f4   :  { %6083 = vmatprep.subr.bf16.mxu1 %v7913_v26  ;;  %6115 = vmatprep.subr.bf16.mxu0 %v7995_v58 }
0x10f7   :  { %6085 = vmatpush1.bf16.msra.mxu1 %v7919_v59  ;;  %6117 = vmatpush1.bf16.msra.mxu0 %v7998_v15 }
0x10f8   :  { %6087 = vmatprep.subr.bf16.mxu1 %v7923_v1  ;;  %6119 = vmatprep.subr.bf16.mxu0 %v8001_v10 }
0x10fb   :  { %6089 = vmatpush1.bf16.msra.mxu1 %v7930_v63  ;;  %6121 = vmatpush1.bf16.msra.mxu0 %v8004_v49 }
0x10fc   :  { %6091 = vmatprep.subr.bf16.mxu1 %v7933_v4  ;;  %6123 = vmatprep.subr.bf16.mxu0 %v8007_v18 }
0x10ff   :  { %6093 = vmatpush1.bf16.msra.mxu1 %v7939_v61  ;;  %6125 = vmatpush1.bf16.msra.mxu0 %v8010_v60 }
0x1100   :  { %6127 = vmatprep.subr.bf16.mxu1 %v7862_v62  ;;  %6159 = vmatprep.subr.bf16.mxu0 %v7943_v41 }
0x11b5   :  { %v4073_v27 = vpop.f32.mrb[100].mxu1  ;;  %v4144_v34 = vpop.f32.mrb[88].mxu0 }
0x11b6   :  { %v4149_v7 = vadd.f32 %v4073_v27, %v9009_v6  ;;  %v4151_v14 = vadd.f32 %v4144_v34, %v9010_v57  ;;  %v4075_v24 = vpop.f32.mrb[101].mxu1  ;;  %v4146_v11 = vpop.f32.mrb[89].mxu0  ;;  %v9013_v6 = vld [vmem:[#allocation42_spill] sm:$0xff]  ;;  %v9014_v57 = vld [vmem:[#allocation43_spill] sm:$0xff] }
0x11b7   :  { %v4150_v35 = vadd.f32 %v4075_v24, %v9011_v13  ;;  %v4152_v54 = vadd.f32 %v4146_v11, %v9012_v48  ;;  %v9015_v13 = vld [vmem:[#allocation44_spill] sm:$0xff]  ;;  %v9016_v48 = vld [vmem:[#allocation45_spill] sm:$0xff] }
0x11b8   :  { %v5122_v56 = vmul.f32 -1.442695, %v4149_v7 }
0x11b9   :  { %v5123_v25 = vmul.f32 -1.442695, %v4150_v35  ;;  %v5124_v43 = vmul.f32 -1.442695, %v4152_v54 }
0x11ba   :  { %6882 = vpow2.f32 %v5122_v56 }
0x11bb   :  { %6884 = vpow2.f32 %v5123_v25 }
0x11bc   :  { %6886 = vpow2.f32 %v5124_v43 }
0x11bd   :  { %6888 = vtanh.f32 %v4151_v14 }
0x11c4   :  { %v6883_v44 = vpop.eup %6882 }
0x11c5   :  { %v6885_v28 = vpop.eup %6884  ;;  %v4156_v47 = vadd.f32 1.0, %v6883_v44 }
0x11c6   :  { %v4162_v19 = vadd.f32 1.0, %v6885_v28  ;;  %v6887_v31 = vpop.eup %6886 }
0x11c7   :  { %6890 = vrcp.f32 %v4156_v47  ;;  %v6889_v36 = vpop.eup %6888  ;;  %v4169_v9 = vadd.f32 1.0, %v6887_v31 }
0x11c8   :  { %6892 = vrcp.f32 %v4162_v19 }
0x11c9   :  { %6894 = vrcp.f32 %v4169_v9 }
0x11d1   :  { %v6891_v53 = vpop.eup %6890 }
0x11d2   :  { %v6893_v55 = vpop.eup %6892  ;;  %v4173_v2 = vmul.f32 %v6891_v53, %v6889_v36 }
0x11d3   :  { %v4172_v37 = vmul.f32 %v6893_v55, %v8660_v38  ;;  %v6895_v30 = vpop.eup %6894 }
0x11d5   :  { %v8702_v39 = vadd.f32 %v4173_v2, %v4172_v37 }
0x11d7   :  { %6896 = vtanh.f32 %v8702_v39 }
0x11e1   :  { %v6897_v40 = vpop.eup %6896 }
0x11e2   :  { %v4176_v27 = vmul.f32 %v6897_v40, %v6895_v30 }
0x11e4   :  { %4242 = vmatmul.mubr.f32.vlgmr.msra.gmra.mrb[102].mxu1 %v4176_v27  ;;  %4313 = vmatmul.mubr.f32.vlgmr.msra.gmra.mrb[90].mxu0 %v4176_v27 }
0x11e5   :  { %6129 = vmatpush1.bf16.msra.mxu1 %v7873_v17  ;;  %6161 = vmatpush1.bf16.msra.mxu0 %v7967_v3 }
0x11e6   :  { %6131 = vmatprep.subr.bf16.mxu1 %v7875_v45  ;;  %6163 = vmatprep.subr.bf16.mxu0 %v7969_v51 }
0x11e7   :  { %4411 = vmatprep.mubr.f32.mxu1 %v8978_v29  ;;  %4482 = vmatprep.mubr.f32.mxu0 %v8978_v29 }
0x11e9   :  { %6133 = vmatpush1.bf16.msra.mxu1 %v7879_v22  ;;  %6165 = vmatpush1.bf16.msra.mxu0 %v7973_v16 }
0x11ea   :  { %6135 = vmatprep.subr.bf16.mxu1 %v7883_v8  ;;  %6167 = vmatprep.subr.bf16.mxu0 %v7977_v23 }
0x11ed   :  { %6137 = vmatpush1.bf16.msra.mxu1 %v7891_v12  ;;  %6169 = vmatpush1.bf16.msra.mxu0 %v7980_v0 }
0x11ee   :  { %6139 = vmatprep.subr.bf16.mxu1 %v7893_v20  ;;  %6171 = vmatprep.subr.bf16.mxu0 %v7983_v5 }
0x11f1   :  { %6141 = vmatpush1.bf16.msra.mxu1 %v7899_v42  ;;  %6173 = vmatpush1.bf16.msra.mxu0 %v7986_v21 }
0x11f2   :  { %6143 = vmatprep.subr.bf16.mxu1 %v7903_v52  ;;  %6175 = vmatprep.subr.bf16.mxu0 %v7989_v46 }
0x11f5   :  { %6145 = vmatpush1.bf16.msra.mxu1 %v7910_v32  ;;  %6177 = vmatpush1.bf16.msra.mxu0 %v7992_v50 }
0x11f6   :  { %6147 = vmatprep.subr.bf16.mxu1 %v7913_v26  ;;  %6179 = vmatprep.subr.bf16.mxu0 %v7995_v58 }
0x11f9   :  { %6149 = vmatpush1.bf16.msra.mxu1 %v7919_v59  ;;  %6181 = vmatpush1.bf16.msra.mxu0 %v7998_v15 }
0x11fa   :  { %6151 = vmatprep.subr.bf16.mxu1 %v7923_v1  ;;  %6183 = vmatprep.subr.bf16.mxu0 %v8001_v10 }
0x11fd   :  { %6153 = vmatpush1.bf16.msra.mxu1 %v7930_v63  ;;  %6185 = vmatpush1.bf16.msra.mxu0 %v8004_v49 }
0x11fe   :  { %6155 = vmatprep.subr.bf16.mxu1 %v7933_v4  ;;  %6187 = vmatprep.subr.bf16.mxu0 %v8007_v18 }
0x1201   :  { %6157 = vmatpush1.bf16.msra.mxu1 %v7939_v61  ;;  %6189 = vmatpush1.bf16.msra.mxu0 %v8010_v60 }
0x1202   :  { %6191 = vmatprep.subr.bf16.mxu1 %v7862_v62  ;;  %6223 = vmatprep.subr.bf16.mxu0 %v7943_v41 }
0x12b7   :  { %v4243_v38 = vpop.f32.mrb[102].mxu1  ;;  %v4314_v34 = vpop.f32.mrb[90].mxu0 }
0x12b8   :  { %v4319_v7 = vadd.f32 %v4243_v38, %v9013_v6  ;;  %v4321_v14 = vadd.f32 %v4314_v34, %v9014_v57  ;;  %v4245_v24 = vpop.f32.mrb[103].mxu1  ;;  %v4316_v11 = vpop.f32.mrb[91].mxu0  ;;  %v9017_v6 = vld [vmem:[#allocation46_spill] sm:$0xff]  ;;  %v9018_v57 = vld [vmem:[#allocation47_spill] sm:$0xff] }
0x12b9   :  { %v4320_v35 = vadd.f32 %v4245_v24, %v9015_v13  ;;  %v4322_v54 = vadd.f32 %v4316_v11, %v9016_v48  ;;  %v9019_v13 = vld [vmem:[#allocation48_spill] sm:$0xff]  ;;  %v9020_v48 = vld [vmem:[#allocation49_spill] sm:$0xff] }
0x12ba   :  { %v5125_v56 = vmul.f32 -1.442695, %v4319_v7 }
0x12bb   :  { %v5126_v25 = vmul.f32 -1.442695, %v4320_v35  ;;  %v5127_v43 = vmul.f32 -1.442695, %v4322_v54 }
0x12bc   :  { %6898 = vpow2.f32 %v5125_v56 }
0x12bd   :  { %6900 = vpow2.f32 %v5126_v25 }
0x12be   :  { %6902 = vpow2.f32 %v5127_v43 }
0x12bf   :  { %6904 = vtanh.f32 %v4321_v14 }
0x12c6   :  { %v6899_v44 = vpop.eup %6898 }
0x12c7   :  { %v6901_v28 = vpop.eup %6900  ;;  %v4326_v47 = vadd.f32 1.0, %v6899_v44 }
0x12c8   :  { %v4332_v19 = vadd.f32 1.0, %v6901_v28  ;;  %v6903_v31 = vpop.eup %6902 }
0x12c9   :  { %6906 = vrcp.f32 %v4326_v47  ;;  %v6905_v36 = vpop.eup %6904  ;;  %v4339_v9 = vadd.f32 1.0, %v6903_v31 }
0x12ca   :  { %6908 = vrcp.f32 %v4332_v19 }
0x12cb   :  { %6910 = vrcp.f32 %v4339_v9 }
0x12d3   :  { %v6907_v53 = vpop.eup %6906 }
0x12d4   :  { %v6909_v55 = vpop.eup %6908  ;;  %v4343_v2 = vmul.f32 %v6907_v53, %v6905_v36 }
0x12d5   :  { %v4342_v37 = vmul.f32 %v6909_v55, %v8702_v39  ;;  %v6911_v40 = vpop.eup %6910 }
0x12d7   :  { %v8744_v30 = vadd.f32 %v4343_v2, %v4342_v37 }
0x12d9   :  { %6912 = vtanh.f32 %v8744_v30 }
0x12e3   :  { %v6913_v27 = vpop.eup %6912 }
0x12e4   :  { %v4346_v38 = vmul.f32 %v6913_v27, %v6911_v40 }
0x12e6   :  { %4412 = vmatmul.mubr.f32.vlgmr.msra.gmra.mrb[104].mxu1 %v4346_v38  ;;  %4483 = vmatmul.mubr.f32.vlgmr.msra.gmra.mrb[92].mxu0 %v4346_v38  ;;  %v4858_v38 = vld [vmem:[%s8919_s12 + $0x8] sm:$0xff] }
0x12e7   :  { %6193 = vmatpush1.bf16.msra.mxu1 %v7873_v17  ;;  %6225 = vmatpush1.bf16.msra.mxu0 %v7967_v3 }
0x12e8   :  { %6195 = vmatprep.subr.bf16.mxu1 %v7875_v45  ;;  %6227 = vmatprep.subr.bf16.mxu0 %v7969_v51 }
0x12e9   :  { %4581 = vmatprep.mubr.f32.mxu1 %v8978_v29  ;;  %4652 = vmatprep.mubr.f32.mxu0 %v8978_v29 }
0x12eb   :  { %6197 = vmatpush1.bf16.msra.mxu1 %v7879_v22  ;;  %6229 = vmatpush1.bf16.msra.mxu0 %v7973_v16 }
0x12ec   :  { %6199 = vmatprep.subr.bf16.mxu1 %v7883_v8  ;;  %6231 = vmatprep.subr.bf16.mxu0 %v7977_v23 }
0x12ef   :  { %6201 = vmatpush1.bf16.msra.mxu1 %v7891_v12  ;;  %6233 = vmatpush1.bf16.msra.mxu0 %v7980_v0 }
0x12f0   :  { %6203 = vmatprep.subr.bf16.mxu1 %v7893_v20  ;;  %6235 = vmatprep.subr.bf16.mxu0 %v7983_v5 }
0x12f3   :  { %6205 = vmatpush1.bf16.msra.mxu1 %v7899_v42  ;;  %6237 = vmatpush1.bf16.msra.mxu0 %v7986_v21 }
0x12f4   :  { %6207 = vmatprep.subr.bf16.mxu1 %v7903_v52  ;;  %6239 = vmatprep.subr.bf16.mxu0 %v7989_v46 }
0x12f7   :  { %6209 = vmatpush1.bf16.msra.mxu1 %v7910_v32  ;;  %6241 = vmatpush1.bf16.msra.mxu0 %v7992_v50 }
0x12f8   :  { %6211 = vmatprep.subr.bf16.mxu1 %v7913_v26  ;;  %6243 = vmatprep.subr.bf16.mxu0 %v7995_v58 }
0x12fb   :  { %6213 = vmatpush1.bf16.msra.mxu1 %v7919_v59  ;;  %6245 = vmatpush1.bf16.msra.mxu0 %v7998_v15 }
0x12fc   :  { %6215 = vmatprep.subr.bf16.mxu1 %v7923_v1  ;;  %6247 = vmatprep.subr.bf16.mxu0 %v8001_v10 }
0x12ff   :  { %6217 = vmatpush1.bf16.msra.mxu1 %v7930_v63  ;;  %6249 = vmatpush1.bf16.msra.mxu0 %v8004_v49 }
0x1300   :  { %6219 = vmatprep.subr.bf16.mxu1 %v7933_v4  ;;  %6251 = vmatprep.subr.bf16.mxu0 %v8007_v18 }
0x1303   :  { %6221 = vmatpush1.bf16.msra.mxu1 %v7939_v61  ;;  %6253 = vmatpush1.bf16.msra.mxu0 %v8010_v60 }
0x1304   :  { %6255 = vmatprep.subr.bf16.mxu1 %v7862_v62  ;;  %6287 = vmatprep.subr.bf16.mxu0 %v7943_v41 }
0x13b9   :  { %v4413_v39 = vpop.f32.mrb[104].mxu1  ;;  %v4484_v34 = vpop.f32.mrb[92].mxu0 }
0x13ba   :  { %v4489_v7 = vadd.f32 %v4413_v39, %v9017_v6  ;;  %v4491_v14 = vadd.f32 %v4484_v34, %v9018_v57  ;;  %v4415_v24 = vpop.f32.mrb[105].mxu1  ;;  %v4486_v11 = vpop.f32.mrb[93].mxu0  ;;  %v7024_v34 = vmov 0.0|0.0   ;;  %v4859_v6 = vld [vmem:[%s8919_s12 + $0x10] sm:$0xff] }
0x13bb   :  { %v4490_v35 = vadd.f32 %v4415_v24, %v9019_v13  ;;  %v4492_v54 = vadd.f32 %v4486_v11, %v9020_v48  ;;  %v4862_v24 = vld [vmem:[%s8919_s12 + $0x28] sm:$0xff]  ;;  %v4863_v13 = vld [vmem:[%s8919_s12 + $0x30] sm:$0xff] }
0x13bc   :  { %v5128_v56 = vmul.f32 -1.442695, %v4489_v7  ;;  %v4860_v7 = vld [vmem:[%s8919_s12 + $0x18] sm:$0xff] }
0x13bd   :  { %v5129_v25 = vmul.f32 -1.442695, %v4490_v35  ;;  %v5130_v43 = vmul.f32 -1.442695, %v4492_v54  ;;  %v6322_v57 = vpack.c.bf16 %v4860_v7, %v4859_v6  ;;  %v4864_v35 = vld [vmem:[%s8919_s12 + $0x38] sm:$0xff]  ;;  %v4865_v54 = vld [vmem:[%s8919_s12 + $0x40] sm:$0xff] }
0x13be   :  { %6914 = vpow2.f32 %v5128_v56  ;;  %v6328_v48 = vpack.c.bf16 %v4864_v35, %v4863_v13  ;;  %v4866_v56 = vld [vmem:[%s8919_s12 + $0x48] sm:$0xff] }
0x13bf   :  { %6916 = vpow2.f32 %v5129_v25  ;;  %v6331_v25 = vpack.c.bf16 %v4866_v56, %v4865_v54 }
0x13c0   :  { %6918 = vpow2.f32 %v5130_v43  ;;  %v4867_v43 = vld [vmem:[%s8919_s12 + $0x50] sm:$0xff] }
0x13c1   :  { %6920 = vtanh.f32 %v4491_v14  ;;  %v4861_v14 = vld [vmem:[%s8919_s12 + $0x20] sm:$0xff] }
0x13c2   :  { %v6325_v11 = vpack.c.bf16 %v4862_v24, %v4861_v14 }
0x13c8   :  { %v6915_v62 = vpop.eup %6914 }
0x13c9   :  { %v6917_v44 = vpop.eup %6916  ;;  %v4496_v41 = vadd.f32 1.0, %v6915_v62  ;;  %v4868_v62 = vld [vmem:[%s8919_s12 + $0x58] sm:$0xff] }
0x13ca   :  { %v4502_v28 = vadd.f32 1.0, %v6917_v44  ;;  %v6919_v47 = vpop.eup %6918  ;;  %v4869_v44 = vld [vmem:[%s8919_s12 + $0x60] sm:$0xff] }
0x13cb   :  { %6922 = vrcp.f32 %v4496_v41  ;;  %v6921_v19 = vpop.eup %6920  ;;  %v4509_v55 = vadd.f32 1.0, %v6919_v47  ;;  %v6334_v41 = vpack.c.bf16 %v4868_v62, %v4867_v43 }
0x13cc   :  { %6924 = vrcp.f32 %v4502_v28  ;;  %v4870_v28 = vld [vmem:[%s8919_s12 + $0x68] sm:$0xff] }
0x13cd   :  { %6926 = vrcp.f32 %v4509_v55  ;;  %v6337_v47 = vpack.c.bf16 %v4870_v28, %v4869_v44 }
0x13d5   :  { %v6923_v31 = vpop.eup %6922 }
0x13d6   :  { %v6925_v36 = vpop.eup %6924  ;;  %v4513_v53 = vmul.f32 %v6923_v31, %v6921_v19  ;;  %v4871_v19 = vld [vmem:[%s8919_s12 + $0x70] sm:$0xff]  ;;  %v4872_v31 = vld [vmem:[%s8919_s12 + $0x78] sm:$0xff] }
0x13d7   :  { %v4512_v2 = vmul.f32 %v6925_v36, %v8744_v30  ;;  %v6927_v37 = vpop.eup %6926  ;;  %v4857_v30 = vld [vmem:[%s8919_s12] sm:$0xff]  ;;  %v6340_v36 = vpack.c.bf16 %v4872_v31, %v4871_v19 }
0x13d8   :  { %v6319_v39 = vpack.c.bf16 %v4858_v38, %v4857_v30 }
0x13d9   :  { %v8786_v9 = vadd.f32 %v4513_v53, %v4512_v2  ;;  %v9025_v2 = vld [vmem:[#allocation54_spill] sm:$0xff] }
0x13db   :  { %6928 = vtanh.f32 %v8786_v9 }
0x13e5   :  { %v6929_v40 = vpop.eup %6928 }
0x13e6   :  { %v4516_v27 = vmul.f32 %v6929_v40, %v6927_v37 }
0x13e8   :  { %4582 = vmatmul.mubr.f32.vlgmr.msra.gmra.mrb[106].mxu1 %v4516_v27  ;;  %4653 = vmatmul.mubr.f32.vlgmr.msra.gmra.mrb[94].mxu0 %v4516_v27 }
0x13e9   :  { %6257 = vmatpush1.bf16.msra.mxu1 %v7873_v17  ;;  %6289 = vmatpush1.bf16.msra.mxu0 %v7967_v3 }
0x13ea   :  { %6259 = vmatprep.subr.bf16.mxu1 %v7875_v45  ;;  %6291 = vmatprep.subr.bf16.mxu0 %v7969_v51 }
0x13eb   :  { %4751 = vmatprep.mubr.f32.mxu1 %v8978_v29  ;;  %4822 = vmatprep.mubr.f32.mxu0 %v8978_v29 }
0x13ed   :  { %6261 = vmatpush1.bf16.msra.mxu1 %v7879_v22  ;;  %6293 = vmatpush1.bf16.msra.mxu0 %v7973_v16  ;;  %v9021_v22 = vld [vmem:[#allocation50_spill] sm:$0xff] }
0x13ee   :  { %6263 = vmatprep.subr.bf16.mxu1 %v7883_v8  ;;  %6295 = vmatprep.subr.bf16.mxu0 %v7977_v23 }
0x13f1   :  { %6265 = vmatpush1.bf16.msra.mxu1 %v7891_v12  ;;  %6297 = vmatpush1.bf16.msra.mxu0 %v7980_v0  ;;  %v9022_v12 = vld [vmem:[#allocation51_spill] sm:$0xff] }
0x13f2   :  { %6267 = vmatprep.subr.bf16.mxu1 %v7893_v20  ;;  %6299 = vmatprep.subr.bf16.mxu0 %v7983_v5 }
0x13f5   :  { %6269 = vmatpush1.bf16.msra.mxu1 %v7899_v42  ;;  %6301 = vmatpush1.bf16.msra.mxu0 %v7986_v21 }
0x13f6   :  { %6271 = vmatprep.subr.bf16.mxu1 %v7903_v52  ;;  %6303 = vmatprep.subr.bf16.mxu0 %v7989_v46 }
0x13f9   :  { %6273 = vmatpush1.bf16.msra.mxu1 %v7910_v32  ;;  %6305 = vmatpush1.bf16.msra.mxu0 %v7992_v50  ;;  %v9023_v32 = vld [vmem:[#allocation52_spill] sm:$0xff] }
0x13fa   :  { %6275 = vmatprep.subr.bf16.mxu1 %v7913_v26  ;;  %6307 = vmatprep.subr.bf16.mxu0 %v7995_v58 }
0x13fd   :  { %6277 = vmatpush1.bf16.msra.mxu1 %v7919_v59  ;;  %6309 = vmatpush1.bf16.msra.mxu0 %v7998_v15  ;;  %v9024_v59 = vld [vmem:[#allocation53_spill] sm:$0xff] }
0x13fe   :  { %6279 = vmatprep.subr.bf16.mxu1 %v7923_v1  ;;  %6311 = vmatprep.subr.bf16.mxu0 %v8001_v10 }
0x1401   :  { %6281 = vmatpush1.bf16.msra.mxu1 %v7930_v63  ;;  %6313 = vmatpush1.bf16.msra.mxu0 %v8004_v49 }
0x1402   :  { %6283 = vmatprep.subr.bf16.mxu1 %v7933_v4  ;;  %6315 = vmatprep.subr.bf16.mxu0 %v8007_v18 }
0x1405   :  { %6285 = vmatpush1.bf16.msra.mxu1 %v7939_v61  ;;  %6317 = vmatpush1.bf16.msra.mxu0 %v8010_v60 }
0x1406   :  { %6318 = vmatprep.subr.bf16.mxu1 %v7024_v34 }
0x14bb   :  { %v4583_v17 = vpop.f32.mrb[106].mxu1  ;;  %v4654_v45 = vpop.f32.mrb[94].mxu0 }
0x14bc   :  { %v4659_v8 = vadd.f32 %v4583_v17, %v9021_v22  ;;  %v4661_v20 = vadd.f32 %v4654_v45, %v9022_v12  ;;  %v4585_v42 = vpop.f32.mrb[107].mxu1  ;;  %v4656_v52 = vpop.f32.mrb[95].mxu0  ;;  %v9027_v17 = vld [vmem:[#allocation56_spill] sm:$0xff] }
0x14bd   :  { %v4660_v26 = vadd.f32 %v4585_v42, %v9023_v32  ;;  %v4662_v1 = vadd.f32 %v4656_v52, %v9024_v59 }
0x14be   :  { %v5131_v63 = vmul.f32 -1.442695, %v4659_v8 }
0x14bf   :  { %v5132_v4 = vmul.f32 -1.442695, %v4660_v26  ;;  %v5133_v3 = vmul.f32 -1.442695, %v4662_v1 }
0x14c0   :  { %6930 = vpow2.f32 %v5131_v63 }
0x14c1   :  { %6932 = vpow2.f32 %v5132_v4 }
0x14c2   :  { %6934 = vpow2.f32 %v5133_v3 }
0x14c3   :  { %6936 = vtanh.f32 %v4661_v20 }
0x14ca   :  { %v6931_v61 = vpop.eup %6930 }
0x14cb   :  { %v6933_v51 = vpop.eup %6932  ;;  %v4666_v16 = vadd.f32 1.0, %v6931_v61 }
0x14cc   :  { %v4672_v23 = vadd.f32 1.0, %v6933_v51  ;;  %v6935_v0 = vpop.eup %6934 }
0x14cd   :  { %6938 = vrcp.f32 %v4666_v16  ;;  %v6937_v5 = vpop.eup %6936  ;;  %v4679_v58 = vadd.f32 1.0, %v6935_v0 }
0x14ce   :  { %6940 = vrcp.f32 %v4672_v23 }
0x14cf   :  { %6942 = vrcp.f32 %v4679_v58  ;;  %v5138_v58 = vld [vmem:[%s8921_s14] ss:$0 sm:$0xff] }
0x14d7   :  { %v6939_v21 = vpop.eup %6938 }
0x14d8   :  { %v6941_v46 = vpop.eup %6940  ;;  %v4683_v50 = vmul.f32 %v6939_v21, %v6937_v5  ;;  %v5137_v5 = vld [vmem:[%s8920_s13] ss:$0 sm:$0xff]  ;;  %s7026_s13 = smov [#allocation5]  }
0x14d9   :  { %v4682_v15 = vmul.f32 %v6941_v46, %v8786_v9  ;;  %v6943_v49 = vpop.eup %6942  ;;  %s4986_s14 = sshll.u32 %s7026_s13, 4  ;;  %s4987_s14 = int_to_ptr.vmem [resolvable:$true] %s4986_s14 }
0x14da   :  { %p6993_p9 = scmp.lt.s32.totalorder %s4987_s14, %s4987_s14 }
0x14db   :  { %v8826_v10 = vadd.f32 %v4683_v50, %v4682_v15 }
0x14dd   :  { %6944 = vtanh.f32 %v8826_v10 }
0x14e7   :  { %v6945_v18 = vpop.eup %6944 }
0x14e8   :  { %v4686_v60 = vmul.f32 %v6945_v18, %v6943_v49 }
0x14ea   :  { %4752 = vmatmul.mubr.f32.vlgmr.msra.gmra.mrb[108].mxu1 %v4686_v60  ;;  %4823 = vmatmul.mubr.f32.vlgmr.msra.gmra.mrb[96].mxu0 %v4686_v60 }
0x14eb   :  { %6320 = vmatpush3.bf16.msra.mxu1 %v6319_v39  ;;  %5291 = vmatprep.mubr.msk.f32.mxu1 %vm7025_vm12, %v8978_v29  ;;  %v9026_v29 = vld [vmem:[#allocation55_spill] sm:$0xff] }
0x14ec   :  { %6321 = vmatprep.subr.bf16.mxu1 %v7024_v34 }
0x14ef   :  { %6323 = vmatpush3.bf16.msra.mxu1 %v6322_v57 }
0x14f0   :  { %6324 = vmatprep.subr.bf16.mxu1 %v7024_v34 }
0x14f3   :  { %6326 = vmatpush3.bf16.msra.mxu1 %v6325_v11 }
0x14f4   :  { %6327 = vmatprep.subr.bf16.mxu1 %v7024_v34 }
0x14f7   :  { %6329 = vmatpush3.bf16.msra.mxu1 %v6328_v48 }
0x14f8   :  { %6330 = vmatprep.subr.bf16.mxu1 %v7024_v34 }
0x14fb   :  { %6332 = vmatpush3.bf16.msra.mxu1 %v6331_v25 }
0x14fc   :  { %6333 = vmatprep.subr.bf16.mxu1 %v7024_v34 }
0x14ff   :  { %6335 = vmatpush3.bf16.msra.mxu1 %v6334_v41 }
0x1500   :  { %6336 = vmatprep.subr.bf16.mxu1 %v7024_v34 }
0x1503   :  { %6338 = vmatpush3.bf16.msra.mxu1 %v6337_v47 }
0x1504   :  { %6339 = vmatprep.subr.bf16.mxu1 %v7024_v34 }
0x1507   :  { %6341 = vmatpush3.bf16.msra.mxu1 %v6340_v36 }
0x15bd   :  { %v4753_v53 = vpop.f32.mrb[108].mxu1  ;;  %v4824_v55 = vpop.f32.mrb[96].mxu0 }
0x15be   :  { %v4829_v9 = vadd.f32 %v4753_v53, %v9025_v2  ;;  %v4831_v37 = vadd.f32 %v4824_v55, %v9026_v29  ;;  %v4755_v40 = vpop.f32.mrb[109].mxu1  ;;  %v4826_v27 = vpop.f32.mrb[97].mxu0 }
0x15bf   :  { %v4830_v45 = vadd.f32 %v4755_v40, %v9027_v17  ;;  %v4832_v22 = vadd.f32 %v4826_v27, %v8230_v33 }
0x15c0   :  { %v5134_v8 = vmul.f32 -1.442695, %v4829_v9 }
0x15c1   :  { %v5135_v12 = vmul.f32 -1.442695, %v4830_v45  ;;  %v5136_v20 = vmul.f32 -1.442695, %v4832_v22 }
0x15c2   :  { %6946 = vpow2.f32 %v5134_v8 }
0x15c3   :  { %6948 = vpow2.f32 %v5135_v12 }
0x15c4   :  { %6950 = vpow2.f32 %v5136_v20 }
0x15c5   :  { %6952 = vtanh.f32 %v4831_v37 }
0x15cc   :  { %v6947_v42 = vpop.eup %6946 }
0x15cd   :  { %v6949_v52 = vpop.eup %6948  ;;  %v4836_v32 = vadd.f32 1.0, %v6947_v42 }
0x15ce   :  { %v4842_v26 = vadd.f32 1.0, %v6949_v52  ;;  %v6951_v59 = vpop.eup %6950 }
0x15cf   :  { %6954 = vrcp.f32 %v4836_v32  ;;  %v6953_v1 = vpop.eup %6952  ;;  %v4849_v61 = vadd.f32 1.0, %v6951_v59 }
0x15d0   :  { %6956 = vrcp.f32 %v4842_v26 }
0x15d1   :  { %6958 = vrcp.f32 %v4849_v61 }
0x15d9   :  { %v6955_v63 = vpop.eup %6954 }
0x15da   :  { %v6957_v4 = vpop.eup %6956  ;;  %v4853_v3 = vmul.f32 %v6955_v63, %v6953_v1 }
0x15db   :  { %v4852_v33 = vmul.f32 %v6957_v4, %v8826_v10  ;;  %v6959_v16 = vpop.eup %6958  ;;  %v5139_v10 = vld [vmem:[%s8922_s15] ss:$0 sm:$0xff]  ;;  %s6988_s15 = scalar_lea.vmem %s4987_s14, 128 }
0x15dc   :  { %p6989_p8 = scmp.ne.s32.totalorder %s4987_s14, %s6988_s15  ;;  %p6994_p10 = scmp.lt.s32.totalorder %s6988_s15, %s6988_s15 }
0x15dd   :  { %v4854_v51 = vadd.f32 %v4853_v3, %v4852_v33 }
0x15de   :  { %p6995_p11 = por %p6994_p10, %p6993_p9 }
0x15df   :  { %6960 = vtanh.f32 %v4854_v51 }
0x15e0   :  { %p6996_p12 = pnand %p6995_p11, %p6989_p8 }
0x15e9   :  { %v6961_v23 = vpop.eup %6960 }
0x15ea   :  { %v4856_v0 = vmul.f32 %v6961_v23, %v6959_v16 }
0x15ec   :  { %5292 = vmatmul.mubr.f32.vlgmr.msra.gmra.mrb[110].mxu1 %v4856_v0 }
0x16bf   :  { %v4946_v21 = vpop.f32.mrb[110].mxu1 }
0x16c0   :  { %v4947_v46 = vadd.f32 %v5137_v5, %v4946_v21  ;;  %v5293_v50 = vpop.f32.mrb[111].mxu1 }
0x16c2   :  { %v4950_v15 = vmax.f32 %v4947_v46, 0.0 }
0x16c4   :  { %v4958_v49 = vmul.f32 %v5138_v58, %v4950_v15 }
0x16c6   :  { %v4966_v18 = vadd.f32 %v5139_v10, %v4958_v49 }
0x16c8   :  { %v4967_v60 = vsel %vm375_vm2, %v4966_v18, -inf }
0x16c9   :  { %4968 = vmax.xlane.f32.xlu0 %v4967_v60 }
0x1756   :  { %v4969_v30 = vpop.xlane.xlu0 %4968 }
0x1757   :  { %v4970_v38 = vsub.f32 %v4966_v18, %v4969_v30 }
0x1759   :  { %v4971_v39 = vmul.f32 1.442695, %v4970_v38 }
0x175b   :  { %6962 = vpow2.f32 %v4971_v39 }
0x1765   :  { %v6963_v34 = vpop.eup %6962 }
0x1766   :  { %v4973_v6 = vsel %vm375_vm2, %v6963_v34, 0.0 }
0x1767   :  { %4974 = vadd.xlane.f32.xlu1 %v4973_v6 }
0x17f4   :  { %v4975_v7 = vpop.xlane.xlu1 %4974 }
0x17f5   :  { %6964 = vlog2.f32 %v4975_v7 }
0x17ff   :  { %v6965_v57 = vpop.eup %6964 }
0x1800   :  { %v4977_v14 = vmul.f32 0.6931472, %v6965_v57 }
0x1802   :  { %v4978_v24 = vsub.f32 %v4970_v38, %v4977_v14 }
0x1804   :  { %4979 = vst.msk [vmem:[#allocation5] sm:$0xff] %vm375_vm2, %v4978_v24 }
0x1805   :  { %6999 = shalt.err (!%p6996_p12)
}
0x1806   :  { %s7000_s10 = scalar_lea.hbm %s8923_s16, 128 }
0x1807   :  { %p7001_p13 = scmp.ne.s32.totalorder %s8923_s16, %s7000_s10  ;;  %p7004_p0 = scmp.lt.u32.totalorder %s7000_s10, %s8923_s16 }
0x1809   :  { %p7006_p1 = pnand %p7004_p0, %p7001_p13 }
0x180b   :  { %7009 = shalt.err (!%p7006_p1)
}
0x180c   :  { %4989 = dma.vmem_to_hbm [thread:$0]  %s4987_s14, 128, %s8923_s16, [#allocation4]  }
0x180d   :  { %7012 = dma.done.wait [#allocation4], 128  }
0x180e   :  { %7013 = vsyncadd [#allocation4], 4294967168 }
0x180f   :  { %4993 = vsyncpa [#allocation3], 1 }
0x1810   :  { %4994 = vsyncpa [#allocation4], 1 }

</bundles_post_ra>
